<compile_context>
chip_gen: v6e
topology: v6e:2x2x1
jax: 0.10.0
libtpu: 0.0.40
codegen_flags: <defaults>
</compile_context>

<pallas_src>
import functools

import numpy as np
import jax
import jax.numpy as jnp
from jax.experimental import pallas as pl
from jax.experimental.pallas import tpu as pltpu


def _round_up(x, m):
    return ((x + m - 1) // m) * m


def _cosine_embedding_kernel(taus_ref, w_ref, b_ref, kpi_ref, out_ref,
                             cos_ref, z_ref, *, n_seed, pack, transpose_out):
    # taus_ref: (1, tile_m)        lane-dense row of tau values (per-tile permuted)
    # w_ref:    (E, K)             nn.Linear weight, grid-resident
    # b_ref:    (E, 1)             bias column, grid-resident
    # kpi_ref:  (n_seed, 1)        pi * (1..n_seed), grid-resident
    # out_ref:  (tile_m/pack, pack*E)  packed row-major output block
    #           (or (E, tile_m) when transpose_out=False)
    # cos_ref:  (K, tile_m)        VMEM scratch for the cosine features
    # z_ref:    (pack*E, tile_m/pack)  VMEM scratch for the pre-transpose result
    E, K = w_ref.shape
    tau = taus_ref[...]                                   # (1, tile_m) f32
    tile_m = tau.shape[1]

    # ---- cosine features -------------------------------------------------
    # Seed harmonics on the EUP: cos(fl(k*pi) * tau), k = 1..n_seed (same fp32
    # ordering as the reference).  Written straight to the scratch.
    seed = jnp.cos(kpi_ref[...] * tau)                    # (n_seed, tile_m)
    cos_ref[0:n_seed, :] = seed

    if n_seed < K:
        # Remaining harmonics on the VALU via the block angle-addition
        # recurrence  cos((k+s)x) = 2 cos(sx) cos(kx) - cos((k-s)x),
        # each block written directly at its sublane offset (no concat copy).
        s = n_seed // 2
        step = jnp.broadcast_to(2.0 * seed[s - 1:s, :], (s, tile_m))  # hoisted broadcast
        prev2, prev1 = seed[0:s, :], seed[s:n_seed, :]
        for j in range(2, K // s):
            nxt = step * prev1 - prev2
            cos_ref[j * s:(j + 1) * s, :] = nxt
            prev2, prev1 = prev1, nxt

    w = w_ref[...]                                        # (E, K) f32
    b = b_ref[...]                                        # (E, 1)

    if not transpose_out:
        # Legacy lane-dense (E, tile_m) layout; wrapper transposes afterwards.
        y = jnp.dot(w, cos_ref[...], preferred_element_type=jnp.float32)
        out_ref[...] = jnp.maximum(y + b, 0.0).astype(out_ref.dtype)
        return

    # ---- packed row-major output ------------------------------------------
    # The wrapper permutes taus within the tile so kernel column q*tm_pack + r
    # corresponds to output row pack*r + q.  Each q-group's (E, tm_pack) result
    # is written at sublane offset q*E of z_ref; a single lane-dense
    # (pack*E, tm_pack) -> (tm_pack, pack*E) transpose (XLU, otherwise idle)
    # then yields a block that is bit-for-bit row-major (tile_m, E).
    tm_pack = tile_m // pack
    for q in range(pack):
        yq = jnp.dot(w, cos_ref[:, q * tm_pack:(q + 1) * tm_pack],
                     preferred_element_type=jnp.float32)  # (E, tm_pack)
        z_ref[q * E:(q + 1) * E, :] = jnp.maximum(yq + b, 0.0)
    out_ref[...] = z_ref[...].T.astype(out_ref.dtype)     # unmasked 128-lane stores


def cosine_embedding_forward(taus, weight, bias, *, tile_m=4096,
                             seed_harmonics=16, out_dtype=jnp.float32):
    """taus: (B, N); weight: (E, K) as in nn.Linear; bias: (E,). Returns (B, N, E).

    tile_m:          tile over the flattened B*N axis (rounded to pack*128).
                     Default 4096 amortizes per-grid-step overhead; it is
                     capped so the grid has >= 2 steps when M allows (v7x 2 TCs).
    seed_harmonics:  harmonics evaluated with jnp.cos on the EUP; the rest use
                     a VALU block recurrence.  Pass >= K for exact reference
                     parity (recurrence disabled).  Kept >= 16 so recurrence
                     blocks stay 8-sublane aligned.
    out_dtype:       jnp.bfloat16 halves output HBM writeback (useful on v5e).
    """
    B, N = taus.shape
    E, K = weight.shape
    M = B * N

    # Lane packing: pack*E == 128 makes the packed output block bit-for-bit
    # row-major (M, E) with fully lane-dense stores (E=32 -> pack=4).
    if E <= 128 and 128 % E == 0:
        pack, transpose_out = 128 // E, True
    elif E % 128 == 0:
        pack, transpose_out = 1, True
    else:
        # TODO(synk): packed row-major writeback for E not a divisor/multiple
        # of 128; this fallback keeps the old (E, M) layout + wrapper transpose.
        pack, transpose_out = 1, False

    align = pack * 128
    tile_m = max(align, (int(tile_m) // align) * align)
    m_min = _round_up(M, align)
    if m_min >= 2 * align:
        # Keep >= 2 grid steps so the "parallel" M axis can be split across
        # both v7x TensorCores (also enables compute/DMA overlap elsewhere).
        tile_m = min(tile_m, _round_up((m_min + 1) // 2, align))
    else:
        tile_m = min(tile_m, m_min)
    m_pad = _round_up(M, tile_m)
    grid = (m_pad // tile_m,)
    tm_pack = tile_m // pack

    # EUP seed count; fall back to pure jnp.cos when the recurrence split is
    # invalid (keeps s = n_seed//2 >= 8 so blocks stay sublane aligned).
    n_seed = int(seed_harmonics)
    if not (16 <= n_seed < K and n_seed % 2 == 0 and K % (n_seed // 2) == 0):
        n_seed = K
    k_pi = (np.float32(np.pi) *
            np.arange(1, n_seed + 1, dtype=np.float32)).reshape(n_seed, 1)

    # Flatten, pad, and (for pack > 1) permute taus within each tile so that
    # kernel column q*tm_pack + r maps to output row pack*r + q.  This is a
    # tiny (M floats) XLA shuffle; the big (M, E) output needs no transpose.
    taus_flat = taus.reshape(-1).astype(jnp.float32)
    if m_pad != M:
        taus_flat = jnp.pad(taus_flat, (0, m_pad - M))
    if pack > 1:
        taus_flat = taus_flat.reshape(m_pad // tile_m, tm_pack, pack).transpose(0, 2, 1)
    taus_row = taus_flat.reshape(1, m_pad)

    w = weight.astype(jnp.float32)                        # (E, K) used as-is
    b_col = bias.reshape(E, 1).astype(jnp.float32)
    k_pi_arr = jnp.asarray(k_pi)

    kernel = functools.partial(_cosine_embedding_kernel, n_seed=n_seed,
                               pack=pack, transpose_out=transpose_out)

    if transpose_out:
        out_shape = jax.ShapeDtypeStruct((m_pad // pack, pack * E), out_dtype)
        out_spec = pl.BlockSpec((tm_pack, pack * E), lambda i: (i, 0))
    else:
        out_shape = jax.ShapeDtypeStruct((E, m_pad), out_dtype)
        out_spec = pl.BlockSpec((E, tile_m), lambda i: (0, i))

    out = pl.pallas_call(
        kernel,
        out_shape=out_shape,
        grid_spec=pltpu.PrefetchScalarGridSpec(
            num_scalar_prefetch=0,
            grid=grid,
            in_specs=[
                pl.BlockSpec((1, tile_m), lambda i: (0, i)),    # taus, lane-dense row
                pl.BlockSpec((E, K), lambda i: (0, 0)),         # W, grid-resident
                pl.BlockSpec((E, 1), lambda i: (0, 0)),         # bias column, resident
                pl.BlockSpec((n_seed, 1), lambda i: (0, 0)),    # k*pi constants, resident
            ],
            out_specs=out_spec,
            scratch_shapes=[
                pltpu.VMEM((K, tile_m), jnp.float32),           # cosine features
                pltpu.VMEM((pack * E, tm_pack), jnp.float32),   # pre-transpose result
            ],
        ),
        # NOTE: if profiling ever shows exposed output-writeback DMA, the out
        # spec can additionally use pipeline_mode=pl.Buffered(3).
        compiler_params=pltpu.CompilerParams(
            dimension_semantics=("parallel",)),                 # shard M across TCs (v7x)
    )(taus_row, w, b_col, k_pi_arr)

    if transpose_out:
        out_flat = out.reshape(m_pad, E)                        # free reinterpretation
        if m_pad != M:
            out_flat = out_flat[:M]                             # contiguous prefix only
        return out_flat.reshape(B, N, E)
    return out[:, :M].T.reshape(B, N, E)                        # legacy fallback path


def _reference_forward(taus, weight, bias):
    B, N = taus.shape
    E, K = weight.shape
    i_pi = np.pi * jnp.arange(1, K + 1, dtype=taus.dtype).reshape(1, 1, K)
    cosines = jnp.cos(taus.reshape(B, N, 1) * i_pi).reshape(B * N, K)
    y = jnp.maximum(cosines @ weight.T + bias, 0.0)
    return y.reshape(B, N, E)


if __name__ == "__main__":
    num_cosines = 64
    embedding_dim = 32
    batch_size = 2
    n_taus = 8

    key = jax.random.PRNGKey(0)
    k_tau, k_w, k_b = jax.random.split(key, 3)

    # Deterministic parameter init mimicking nn.Linear(num_cosines, embedding_dim).
    bound = 1.0 / np.sqrt(num_cosines)
    weight = jax.random.uniform(k_w, (embedding_dim, num_cosines),
                                minval=-bound, maxval=bound, dtype=jnp.float32)
    bias = jax.random.uniform(k_b, (embedding_dim,),
                              minval=-bound, maxval=bound, dtype=jnp.float32)
    taus = jax.random.uniform(k_tau, (batch_size, n_taus), dtype=jnp.float32)

    ref = _reference_forward(taus, weight, bias)

    # 1) Exact-cos path (recurrence disabled): strict parity with the reference.
    out_exact = jax.block_until_ready(
        cosine_embedding_forward(taus, weight, bias, seed_harmonics=num_cosines))
    np.testing.assert_allclose(np.asarray(out_exact), np.asarray(ref),
                               rtol=1e-5, atol=1e-5)

    # 2) Default fast path (75% of cos() moved off the EUP via the recurrence).
    out = jax.block_until_ready(cosine_embedding_forward(taus, weight, bias))
    np.testing.assert_allclose(np.asarray(out), np.asarray(ref),
                               rtol=1e-5, atol=5e-5)
    assert out.shape == (batch_size, n_taus, embedding_dim)

    # 3) Multi-tile grid + ragged tail: exercises the per-tile tau permutation
    #    and the packed row-major writeback across several grid steps.
    taus2 = jax.random.uniform(jax.random.PRNGKey(1), (3, 400), dtype=jnp.float32)
    ref2 = _reference_forward(taus2, weight, bias)
    out2 = jax.block_until_ready(
        cosine_embedding_forward(taus2, weight, bias, tile_m=512))
    np.testing.assert_allclose(np.asarray(out2), np.asarray(ref2),
                               rtol=1e-5, atol=5e-5)

    # 4) bf16 output writeback (v5e bandwidth option) — looser tolerance.
    out_bf16 = jax.block_until_ready(
        cosine_embedding_forward(taus, weight, bias, out_dtype=jnp.bfloat16))
    np.testing.assert_allclose(np.asarray(out_bf16, dtype=np.float32),
                               np.asarray(ref), rtol=2e-2, atol=2e-2)

    print("KERNEL_OK")
</pallas_src>

<mosaic_0001>
module attributes {stable_mosaic.version = 11 : i64} {
  func.func @_cosine_embedding_kernel(%arg0: i32, %arg1: memref<1x512xf32, #tpu.memory_space<vmem>>, %arg2: memref<32x64xf32, #tpu.memory_space<vmem>>, %arg3: memref<32x1xf32, #tpu.memory_space<vmem>>, %arg4: memref<64x1xf32, #tpu.memory_space<vmem>>, %arg5: memref<128x128xf32, #tpu.memory_space<vmem>>, %arg6: memref<64x512xf32, #tpu.memory_space<vmem>>, %arg7: memref<128x128xf32, #tpu.memory_space<vmem>>) attributes {dimension_semantics = [#tpu.dimension_semantics<parallel>], iteration_bounds = array<i64: 1>, scalar_prefetch = 0 : i64, scratch_operands = 2 : i64, tpu.core_type = #tpu.core_type<tc>, window_params = [{transform_indices = @transform_0, window_bounds = array<i64: 1, 512>}, {pipeline_mode = #tpu.pipeline_mode<synchronous>, transform_indices = @transform_1, window_bounds = array<i64: 32, 64>}, {pipeline_mode = #tpu.pipeline_mode<synchronous>, transform_indices = @transform_2, window_bounds = array<i64: 32, 1>}, {pipeline_mode = #tpu.pipeline_mode<synchronous>, transform_indices = @transform_3, window_bounds = array<i64: 64, 1>}, {transform_indices = @transform_4, window_bounds = array<i64: 128, 128>}]} {
    %c0 = arith.constant 0 : index
    %c0_0 = arith.constant 0 : index
    %0 = vector.load %arg1[%c0, %c0_0] : memref<1x512xf32, #tpu.memory_space<vmem>>, vector<1x512xf32>
    %c0_1 = arith.constant 0 : index
    %c0_2 = arith.constant 0 : index
    %1 = vector.load %arg4[%c0_1, %c0_2] : memref<64x1xf32, #tpu.memory_space<vmem>>, vector<64x1xf32>
    %2 = vector.broadcast %1 : vector<64x1xf32> to vector<64x512xf32>
    %3 = vector.broadcast %0 : vector<1x512xf32> to vector<64x512xf32>
    %4 = arith.mulf %2, %3 : vector<64x512xf32>
    %5 = math.cos %4 : vector<64x512xf32>
    %c0_3 = arith.constant 0 : index
    %c0_4 = arith.constant 0 : index
    %6 = vector.load %arg6[%c0_3, %c0_4] : memref<64x512xf32, #tpu.memory_space<vmem>>, vector<64x512xf32>
    tpu.vector_store %arg6[%c0_3, %c0_4], %5 {strides = array<i32>} : memref<64x512xf32, #tpu.memory_space<vmem>>, vector<64x512xf32>,
    %c0_5 = arith.constant 0 : index
    %c0_6 = arith.constant 0 : index
    %7 = vector.load %arg2[%c0_5, %c0_6] : memref<32x64xf32, #tpu.memory_space<vmem>>, vector<32x64xf32>
    %c0_7 = arith.constant 0 : index
    %c0_8 = arith.constant 0 : index
    %8 = vector.load %arg3[%c0_7, %c0_8] : memref<32x1xf32, #tpu.memory_space<vmem>>, vector<32x1xf32>
    %c0_9 = arith.constant 0 : index
    %c0_10 = arith.constant 0 : index
    %9 = vector.load %arg6[%c0_9, %c0_10] : memref<64x512xf32, #tpu.memory_space<vmem>>, vector<64x128xf32>
    %cst = arith.constant dense<0.000000e+00> : vector<32x128xf32>
    %10 = tpu.matmul %7, %9, %cst {dimension_numbers = #tpu.dot_dimension_numbers<[1], [0], [0], [1], [0, 0, 1, 1], [], []>} : vector<32x64xf32>, vector<64x128xf32>, vector<32x128xf32> -> vector<32x128xf32>
    %11 = vector.broadcast %8 : vector<32x1xf32> to vector<32x128xf32>
    %12 = arith.addf %10, %11 : vector<32x128xf32>
    %cst_11 = arith.constant 0.000000e+00 : f32
    %13 = vector.broadcast %cst_11 : f32 to vector<32x128xf32>
    %14 = arith.maximumf %12, %13 : vector<32x128xf32>
    %c0_12 = arith.constant 0 : index
    %c0_13 = arith.constant 0 : index
    %15 = vector.load %arg7[%c0_12, %c0_13] : memref<128x128xf32, #tpu.memory_space<vmem>>, vector<32x128xf32>
    tpu.vector_store %arg7[%c0_12, %c0_13], %14 {strides = array<i32>} : memref<128x128xf32, #tpu.memory_space<vmem>>, vector<32x128xf32>,
    %c0_14 = arith.constant 0 : index
    %c128 = arith.constant 128 : index
    %16 = vector.load %arg6[%c0_14, %c128] : memref<64x512xf32, #tpu.memory_space<vmem>>, vector<64x128xf32>
    %cst_15 = arith.constant dense<0.000000e+00> : vector<32x128xf32>
    %17 = tpu.matmul %7, %16, %cst_15 {dimension_numbers = #tpu.dot_dimension_numbers<[1], [0], [0], [1], [0, 0, 1, 1], [], []>} : vector<32x64xf32>, vector<64x128xf32>, vector<32x128xf32> -> vector<32x128xf32>
    %18 = vector.broadcast %8 : vector<32x1xf32> to vector<32x128xf32>
    %19 = arith.addf %17, %18 : vector<32x128xf32>
    %cst_16 = arith.constant 0.000000e+00 : f32
    %20 = vector.broadcast %cst_16 : f32 to vector<32x128xf32>
    %21 = arith.maximumf %19, %20 : vector<32x128xf32>
    %c32 = arith.constant 32 : index
    %c0_17 = arith.constant 0 : index
    %22 = vector.load %arg7[%c32, %c0_17] : memref<128x128xf32, #tpu.memory_space<vmem>>, vector<32x128xf32>
    tpu.vector_store %arg7[%c32, %c0_17], %21 {strides = array<i32>} : memref<128x128xf32, #tpu.memory_space<vmem>>, vector<32x128xf32>,
    %c0_18 = arith.constant 0 : index
    %c256 = arith.constant 256 : index
    %23 = vector.load %arg6[%c0_18, %c256] : memref<64x512xf32, #tpu.memory_space<vmem>>, vector<64x128xf32>
    %cst_19 = arith.constant dense<0.000000e+00> : vector<32x128xf32>
    %24 = tpu.matmul %7, %23, %cst_19 {dimension_numbers = #tpu.dot_dimension_numbers<[1], [0], [0], [1], [0, 0, 1, 1], [], []>} : vector<32x64xf32>, vector<64x128xf32>, vector<32x128xf32> -> vector<32x128xf32>
    %25 = vector.broadcast %8 : vector<32x1xf32> to vector<32x128xf32>
    %26 = arith.addf %24, %25 : vector<32x128xf32>
    %cst_20 = arith.constant 0.000000e+00 : f32
    %27 = vector.broadcast %cst_20 : f32 to vector<32x128xf32>
    %28 = arith.maximumf %26, %27 : vector<32x128xf32>
    %c64 = arith.constant 64 : index
    %c0_21 = arith.constant 0 : index
    %29 = vector.load %arg7[%c64, %c0_21] : memref<128x128xf32, #tpu.memory_space<vmem>>, vector<32x128xf32>
    tpu.vector_store %arg7[%c64, %c0_21], %28 {strides = array<i32>} : memref<128x128xf32, #tpu.memory_space<vmem>>, vector<32x128xf32>,
    %c0_22 = arith.constant 0 : index
    %c384 = arith.constant 384 : index
    %30 = vector.load %arg6[%c0_22, %c384] : memref<64x512xf32, #tpu.memory_space<vmem>>, vector<64x128xf32>
    %cst_23 = arith.constant dense<0.000000e+00> : vector<32x128xf32>
    %31 = tpu.matmul %7, %30, %cst_23 {dimension_numbers = #tpu.dot_dimension_numbers<[1], [0], [0], [1], [0, 0, 1, 1], [], []>} : vector<32x64xf32>, vector<64x128xf32>, vector<32x128xf32> -> vector<32x128xf32>
    %32 = vector.broadcast %8 : vector<32x1xf32> to vector<32x128xf32>
    %33 = arith.addf %31, %32 : vector<32x128xf32>
    %cst_24 = arith.constant 0.000000e+00 : f32
    %34 = vector.broadcast %cst_24 : f32 to vector<32x128xf32>
    %35 = arith.maximumf %33, %34 : vector<32x128xf32>
    %c96 = arith.constant 96 : index
    %c0_25 = arith.constant 0 : index
    %36 = vector.load %arg7[%c96, %c0_25] : memref<128x128xf32, #tpu.memory_space<vmem>>, vector<32x128xf32>
    tpu.vector_store %arg7[%c96, %c0_25], %35 {strides = array<i32>} : memref<128x128xf32, #tpu.memory_space<vmem>>, vector<32x128xf32>,
    %c0_26 = arith.constant 0 : index
    %c0_27 = arith.constant 0 : index
    %37 = vector.load %arg7[%c0_26, %c0_27] : memref<128x128xf32, #tpu.memory_space<vmem>>, vector<128x128xf32>
    %38 = tpu.transpose %37, [1, 0] : vector<128x128xf32> -> vector<128x128xf32>
    %c0_28 = arith.constant 0 : index
    %c0_29 = arith.constant 0 : index
    %39 = vector.load %arg5[%c0_28, %c0_29] : memref<128x128xf32, #tpu.memory_space<vmem>>, vector<128x128xf32>
    tpu.vector_store %arg5[%c0_28, %c0_29], %38 {strides = array<i32>} : memref<128x128xf32, #tpu.memory_space<vmem>>, vector<128x128xf32>,
    return
  }
  func.func @transform_0(%arg0: i32) -> (i32, i32) {
    %c0_i32 = arith.constant 0 : i32
    %c0_i32_0 = arith.constant 0 : i32
    return %c0_i32, %arg0 : i32, i32
  }
  func.func @transform_1(%arg0: i32) -> (i32, i32) {
    %c0_i32 = arith.constant 0 : i32
    %c0_i32_0 = arith.constant 0 : i32
    %c0_i32_1 = arith.constant 0 : i32
    return %c0_i32, %c0_i32_0 : i32, i32
  }
  func.func @transform_2(%arg0: i32) -> (i32, i32) {
    %c0_i32 = arith.constant 0 : i32
    %c0_i32_0 = arith.constant 0 : i32
    %c0_i32_1 = arith.constant 0 : i32
    return %c0_i32, %c0_i32_0 : i32, i32
  }
  func.func @transform_3(%arg0: i32) -> (i32, i32) {
    %c0_i32 = arith.constant 0 : i32
    %c0_i32_0 = arith.constant 0 : i32
    %c0_i32_1 = arith.constant 0 : i32
    return %c0_i32, %c0_i32_0 : i32, i32
  }
  func.func @transform_4(%arg0: i32) -> (i32, i32) {
    %c0_i32 = arith.constant 0 : i32
    %c0_i32_0 = arith.constant 0 : i32
    return %arg0, %c0_i32 : i32, i32
  }
}

</mosaic_0001>

<bundles_post_ra>
// kernel: tpu_custom_call.1
= control target key start
LH: loop header
LB: loop body
LE: loop exit
PB: predicated region body
PF: predicated region fallthrough
CT: control target
= control target key end

     0   :  { %v68_v2 = vlaneseq  ;;  %v4546_v3 = vmov 0   ;;  %s8625_s0 = inlined_call_operand.vmem [shape: f32[1,512], index: 0, kind: input, shape index: {}]   ;;  %s8626_s1 = inlined_call_operand.vmem [shape: f32[32,64], index: 1, kind: input, shape index: {}]   ;;  %s8627_s2 = inlined_call_operand.vmem [shape: f32[32,1], index: 2, kind: input, shape index: {}]   ;;  %s8628_s3 = inlined_call_operand.vmem [shape: f32[64,1], index: 3, kind: input, shape index: {}]   ;;  %s8629_s4 = inlined_call_operand.hbm [shape: f32[128,128], index: 4, kind: output, shape index: {}]  }
   0x1   :  { %v26_v0 = vld [vmem:[%s8628_s3 + $0x38] sm:$0xff]  ;;  %v24_v1 = vld [vmem:[%s8628_s3 + $0x28] sm:$0xff]  ;;  %4392 = vset.pattern.permute.xlu1 %v4546_v3  ;;  %4391 = vset.pattern.permute.xlu0 %v4546_v3  ;;  %v25_v5 = vld [vmem:[%s8628_s3 + $0x30] sm:$0xff] }
   0x2   :  { %64 = vperm.xlu0 %4391, %v26_v0   ;;  %54 = vperm.xlu1 %4392, %v24_v1   ;;  %v69_v4 = vshrl.u32 %v68_v2, 7  ;;  %v23_v6 = vld [vmem:[%s8628_s3 + $0x20] sm:$0xff] }
   0x3   :  { %v18_v9 = vld [vmem:[%s8625_s0] sm:$0xf] }
   0x4   :  { %v78_v7 = vsub.s32 2, %v69_v4  ;;  %v82_v8 = vsub.s32 3, %v69_v4 }
   0x5   :  { %9 = vsyncpa [#allocation5], 0  ;;  %v22_v11 = vld [vmem:[%s8628_s3 + $0x18] sm:$0xff]  ;;  %v21_v12 = vld [vmem:[%s8628_s3 + $0x10] sm:$0xff]  ;;  %v70_v27 = vsub.s32 0, %v69_v4  ;;  %v74_v31 = vsub.s32 1, %v69_v4 }
   0x6   :  { %59 = vperm.xlu0 %4391, %v25_v5   ;;  %49 = vperm.xlu1 %4392, %v23_v6   ;;  %v4596_v10 = vrot.slane %v18_v9, %v78_v7  ;;  %v4604_v13 = vrot.slane %v18_v9, %v82_v8  ;;  %v20_v14 = vld [vmem:[%s8628_s3 + $0x8] sm:$0xff]  ;;  %v19_v15 = vld [vmem:[%s8628_s3] sm:$0xff]  ;;  %v3454_v18 = vld [vmem:[%s8627_s2 + $0x10] sm:$0xff] }
   0x7   :  { %v3452_v16 = vld [vmem:[%s8627_s2] sm:$0xff]  ;;  %v3453_v17 = vld [vmem:[%s8627_s2 + $0x8] sm:$0xff]  ;;  %v3455_v19 = vld [vmem:[%s8627_s2 + $0x18] sm:$0xff]  ;;  %v4648_v34 = vrot.slane %v18_v9, %v70_v27  ;;  %v4650_v35 = vrot.slane %v18_v9, %v74_v31 }
   0xa   :  { %44 = vperm.xlu0 %4391, %v22_v11   ;;  %39 = vperm.xlu1 %4392, %v21_v12  }
   0xe   :  { %34 = vperm.xlu0 %4391, %v20_v14   ;;  %29 = vperm.xlu1 %4392, %v19_v15  }
  0x12   :  { %3466 = vperm.xlu0 %4391, %v3452_v16   ;;  %3471 = vperm.xlu1 %4392, %v3453_v17  }
  0x16   :  { %3476 = vperm.xlu0 %4391, %v3454_v18   ;;  %3481 = vperm.xlu1 %4392, %v3455_v19  }
  0x7d   :  { %v65_v20 = vpop.permute.xlu0 %64  ;;  %v55_v21 = vpop.permute.xlu1 %54 }
  0x7e   :  { %v4625_v22 = vmul.f32 %v4596_v10, %v65_v20  ;;  %v4628_v23 = vmul.f32 %v4604_v13, %v65_v20  ;;  %v4631_v24 = vmul.f32 %v4596_v10, %v55_v21  ;;  %v4634_v25 = vmul.f32 %v4604_v13, %v55_v21 }
  0x7f   :  { %v4653_v36 = vmul.f32 %v4648_v34, %v65_v20  ;;  %v4656_v37 = vmul.f32 %v4650_v35, %v65_v20  ;;  %v4662_v41 = vmul.f32 %v4648_v34, %v55_v21  ;;  %v4668_v44 = vmul.f32 %v4650_v35, %v55_v21 }
  0x80   :  { %8720 = vst [vmem:[#allocation7_spill] sm:$0xff] %v4625_v22  ;;  %8721 = vst [vmem:[#allocation8_spill] sm:$0xff] %v4628_v23  ;;  %v3213_v40 = vand.u32 2139095040, %v4625_v22  ;;  %v3316_v43 = vand.u32 2139095040, %v4628_v23  ;;  %v2389_v55 = vand.u32 2139095040, %v4631_v24  ;;  %v2492_v56 = vand.u32 2139095040, %v4634_v25 }
  0x81   :  { %8722 = vst [vmem:[#allocation9_spill] sm:$0xff] %v4631_v24  ;;  %8723 = vst [vmem:[#allocation10_spill] sm:$0xff] %v4634_v25  ;;  %v60_v26 = vpop.permute.xlu0 %59  ;;  %v50_v30 = vpop.permute.xlu1 %49  ;;  %v3007_v38 = vand.u32 2139095040, %v4653_v36  ;;  %v3110_v39 = vand.u32 2139095040, %v4656_v37  ;;  %v2183_v49 = vand.u32 2139095040, %v4662_v41  ;;  %v2286_v52 = vand.u32 2139095040, %v4668_v44 }
  0x82   :  { %v4637_v28 = vmul.f32 %v4596_v10, %v60_v26  ;;  %v4640_v29 = vmul.f32 %v4604_v13, %v60_v26  ;;  %v4643_v32 = vmul.f32 %v4596_v10, %v50_v30  ;;  %v4646_v33 = vmul.f32 %v4604_v13, %v50_v30 }
  0x83   :  { %v3008_v45 = vshrl.u32 %v3007_v38, 23  ;;  %v3111_v46 = vshrl.u32 %v3110_v39, 23  ;;  %v3214_v48 = vshrl.u32 %v3213_v40, 23  ;;  %v3317_v51 = vshrl.u32 %v3316_v43, 23 }
  0x84   :  { %8724 = vst [vmem:[#allocation11_spill] sm:$0xff] %v4637_v28  ;;  %8725 = vst [vmem:[#allocation12_spill] sm:$0xff] %v4640_v29  ;;  %v2184_v59 = vshrl.u32 %v2183_v49, 23  ;;  %v2287_v61 = vshrl.u32 %v2286_v52, 23  ;;  %v4685_v62 = vmul.f32 %v4648_v34, %v60_v26  ;;  %v4688_v0 = vmul.f32 %v4650_v35, %v60_v26 }
  0x85   :  { %8726 = vst [vmem:[#allocation13_spill] sm:$0xff] %v4643_v32  ;;  %8727 = vst [vmem:[#allocation14_spill] sm:$0xff] %v4646_v33  ;;  %v4664_v42 = vpop.permute.xlu0 %44  ;;  %v4085_v53 = vadd.s32 4294967169, %v3008_v45  ;;  %v4089_v54 = vadd.s32 4294967169, %v3111_v46  ;;  %v4682_v57 = vpop.permute.xlu1 %39  ;;  %v4093_v58 = vadd.s32 4294967169, %v3214_v48  ;;  %v4097_v60 = vadd.s32 4294967169, %v3317_v51 }
  0x86   :  { %v4672_v47 = vmul.f32 %v4596_v10, %v4664_v42  ;;  %v4677_v50 = vmul.f32 %v4604_v13, %v4664_v42  ;;  %v4692_v1 = vmul.f32 %v4596_v10, %v4682_v57  ;;  %v4696_v2 = vmul.f32 %v4604_v13, %v4682_v57 }
  0x87   :  { %v3014_v63 = vadd.s32 1, %v4085_v53  ;;  %v3117_v3 = vadd.s32 1, %v4089_v54  ;;  %v2390_v4 = vshrl.u32 %v2389_v55, 23  ;;  %v2493_v5 = vshrl.u32 %v2492_v56, 23 }
  0x88   :  { %8728 = vst [vmem:[#allocation15_spill] sm:$0xff] %v4672_v47  ;;  %8729 = vst [vmem:[#allocation16_spill] sm:$0xff] %v4677_v50  ;;  %v3220_v6 = vadd.s32 1, %v4093_v58  ;;  %v4053_v7 = vadd.s32 4294967169, %v2184_v59  ;;  %v3323_v8 = vadd.s32 1, %v4097_v60  ;;  %v2595_v9 = vand.u32 2139095040, %v4685_v62 }
  0x89   :  { %8730 = vst [vmem:[#allocation17_spill] sm:$0xff] %v4692_v1  ;;  %8731 = vst [vmem:[#allocation18_spill] sm:$0xff] %v4696_v2  ;;  %vm3015_vm0 = vcmp.gt.s32.totalorder %v3014_v63, 0  ;;  %v4057_v11 = vadd.s32 4294967169, %v2287_v61  ;;  %v2698_v12 = vand.u32 2139095040, %v4688_v0  ;;  %v4701_v14 = vmul.f32 %v4648_v34, %v50_v30  ;;  %v4713_v53 = vpop.permute.xlu0 %34 }
  0x8a   :  { %vm3118_vm1 = vcmp.gt.s32.totalorder %v3117_v3, 0  ;;  %v4061_v15 = vadd.s32 4294967169, %v2390_v4  ;;  %v4065_v16 = vadd.s32 4294967169, %v2493_v5  ;;  %v2801_v17 = vand.u32 2139095040, %v4637_v28 }
  0x8b   :  { %8732 = vst [vmem:[#allocation19_spill] sm:$0xff] %v4701_v14  ;;  %vm3221_vm2 = vcmp.gt.s32.totalorder %v3220_v6, 0  ;;  %v2190_v18 = vadd.s32 1, %v4053_v7  ;;  %v2904_v19 = vand.u32 2139095040, %v4640_v29  ;;  %v3016_v20 = vsel %vm3015_vm0, %v3014_v63, 0 }
  0x8c   :  { %vm3324_vm3 = vcmp.gt.s32.totalorder %v3323_v8, 0  ;;  %v2596_v21 = vshrl.u32 %v2595_v9, 23  ;;  %v4706_v26 = vmul.f32 %v4650_v35, %v50_v30  ;;  %v3119_v27 = vsel %vm3118_vm1, %v3117_v3, 0 }
  0x8d   :  { %v2293_v31 = vadd.s32 1, %v4057_v11  ;;  %v2699_v38 = vshrl.u32 %v2698_v12, 23  ;;  %v1771_v39 = vand.u32 2139095040, %v4701_v14  ;;  %v3222_v40 = vsel %vm3221_vm2, %v3220_v6, 0 }
  0x8e   :  { %8733 = vst [vmem:[#allocation20_spill] sm:$0xff] %v4706_v26  ;;  %v2396_v43 = vadd.s32 1, %v4061_v15  ;;  %v2499_v45 = vadd.s32 1, %v4065_v16  ;;  %v2802_v46 = vshrl.u32 %v2801_v17, 23  ;;  %v4709_v48 = vshrl.u32 %v3016_v20, 5 }
  0x8f   :  { %v4711_v49 = vand.u32 31, %v3016_v20  ;;  %v3325_v51 = vsel %vm3324_vm3, %v3323_v8, 0  ;;  %v2905_v52 = vshrl.u32 %v2904_v19, 23  ;;  %v4715_v54 = vshrl.u32 %v3119_v27, 5 }
  0x90   :  { %v4717_v30 = vand.u32 31, %v3119_v27  ;;  %v4069_v55 = vadd.s32 4294967169, %v2596_v21  ;;  %v1874_v56 = vand.u32 2139095040, %v4706_v26  ;;  %v4720_v58 = vshrl.u32 %v3222_v40, 5 }
  0x91   :  { %v4722_v59 = vand.u32 31, %v3222_v40  ;;  %v4073_v60 = vadd.s32 4294967169, %v2699_v38  ;;  %v1772_v61 = vshrl.u32 %v1771_v39, 23  ;;  %v4724_v63 = vand.u32 31, %v3325_v51  ;;  %v4750_v38 = vpop.permute.xlu1 %29 }
  0x92   :  { %8734 = vst [vmem:[#allocation21_spill] sm:$0xff] %v4720_v58  ;;  %v4077_v3 = vadd.s32 4294967169, %v2802_v46  ;;  %v4728_v4 = vmul.f32 %v4596_v10, %v4713_v53  ;;  %v4732_v5 = vmul.f32 %v4604_v13, %v4713_v53  ;;  %v4735_v6 = vsub.s32 32, %v4711_v49  ;;  %8742 = vst [vmem:[#allocation29_spill] sm:$0xff] %v4750_v38 }
  0x93   :  { %8735 = vst [vmem:[#allocation22_spill] sm:$0xff] %v4722_v59  ;;  %8736 = vst [vmem:[#allocation23_spill] sm:$0xff] %v4724_v63  ;;  %v4737_v7 = vshrl.u32 %v3325_v51, 5  ;;  %vm2191_vm4 = vcmp.gt.s32.totalorder %v2190_v18, 0  ;;  %v4081_v8 = vadd.s32 4294967169, %v2905_v52  ;;  %vm2294_vm5 = vcmp.gt.s32.totalorder %v2293_v31, 0 }
  0x94   :  { %8737 = vst [vmem:[#allocation24_spill] sm:$0xff] %v4728_v4  ;;  %8738 = vst [vmem:[#allocation25_spill] sm:$0xff] %v4732_v5  ;;  %v2602_v9 = vadd.s32 1, %v4069_v55  ;;  %v1875_v11 = vshrl.u32 %v1874_v56, 23  ;;  %v1977_v12 = vand.u32 2139095040, %v4643_v32  ;;  %v4741_v15 = vsub.s32 32, %v4717_v30 }
  0x95   :  { %8739 = vst [vmem:[#allocation26_spill] sm:$0xff] %v4737_v7  ;;  %vm2397_vm6 = vcmp.gt.s32.totalorder %v2396_v43, 0  ;;  %v2705_v16 = vadd.s32 1, %v4073_v60  ;;  %v4037_v17 = vadd.s32 4294967169, %v1772_v61  ;;  %v4744_v19 = vsub.s32 32, %v4722_v59 }
  0x96   :  { %v4747_v20 = vsub.s32 32, %v4724_v63  ;;  %v2808_v21 = vadd.s32 1, %v4077_v3  ;;  %v2080_v27 = vand.u32 2139095040, %v4646_v33  ;;  %v2192_v39 = vsel %vm2191_vm4, %v2190_v18, 0 }
  0x97   :  { %8740 = vst [vmem:[#allocation27_spill] sm:$0xff] %v4744_v19  ;;  %v2295_v40 = vsel %vm2294_vm5, %v2293_v31, 0  ;;  %vm2500_vm7 = vcmp.gt.s32.totalorder %v2499_v45, 0  ;;  %v2911_v46 = vadd.s32 1, %v4081_v8  ;;  %v2398_v51 = vsel %vm2397_vm6, %v2396_v43, 0 }
  0x98   :  { %8741 = vst [vmem:[#allocation28_spill] sm:$0xff] %v4747_v20  ;;  %vm2603_vm8 = vcmp.gt.s32.totalorder %v2602_v9, 0  ;;  %v4041_v52 = vadd.s32 4294967169, %v1875_v11  ;;  %v1978_v55 = vshrl.u32 %v1977_v12, 23  ;;  %vm2706_vm9 = vcmp.gt.s32.totalorder %v2705_v16, 0 }
  0x99   :  { %v1778_v56 = vadd.s32 1, %v4037_v17  ;;  %v4754_v60 = vmul.f32 %v4596_v10, %v4750_v38  ;;  %v4758_v61 = vmul.f32 %v4604_v13, %v4750_v38  ;;  %v4760_v3 = vshrl.u32 %v2192_v39, 5 }
  0x9a   :  { %v2501_v18 = vsel %vm2500_vm7, %v2499_v45, 0  ;;  %vm2809_vm10 = vcmp.gt.s32.totalorder %v2808_v21, 0  ;;  %v2081_v31 = vshrl.u32 %v2080_v27, 23  ;;  %v4762_v8 = vand.u32 31, %v2192_v39 }
  0x9b   :  { %8743 = vst [vmem:[#allocation30_spill] sm:$0xff] %v4754_v60  ;;  %8744 = vst [vmem:[#allocation31_spill] sm:$0xff] %v4758_v61  ;;  %v4764_v43 = vshrl.u32 %v2295_v40, 5  ;;  %v4766_v11 = vand.u32 31, %v2295_v40  ;;  %vm2912_vm11 = vcmp.gt.s32.totalorder %v2911_v46, 0  ;;  %v4768_v12 = vand.u32 31, %v2398_v51 }
  0x9c   :  { %v2604_v10 = vsel %vm2603_vm8, %v2602_v9, 0  ;;  %v2707_v17 = vsel %vm2706_vm9, %v2705_v16, 0  ;;  %v1881_v60 = vadd.s32 1, %v4041_v52  ;;  %v4771_v13 = vand.u32 31, %v2501_v18 }
  0x9d   :  { %8745 = vst [vmem:[#allocation32_spill] sm:$0xff] %v4768_v12  ;;  %v2810_v61 = vsel %vm2809_vm10, %v2808_v21, 0  ;;  %vm1779_vm12 = vcmp.gt.s32.totalorder %v1778_v56, 0  ;;  %v4045_v45 = vadd.s32 4294967169, %v1978_v55  ;;  %v2913_v33 = vsel %vm2912_vm11, %v2911_v46, 0 }
  0x9e   :  { %8746 = vst [vmem:[#allocation33_spill] sm:$0xff] %v4771_v13  ;;  %v4049_v27 = vadd.s32 4294967169, %v2081_v31  ;;  %v4775_v39 = vmul.f32 %v4648_v34, %v4664_v42  ;;  %v4779_v40 = vmul.f32 %v4650_v35, %v4664_v42  ;;  %v4782_v32 = vsub.s32 32, %v4762_v8 }
  0x9f   :  { %v4785_v9 = vsub.s32 32, %v4766_v11  ;;  %v4787_v16 = vand.u32 31, %v2604_v10  ;;  %v4789_v21 = vand.u32 31, %v2707_v17  ;;  %v4791_v46 = vshrl.u32 %v2398_v51, 5 }
  0xa0   :  { %8747 = vst [vmem:[#allocation34_spill] sm:$0xff] %v4775_v39  ;;  %8748 = vst [vmem:[#allocation35_spill] sm:$0xff] %v4779_v40  ;;  %v4794_v52 = vsub.s32 32, %v4768_v12  ;;  %v4796_v55 = vshrl.u32 %v2501_v18, 5  ;;  %vm1882_vm13 = vcmp.gt.s32.totalorder %v1881_v60, 0  ;;  %v4798_v42 = vand.u32 31, %v2810_v61 }
  0xa1   :  { %8749 = vst [vmem:[#allocation36_spill] sm:$0xff] %v4791_v46  ;;  %v4800_v31 = vand.u32 31, %v2913_v33  ;;  %v1780_v5 = vsel %vm1779_vm12, %v1778_v56, 0  ;;  %v1984_v4 = vadd.s32 1, %v4045_v45  ;;  %v4804_v25 = vsub.s32 32, %v4771_v13 }
  0xa2   :  { %8750 = vst [vmem:[#allocation37_spill] sm:$0xff] %v4794_v52  ;;  %8751 = vst [vmem:[#allocation38_spill] sm:$0xff] %v4796_v55  ;;  %v2087_v24 = vadd.s32 1, %v4049_v27  ;;  %v1359_v51 = vand.u32 2139095040, %v4775_v39  ;;  %v1462_v46 = vand.u32 2139095040, %v4779_v40  ;;  %v4808_v12 = vshrl.u32 %v2604_v10, 5 }
  0xa3   :  { %8752 = vst [vmem:[#allocation39_spill] sm:$0xff] %v4798_v42  ;;  %8753 = vst [vmem:[#allocation40_spill] sm:$0xff] %v4800_v31  ;;  %v4811_v18 = vsub.s32 32, %v4787_v16  ;;  %v4813_v55 = vshrl.u32 %v2707_v17, 5  ;;  %v4816_v52 = vsub.s32 32, %v4789_v21  ;;  %v4818_v56 = vshrl.u32 %v2810_v61, 5 }
  0xa4   :  { %8754 = vst [vmem:[#allocation41_spill] sm:$0xff] %v4804_v25  ;;  %v4820_v45 = vshrl.u32 %v2913_v33, 5  ;;  %v4822_v25 = vand.u32 31, %v1780_v5  ;;  %v1883_v27 = vsel %vm1882_vm13, %v1881_v60, 0  ;;  %v4826_v13 = vsub.s32 32, %v4798_v42 }
  0xa5   :  { %8755 = vst [vmem:[#allocation42_spill] sm:$0xff] %v4818_v56  ;;  %v4829_v10 = vsub.s32 32, %v4800_v31  ;;  %vm1985_vm14 = vcmp.gt.s32.totalorder %v1984_v4, 0  ;;  %vm2088_vm15 = vcmp.gt.s32.totalorder %v2087_v24, 0  ;;  %v1360_v29 = vshrl.u32 %v1359_v51, 23 }
  0xa6   :  { %8756 = vst [vmem:[#allocation43_spill] sm:$0xff] %v4820_v45  ;;  %8757 = vst [vmem:[#allocation44_spill] sm:$0xff] %v4822_v25  ;;  %v1463_v28 = vshrl.u32 %v1462_v46, 23  ;;  %v4834_v33 = vmul.f32 %v4648_v34, %v4682_v57  ;;  %v4836_v61 = vshrl.u32 %v1780_v5, 5  ;;  %v4838_v45 = vshrl.u32 %v1883_v27, 5 }
  0xa7   :  { %8758 = vst [vmem:[#allocation45_spill] sm:$0xff] %v4826_v13  ;;  %8759 = vst [vmem:[#allocation46_spill] sm:$0xff] %v4829_v10  ;;  %v8662_v60 = vmov 2475754826   ;;  %v8665_v31 = vmov 2131351028   ;;  %v4853_v5 = vmul.f32 %v4650_v35, %v4682_v57 }
  0xa8   :  { %8760 = vst [vmem:[#allocation47_spill] sm:$0xff] %v4834_v33  ;;  %8761 = vst [vmem:[#allocation48_spill] sm:$0xff] %v4836_v61  ;;  %v3022_v56 = vshrl.u32 %v8662_v60, %v4735_v6  ;;  %v3025_v10 = vshrl.u32 %v8665_v31, %v4735_v6  ;;  %v4845_v17 = vsub.s32 32, %v4822_v25  ;;  %v4847_v46 = vand.u32 31, %v1883_v27 }
  0xa9   :  { %8762 = vst [vmem:[#allocation49_spill] sm:$0xff] %v4838_v45  ;;  %v4849_v51 = vsel %vm1985_vm14, %v1984_v4, 0  ;;  %8764 = vst [vmem:[#allocation51_spill] sm:$0xff] %v4853_v5  ;;  %v4855_v42 = vsel %vm2088_vm15, %v2087_v24, 0  ;;  %v8766_v13 = vand.u32 2147483647, %v4653_v36 }
  0xaa   :  { %8763 = vst [vmem:[#allocation50_spill] sm:$0xff] %v4845_v17  ;;  %8765 = vst [vmem:[#allocation52_spill] sm:$0xff] %v4855_v42  ;;  %v8677_v7 = vmov 683565275   ;;  %v8767_v20 = vmov 2475754826  }
  0xab   :  { %v3011_v60 = vand.u32 8388607, %v8766_v13  ;;  %v3021_v31 = vshll.u32 %v8677_v7, %v4711_v49  ;;  %v3024_v63 = vshll.u32 %v8767_v20, %v4711_v49  ;;  %v4021_v27 = vadd.s32 4294967169, %v1360_v29 }
  0xac   :  { %v4025_v23 = vadd.s32 4294967169, %v1463_v28  ;;  %v947_v2 = vand.u32 2139095040, %v4834_v33  ;;  %v8768_v24 = vmov 2131351028   ;;  %v8686_v59 = vmov 2102212464  }
  0xad   :  { %v3023_v57 = vor.u32 %v3022_v56, %v3021_v31  ;;  %v3026_v1 = vor.u32 %v3025_v10, %v3024_v63  ;;  %v3027_v58 = vshll.u32 %v8768_v24, %v4711_v49  ;;  %v3028_v13 = vshrl.u32 %v8686_v59, %v4735_v6 }
  0xae   :  { %v1050_v7 = vand.u32 2139095040, %v4853_v5  ;;  %v8769_v19 = vmov 683565275   ;;  %v3030_v28 = vshll.u32 %v8686_v59, %v4711_v49  ;;  %v8696_v29 = vmov 920167782  }
  0xaf   :  { %v3020_v22 = vshrl.u32 %v8769_v19, %v4735_v6  ;;  %v3031_v31 = vshrl.u32 %v8696_v29, %v4735_v6  ;;  %v3012_v63 = vor.u32 8388608, %v3011_v60  ;;  %v3029_v56 = vor.u32 %v3028_v13, %v3027_v58 }
  0xb0   :  { %v3033_v10 = vshll.u32 %v8696_v29, %v4711_v49  ;;  %v8694_v4 = vmov 1326507024   ;;  %vm3036_vm0 = vcmp.lt.s32.totalorder %v4709_v48, 1  ;;  %vm3038_vm1 = vcmp.lt.s32.totalorder %v4709_v48, 3 }
  0xb1   :  { %v3034_v33 = vshrl.u32 %v8694_v4, %v4735_v6  ;;  %v3032_v5 = vor.u32 %v3031_v31, %v3030_v28  ;;  %vm3039_vm2 = vcmp.lt.s32.totalorder %v4709_v48, 4  ;;  %v3040_v40 = vsel %vm3036_vm0, %v3020_v22, %v3023_v57 }
  0xb2   :  { %v3041_v39 = vsel %vm3039_vm2, %v3029_v56, 2102212464  ;;  %v3044_v38 = vsel %vm3036_vm0, %v3023_v57, %v3026_v1  ;;  %v4883_v60 = vadd.s32 1, %v4021_v27  ;;  %v3048_v13 = vsel %vm3036_vm0, %v3026_v1, %v3029_v56 }
  0xb3   :  { %v3035_v59 = vor.u32 %v3034_v33, %v3033_v10  ;;  %v3042_v49 = vsel %vm3038_vm1, %v3026_v1, %v3041_v39  ;;  %v3045_v58 = vsel %vm3039_vm2, %v3032_v5, 920167782  ;;  %vm3037_vm3 = vcmp.lt.s32.totalorder %v4709_v48, 2 }
  0xb4   :  { %v3046_v6 = vsel %vm3038_vm1, %v3029_v56, %v3045_v58  ;;  %v3052_v31 = vshll.u32 %v3012_v63, 8  ;;  %v3043_v4 = vsel %vm3037_vm3, %v3040_v40, %v3042_v49  ;;  %v8701_v33 = vand.u32 2147483647, %v4656_v37 }
  0xb5   :  { %v3049_v28 = vsel %vm3039_vm2, %v3035_v59, 1326507024  ;;  %v3047_v29 = vsel %vm3037_vm3, %v3044_v38, %v3046_v6  ;;  %v1469_v27 = vadd.s32 1, %v4025_v23  ;;  %v4897_v1 = vshrl.u32 %v947_v2, 23 }
  0xb6   :  { %v3050_v22 = vsel %vm3038_vm1, %v3032_v5, %v3049_v28  ;;  %v4893_v10 = vmul.u32.u64.low %v3052_v31, %v3047_v29  ;;  %v4894_v39 = vmul.u32.u64.high %v3052_v31, %v3047_v29, %v4893_v10  ;;  %v3114_v59 = vand.u32 8388607, %v8701_v33 }
  0xb7   :  { %v3051_v57 = vsel %vm3037_vm3, %v3048_v13, %v3050_v22  ;;  %v1051_v38 = vshrl.u32 %v1050_v7, 23  ;;  %v3059_v40 = vmul.u32 %v3052_v31, %v3043_v4  ;;  %v3124_v48 = vshll.u32 %v8769_v19, %v4717_v30 }
  0xb8   :  { %v4899_v45 = vmul.u32.u64.low %v3052_v31, %v3051_v57  ;;  %v4900_v26 = vmul.u32.u64.high %v3052_v31, %v3051_v57, %v4899_v45  ;;  %v3125_v23 = vshrl.u32 %v8767_v20, %v4741_v15  ;;  %vm1367_vm4 = vcmp.gt.s32.totalorder %v4883_v60, 0 }
  0xb9   :  { %v3127_v2 = vshll.u32 %v8767_v20, %v4717_v30  ;;  %v3128_v5 = vshrl.u32 %v8768_v24, %v4741_v15  ;;  %v3130_v45 = vshll.u32 %v8768_v24, %v4717_v30  ;;  %v8770_v7 = vmov 2102212464  }
  0xba   :  { %v3131_v4 = vshrl.u32 %v8770_v7, %v4741_v15  ;;  %v3062_v29 = vadd.s32 1, %v4894_v39  ;;  %v3126_v63 = vor.u32 %v3125_v23, %v3124_v48  ;;  %v3133_v56 = vshll.u32 %v8770_v7, %v4717_v30 }
  0xbb   :  { %v8771_v49 = vmov 920167782   ;;  %vm3061_vm5 = vc.u32 %v4900_v26, %v4893_v10  ;;  %v3115_v13 = vor.u32 8388608, %v3114_v59  ;;  %v3129_v6 = vor.u32 %v3128_v5, %v3127_v2 }
  0xbc   :  { %v3134_v58 = vshrl.u32 %v8771_v49, %v4741_v15  ;;  %v3132_v28 = vor.u32 %v3131_v4, %v3130_v45  ;;  %v3063_v31 = vsel %vm3061_vm5, %v3062_v29, %v4894_v39  ;;  %v3136_v57 = vshll.u32 %v8771_v49, %v4717_v30 }
  0xbd   :  { %v8772_v48 = vmov 1326507024   ;;  %vm1470_vm6 = vcmp.gt.s32.totalorder %v1469_v27, 0  ;;  %v3064_v33 = vadd.s32 %v3063_v31, %v3059_v40  ;;  %v3123_v61 = vshrl.u32 %v8769_v19, %v4741_v15 }
  0xbe   :  { %v3135_v22 = vor.u32 %v3134_v58, %v3133_v56  ;;  %v3137_v23 = vshrl.u32 %v8772_v48, %v4741_v15  ;;  %vm3139_vm7 = vcmp.lt.s32.totalorder %v4715_v54, 1  ;;  %vm3141_vm8 = vcmp.lt.s32.totalorder %v4715_v54, 3 }
  0xbf   :  { %vm3142_vm9 = vcmp.lt.s32.totalorder %v4715_v54, 4  ;;  %v3147_v39 = vsel %vm3139_vm7, %v3126_v63, %v3129_v6  ;;  %v3065_v59 = vadd.s32 536870912, %v3064_v33  ;;  %v3151_v30 = vsel %vm3139_vm7, %v3129_v6, %v3132_v28 }
  0xc0   :  { %v3138_v25 = vor.u32 %v3137_v23, %v3136_v57  ;;  %v3144_v2 = vsel %vm3142_vm9, %v3132_v28, 2102212464  ;;  %v3148_v5 = vsel %vm3142_vm9, %v3135_v22, 920167782  ;;  %vm3140_vm10 = vcmp.lt.s32.totalorder %v4715_v54, 2 }
  0xc1   :  { %v3149_v45 = vsel %vm3141_vm8, %v3132_v28, %v3148_v5  ;;  %v3155_v40 = vshll.u32 %v3115_v13, 8  ;;  %v3066_v29 = vshrl.u32 %v3065_v59, 30  ;;  %v3143_v56 = vsel %vm3139_vm7, %v3123_v61, %v3126_v63 }
  0xc2   :  { %v3152_v4 = vsel %vm3142_vm9, %v3138_v25, 1326507024  ;;  %v3150_v15 = vsel %vm3140_vm10, %v3147_v39, %v3149_v45  ;;  %v3145_v31 = vsel %vm3141_vm8, %v3129_v6, %v3144_v2  ;;  %v4944_v14 = vsub.s32 32, %v4847_v46 }
  0xc3   :  { %v3153_v58 = vsel %vm3141_vm8, %v3135_v22, %v3152_v4  ;;  %v4939_v23 = vmul.u32.u64.low %v3155_v40, %v3150_v15  ;;  %v4940_v17 = vmul.u32.u64.high %v3155_v40, %v3150_v15, %v4939_v23  ;;  %v3067_v28 = vshll.u32 %v3066_v29, 30 }
  0xc4   :  { %v3154_v57 = vsel %vm3140_vm10, %v3151_v30, %v3153_v58  ;;  %v4950_v61 = vshrl.u32 %v4849_v51, 5  ;;  %v4953_v63 = vand.u32 31, %v4849_v51  ;;  %v4956_v6 = vand.u32 31, %v4855_v42 }
  0xc5   :  { %v4946_v25 = vmul.u32.u64.low %v3155_v40, %v3154_v57  ;;  %v4947_v13 = vmul.u32.u64.high %v3155_v40, %v3154_v57, %v4946_v25  ;;  %v1368_v22 = vsel %vm1367_vm4, %v4883_v60, 0  ;;  %v1471_v39 = vsel %vm1470_vm6, %v1469_v27, 0 }
  0xc6   :  { %8773 = vst [vmem:[#allocation53_spill] sm:$0xff] %v4950_v61  ;;  %8774 = vst [vmem:[#allocation54_spill] sm:$0xff] %v4953_v63  ;;  %v4963_v2 = vsub.s32 %v3064_v33, %v3067_v28  ;;  %v3146_v5 = vsel %vm3140_vm10, %v3143_v56, %v3145_v31  ;;  %v8776_v30 = vand.u32 2139095040, %v4672_v47  ;;  %v4972_v45 = vadd.s32 4294967169, %v4897_v1 }
  0xc7   :  { %8775 = vst [vmem:[#allocation55_spill] sm:$0xff] %v4956_v6  ;;  %v4974_v4 = vadd.s32 4294967169, %v1051_v38  ;;  %v3165_v60 = vadd.s32 1, %v4940_v17  ;;  %v4977_v15 = vshrl.u32 %v1368_v22, 5  ;;  %vm3164_vm11 = vc.u32 %v4947_v13, %v4939_v23 }
  0xc8   :  { %v4969_v51 = vshrl.u32 %v8776_v30, 23  ;;  %v3070_v27 = vsub.s32 0, %v4963_v2  ;;  %v8708_v54 = vand.u32 2147483647, %v4685_v62  ;;  %v4983_v33 = vand.u32 31, %v1368_v22 }
  0xc9   :  { %v4985_v56 = vshrl.u32 %v1471_v39, 5  ;;  %v3162_v58 = vmul.u32 %v3155_v40, %v3146_v5  ;;  %v3166_v1 = vsel %vm3164_vm11, %v3165_v60, %v4940_v17  ;;  %v4988_v38 = vand.u32 31, %v1471_v39 }
  0xca   :  { %8777 = vst [vmem:[#allocation56_spill] sm:$0xff] %v4969_v51  ;;  %vm3006_vm12 = vcmp.lt.s32.totalorder %v4653_v36, 0  ;;  %v4086_v31 = vmin.u32 %v3070_v27, %v4963_v2  ;;  %v2610_v57 = vshrl.u32 %v8767_v20, %v4811_v18  ;;  %v3090_v28 = vsub.s32 4, %v3066_v29 }
  0xcb   :  { %8778 = vst [vmem:[#allocation57_spill] sm:$0xff] %v4985_v56  ;;  %v3167_v25 = vadd.s32 %v3166_v1, %v3162_v58  ;;  %v2609_v22 = vshll.u32 %v8769_v19, %v4787_v16  ;;  %v2613_v30 = vshrl.u32 %v8768_v24, %v4811_v18  ;;  %v2599_v17 = vand.u32 8388607, %v8708_v54 }
  0xcc   :  { %v3072_v40 = vclz %v4086_v31  ;;  %v2616_v39 = vshrl.u32 %v8770_v7, %v4811_v18  ;;  %v2619_v5 = vshrl.u32 %v8771_v49, %v4811_v18  ;;  %v2612_v27 = vshll.u32 %v8767_v20, %v4787_v16 }
  0xcd   :  { %v3168_v60 = vadd.s32 536870912, %v3167_v25  ;;  %v2618_v58 = vshll.u32 %v8770_v7, %v4787_v16  ;;  %v2622_v1 = vshrl.u32 %v8772_v48, %v4811_v18  ;;  %v3060_v31 = vadd.s32 %v4893_v10, %v4900_v26 }
  0xce   :  { %v4087_v59 = vadd.s32 4294967294, %v3072_v40  ;;  %v2611_v54 = vor.u32 %v2610_v57, %v2609_v22  ;;  %v2615_v47 = vshll.u32 %v8768_v24, %v4787_v16  ;;  %v2614_v6 = vor.u32 %v2613_v30, %v2612_v27 }
  0xcf   :  { %v5014_v61 = vshrl.u32 %v3168_v60, 30  ;;  %v2620_v42 = vor.u32 %v2619_v5, %v2618_v58  ;;  %v2621_v63 = vshll.u32 %v8771_v49, %v4787_v16  ;;  %v3091_v51 = vsel %vm3006_vm12, %v3090_v28, %v3066_v29 }
  0xd0   :  { %vm4088_vm13 = vcmp.lt.s32.totalorder %v4087_v59, 0  ;;  %v2608_v50 = vshrl.u32 %v8769_v19, %v4811_v18  ;;  %v2617_v26 = vor.u32 %v2616_v39, %v2615_v47  ;;  %v2600_v22 = vor.u32 8388608, %v2599_v17 }
  0xd1   :  { %v3075_v10 = vsel %vm4088_vm13, 0, %v4087_v59  ;;  %v3170_v57 = vshll.u32 %v5014_v61, 30  ;;  %v2623_v40 = vor.u32 %v2622_v1, %v2621_v63  ;;  %vm2624_vm14 = vcmp.lt.s32.totalorder %v4808_v12, 1 }
  0xd2   :  { %v3076_v60 = vsub.s32 32, %v3075_v10  ;;  %v3080_v56 = vsub.s32 4294967266, %v3075_v10  ;;  %vm2627_vm15 = vcmp.lt.s32.totalorder %v4808_v12, 4  ;;  %vm2626_vm0 = vcmp.lt.s32.totalorder %v4808_v12, 3 }
  0xd3   :  { %v5025_v16 = vsub.s32 %v3167_v25, %v3170_v57  ;;  %v2632_v29 = vsel %vm2624_vm14, %v2611_v54, %v2614_v6  ;;  %v2633_v18 = vsel %vm2627_vm15, %v2620_v42, 920167782  ;;  %v3077_v47 = vshll.u32 %v4963_v2, %v3075_v10 }
  0xd4   :  { %v3078_v59 = vshrl.u32 %v3060_v31, %v3076_v60  ;;  %v3081_v28 = vadd.s32 127, %v3080_v56  ;;  %v2634_v63 = vsel %vm2626_vm0, %v2617_v26, %v2633_v18  ;;  %v2629_v17 = vsel %vm2627_vm15, %v2617_v26, 2102212464 }
  0xd5   :  { %v3173_v30 = vsub.s32 0, %v5025_v16  ;;  %v2636_v25 = vsel %vm2624_vm14, %v2614_v6, %v2617_v26  ;;  %v2637_v39 = vsel %vm2627_vm15, %v2623_v40, 1326507024  ;;  %vm2625_vm1 = vcmp.lt.s32.totalorder %v4808_v12, 2 }
  0xd6   :  { %v3079_v5 = vor.u32 %v3078_v59, %v3077_v47  ;;  %v3082_v27 = vshll.u32 %v3081_v28, 23  ;;  %v2638_v58 = vsel %vm2626_vm0, %v2620_v42, %v2637_v39  ;;  %v8779_v2 = vand.u32 2147483647, %v4653_v36 }
  0xd7   :  { %v4090_v1 = vmin.u32 %v3173_v30, %v5025_v16  ;;  %v2635_v31 = vsel %vm2625_vm1, %v2632_v29, %v2634_v63  ;;  %v2640_v26 = vshll.u32 %v2600_v22, 8  ;;  %v2628_v57 = vsel %vm2624_vm14, %v2608_v50, %v2611_v54 }
  0xd8   :  { %vm5041_vm2 = vcmp.le.f32.partialorder %v8779_v2, 0.7853982  ;;  %v3083_v10 = vor.u32 4788187, %v3082_v27  ;;  %v2630_v40 = vsel %vm2626_vm0, %v2614_v6, %v2629_v17  ;;  %v2639_v42 = vsel %vm2625_vm1, %v2636_v25, %v2638_v58 }
  0xd9   :  { %v3093_v60 = vsel %vm5041_vm2, 0, %v3091_v51  ;;  %v3175_v18 = vclz %v4090_v1  ;;  %v5056_v47 = vmul.u32.u64.low %v2640_v26, %v2639_v42  ;;  %v5057_v59 = vmul.u32.u64.high %v2640_v26, %v2639_v42, %v5056_v47 }
  0xda   :  { %v3084_v28 = vand.u32 2147483647, %v3083_v10  ;;  %v3086_v29 = vcvt.s32.f32 %v3079_v5  ;;  %v5059_v22 = vmul.u32.u64.low %v2640_v26, %v2635_v31  ;;  %v5060_v63 = vmul.u32.u64.high %v2640_v26, %v2635_v31, %v5059_v22 }
  0xdb   :  { %v5064_v50 = vadd.s32 1, %v4972_v45  ;;  %v5067_v6 = vadd.s32 1, %v4974_v4  ;;  %v4091_v54 = vadd.s32 4294967294, %v3175_v18  ;;  %v2631_v51 = vsel %vm2625_vm1, %v2628_v57, %v2630_v40 }
  0xdc   :  { %v5072_v30 = vsub.s32 32, %v4983_v33  ;;  %v5075_v17 = vsub.s32 32, %v4988_v38  ;;  %v3087_v25 = vmul.f32 %v3086_v29, %v3084_v28  ;;  %v5077_v39 = vand.u32 3, %v3093_v60 }
  0xdd   :  { %v3163_v45 = vadd.s32 %v4939_v23, %v4947_v13  ;;  %vm4092_vm3 = vcmp.lt.s32.totalorder %v4091_v54, 0  ;;  %v3193_v4 = vsub.s32 4, %v5014_v61  ;;  %vm2649_vm4 = vc.u32 %v5057_v59, %v5059_v22 }
  0xde   :  { %v3088_v12 = vxor.u32 2147483648, %v3087_v25  ;;  %v3178_v5 = vsel %vm4092_vm3, 0, %v4091_v54  ;;  %v2647_v27 = vmul.u32 %v2640_v26, %v2631_v51  ;;  %v2650_v58 = vadd.s32 1, %v5060_v63 }
  0xdf   :  { %v3179_v2 = vsub.s32 32, %v3178_v5  ;;  %v3183_v1 = vsub.s32 4294967266, %v3178_v5  ;;  %v2695_v31 = vand.u32 2147483647, %v4688_v0  ;;  %v2712_v10 = vshll.u32 %v8769_v19, %v4789_v21 }
  0xe0   :  { %v3089_v23 = vsel %vm3006_vm12, %v3088_v12, %v3087_v25  ;;  %v3180_v13 = vshll.u32 %v5025_v16, %v3178_v5  ;;  %v2651_v57 = vsel %vm2649_vm4, %v2650_v58, %v5060_v63  ;;  %v2713_v40 = vshrl.u32 %v8767_v20, %v4816_v52 }
  0xe1   :  { %v3092_v26 = vsel %vm5041_vm2, %v4653_v36, %v3089_v23  ;;  %v3181_v42 = vshrl.u32 %v3163_v45, %v3179_v2  ;;  %v3184_v60 = vadd.s32 127, %v3183_v1  ;;  %v2652_v18 = vadd.s32 %v2651_v57, %v2647_v27 }
  0xe2   :  { %4393 = vcosq.f32 %v3092_v26  ;;  %v2715_v47 = vshll.u32 %v8767_v20, %v4789_v21  ;;  %v2716_v28 = vshrl.u32 %v8768_v24, %v4816_v52  ;;  %v2719_v16 = vshrl.u32 %v8770_v7, %v4816_v52 }
  0xe3   :  { %4395 = vsinq.f32 %v3092_v26  ;;  %v3182_v29 = vor.u32 %v3181_v42, %v3180_v13  ;;  %v3185_v63 = vshll.u32 %v3184_v60, 23  ;;  %v2653_v54 = vadd.s32 536870912, %v2652_v18 }
  0xe4   :  { %v2718_v56 = vshll.u32 %v8768_v24, %v4789_v21  ;;  %v2721_v51 = vshll.u32 %v8770_v7, %v4789_v21  ;;  %v2722_v25 = vshrl.u32 %v8771_v49, %v4816_v52  ;;  %v2725_v45 = vshrl.u32 %v8772_v48, %v4816_v52 }
  0xe5   :  { %v3186_v12 = vor.u32 4788187, %v3185_v63  ;;  %v5111_v5 = vshrl.u32 %v2653_v54, 30  ;;  %v2702_v27 = vand.u32 8388607, %v2695_v31  ;;  %v2714_v58 = vor.u32 %v2713_v40, %v2712_v10 }
  0xe6   :  { %v2717_v2 = vor.u32 %v2716_v28, %v2715_v47  ;;  %v2720_v1 = vor.u32 %v2719_v16, %v2718_v56  ;;  %v2723_v23 = vor.u32 %v2722_v25, %v2721_v51  ;;  %v2724_v13 = vshll.u32 %v8771_v49, %v4789_v21 }
  0xe7   :  { %v3187_v57 = vand.u32 2147483647, %v3186_v12  ;;  %v3189_v26 = vcvt.s32.f32 %v3182_v29  ;;  %v2655_v42 = vshll.u32 %v5111_v5, 30  ;;  %vm2730_vm5 = vcmp.lt.s32.totalorder %v4813_v55, 4 }
  0xe8   :  { %v8782_v60 = vand.u32 2147483647, %v4656_v37  ;;  %vm3109_vm7 = vcmp.lt.s32.totalorder %v4656_v37, 0  ;;  %v2726_v10 = vor.u32 %v2725_v45, %v2724_v13  ;;  %v2736_v40 = vsel %vm2730_vm5, %v2723_v23, 920167782 }
  0xe9   :  { %vm3102_vm8 = vcmp.eq.s32.totalorder %v5077_v39, 2  ;;  %v3190_v21 = vmul.f32 %v3189_v26, %v3187_v57  ;;  %v3194_v47 = vsel %vm3109_vm7, %v3193_v4, %v5014_v61  ;;  %v5132_v28 = vsub.s32 %v2652_v18, %v2655_v42 }
  0xea   :  { %vm5121_vm6 = vcmp.le.f32.partialorder %v8782_v60, 0.7853982  ;;  %v2703_v16 = vor.u32 8388608, %v2702_v27  ;;  %v2711_v29 = vshrl.u32 %v8769_v19, %v4816_v52  ;;  %vm2727_vm9 = vcmp.lt.s32.totalorder %v4813_v55, 1 }
  0xeb   :  { %vm2729_vm10 = vcmp.lt.s32.totalorder %v4813_v55, 3  ;;  %v3191_v54 = vxor.u32 2147483648, %v3190_v21  ;;  %v2658_v56 = vsub.s32 0, %v5132_v28  ;;  %v2735_v51 = vsel %vm2727_vm9, %v2714_v58, %v2717_v2 }
  0xec   :  { %v2737_v25 = vsel %vm2729_vm10, %v2720_v1, %v2736_v40  ;;  %vm3096_vm11 = vweird.f32 %v4653_v36  ;;  %v3196_v61 = vsel %vm5121_vm6, 0, %v3194_v47  ;;  %v2732_v4 = vsel %vm2730_vm5, %v2720_v1, 2102212464 }
  0xed   :  { %v2739_v52 = vsel %vm2727_vm9, %v2717_v2, %v2720_v1  ;;  %v2740_v18 = vsel %vm2730_vm5, %v2726_v10, 1326507024  ;;  %v3192_v45 = vsel %vm3109_vm7, %v3191_v54, %v3190_v21  ;;  %v4070_v12 = vmin.u32 %v2658_v56, %v5132_v28 }
  0xee   :  { %vm2728_vm12 = vcmp.lt.s32.totalorder %v4813_v55, 2  ;;  %v2731_v27 = vsel %vm2727_vm9, %v2711_v29, %v2714_v58  ;;  %v3195_v13 = vsel %vm5121_vm6, %v4656_v37, %v3192_v45  ;;  %v2741_v1 = vsel %vm2729_vm10, %v2723_v23, %v2740_v18 }
  0xef   :  { %v2738_v57 = vsel %vm2728_vm12, %v2735_v51, %v2737_v25  ;;  %v2743_v26 = vshll.u32 %v2703_v16, 8  ;;  %v4394_v42 = vpop.eup %4393  ;;  %4397 = vcosq.f32 %v3195_v13  ;;  %v2660_v60 = vclz %v4070_v12 }
  0xf0   :  { %v2733_v10 = vsel %vm2729_vm10, %v2717_v2, %v2732_v4  ;;  %v2742_v58 = vsel %vm2728_vm12, %v2739_v52, %v2741_v1  ;;  %v4396_v40 = vpop.eup %4395  ;;  %v3103_v21 = vxor.u32 2147483648, %v4394_v42  ;;  %4399 = vsinq.f32 %v3195_v13 }
  0xf1   :  { %v5163_v63 = vmul.u32.u64.low %v2743_v26, %v2742_v58  ;;  %v5164_v47 = vmul.u32.u64.high %v2743_v26, %v2742_v58, %v5163_v63  ;;  %v3100_v29 = vxor.u32 2147483648, %v4396_v40  ;;  %v4071_v54 = vadd.s32 4294967294, %v2660_v60 }
  0xf2   :  { %v5166_v56 = vmul.u32.u64.low %v2743_v26, %v2738_v57  ;;  %v5167_v23 = vmul.u32.u64.high %v2743_v26, %v2738_v57, %v5166_v56  ;;  %vm3098_vm13 = vcmp.lt.s32.totalorder %v5077_v39, 2  ;;  %vm3099_vm14 = vcmp.eq.s32.totalorder %v5077_v39, 0 }
  0xf3   :  { %v3104_v2 = vsel %vm3102_vm8, %v3103_v21, %v4396_v40  ;;  %v5174_v16 = vand.u32 3, %v3196_v61  ;;  %vm2594_vm15 = vcmp.lt.s32.totalorder %v4685_v62, 0  ;;  %v3101_v51 = vsel %vm3099_vm14, %v4394_v42, %v3100_v29 }
  0xf4   :  { %v2648_v25 = vadd.s32 %v5059_v22, %v5057_v59  ;;  %vm4072_vm0 = vcmp.lt.s32.totalorder %v4071_v54, 0  ;;  %v2734_v4 = vsel %vm2728_vm12, %v2731_v27, %v2733_v10  ;;  %v3105_v52 = vsel %vm3098_vm13, %v3101_v51, %v3104_v2 }
  0xf5   :  { %v2663_v18 = vsel %vm4072_vm0, 0, %v4071_v54  ;;  %v2678_v45 = vsub.s32 4, %v5111_v5  ;;  %v2180_v12 = vand.u32 2147483647, %v4662_v41  ;;  %v3106_v39 = vsel %vm3096_vm11, nan, %v3105_v52 }
  0xf6   :  { %v2664_v61 = vsub.s32 32, %v2663_v18  ;;  %v2668_v13 = vsub.s32 4294967266, %v2663_v18  ;;  %vm2752_vm1 = vc.u32 %v5164_v47, %v5166_v56  ;;  %4165 = vmatprep.subr.mxu0 %v3106_v39  ;;  %vm3205_vm2 = vcmp.eq.s32.totalorder %v5174_v16, 2 }
  0xf7   :  { %v2750_v59 = vmul.u32 %v2743_v26, %v2734_v4  ;;  %v2753_v55 = vadd.s32 1, %v5167_v23  ;;  %v2197_v22 = vshll.u32 %v8769_v19, %v4762_v8  ;;  %v2198_v27 = vshrl.u32 %v8767_v20, %v4782_v32  ;;  %4166 = vmatpush3.msra.mxu0 %v3106_v39 }
  0xf8   :  { %vm3202_vm3 = vcmp.eq.s32.totalorder %v5174_v16, 0  ;;  %v2665_v36 = vshll.u32 %v5132_v28, %v2663_v18  ;;  %v2666_v57 = vshrl.u32 %v2648_v25, %v2664_v61  ;;  %v2669_v1 = vadd.s32 127, %v2668_v13 }
  0xf9   :  { %v2203_v42 = vshll.u32 %v8768_v24, %v4762_v8  ;;  %vm3201_vm4 = vcmp.lt.s32.totalorder %v5174_v16, 2  ;;  %v2754_v26 = vsel %vm2752_vm1, %v2753_v55, %v5167_v23  ;;  %v2204_v60 = vshrl.u32 %v8770_v7, %v4782_v32 }
  0xfa   :  { %v2206_v10 = vshll.u32 %v8770_v7, %v4762_v8  ;;  %v2207_v58 = vshrl.u32 %v8771_v49, %v4782_v32  ;;  %vm3199_vm5 = vweird.f32 %v4656_v37  ;;  %v2667_v28 = vor.u32 %v2666_v57, %v2665_v36 }
  0xfb   :  { %v2670_v40 = vshll.u32 %v2669_v1, 23  ;;  %v2755_v21 = vadd.s32 %v2754_v26, %v2750_v59  ;;  %v2200_v63 = vshll.u32 %v8767_v20, %v4762_v8  ;;  %v2201_v29 = vshrl.u32 %v8768_v24, %v4782_v32 }
  0xfc   :  { %v2205_v54 = vor.u32 %v2204_v60, %v2203_v42  ;;  %v2209_v23 = vshll.u32 %v8771_v49, %v4762_v8  ;;  %v2210_v2 = vshrl.u32 %v8772_v48, %v4782_v32  ;;  %vm955_vm6 = vcmp.gt.s32.totalorder %v5064_v50, 0  ;;  %v4398_v61 = vpop.eup %4397 }
  0xfd   :  { %v8785_v51 = vand.u32 2147483647, %v4685_v62  ;;  %v2671_v4 = vor.u32 4788187, %v2670_v40  ;;  %v2679_v52 = vsel %vm2594_vm15, %v2678_v45, %v5111_v5  ;;  %v2756_v18 = vadd.s32 536870912, %v2755_v21  ;;  %v4400_v36 = vpop.eup %4399 }
  0xfe   :  { %v2208_v39 = vor.u32 %v2207_v58, %v2206_v10  ;;  %v2674_v8 = vcvt.s32.f32 %v2667_v28  ;;  %v2187_v13 = vand.u32 8388607, %v2180_v12  ;;  %v2196_v59 = vshrl.u32 %v8769_v19, %v4782_v32 }
  0xff   :  { %vm5217_vm7 = vcmp.le.f32.partialorder %v8785_v51, 0.7853982  ;;  %v2199_v55 = vor.u32 %v2198_v27, %v2197_v22  ;;  %vm1058_vm8 = vcmp.gt.s32.totalorder %v5067_v6, 0  ;;  %v3206_v57 = vxor.u32 2147483648, %v4398_v61 }
 0x100   :  { %v2672_v1 = vand.u32 2147483647, %v2671_v4  ;;  %v5229_v42 = vshrl.u32 %v2756_v18, 30  ;;  %vm2215_vm9 = vcmp.lt.s32.totalorder %v4760_v3, 4  ;;  %v3203_v5 = vxor.u32 2147483648, %v4400_v36 }
 0x101   :  { %v2202_v45 = vor.u32 %v2201_v29, %v2200_v63  ;;  %v2211_v26 = vor.u32 %v2210_v2, %v2209_v23  ;;  %v2217_v60 = vsel %vm2215_vm9, %v2205_v54, 2102212464  ;;  %v3207_v10 = vsel %vm3205_vm2, %v3206_v57, %v4400_v36 }
 0x102   :  { %v2675_v32 = vmul.f32 %v2674_v8, %v2672_v1  ;;  %v2758_v22 = vshll.u32 %v5229_v42, 30  ;;  %v2221_v27 = vsel %vm2215_vm9, %v2208_v39, 920167782  ;;  %v3204_v58 = vsel %vm3202_vm3, %v4398_v61, %v3203_v5 }
 0x103   :  { %v2188_v28 = vor.u32 8388608, %v2187_v13  ;;  %vm2212_vm10 = vcmp.lt.s32.totalorder %v4760_v3, 1  ;;  %vm2214_vm11 = vcmp.lt.s32.totalorder %v4760_v3, 3  ;;  %v3208_v40 = vsel %vm3201_vm4, %v3204_v58, %v3207_v10 }
 0x104   :  { %v2676_v63 = vxor.u32 2147483648, %v2675_v32  ;;  %v5245_v29 = vsub.s32 %v2755_v21, %v2758_v22  ;;  %v2216_v23 = vsel %vm2212_vm10, %v2196_v59, %v2199_v55  ;;  %v3209_v2 = vsel %vm3199_vm5, nan, %v3208_v40 }
 0x105   :  { %v2218_v51 = vsel %vm2214_vm11, %v2202_v45, %v2217_v60  ;;  %v2220_v4 = vsel %vm2212_vm10, %v2199_v55, %v2202_v45  ;;  %v2222_v18 = vsel %vm2214_vm11, %v2205_v54, %v2221_v27  ;;  %4187 = vmatprep.subr.mxu1 %v3209_v2  ;;  %v2224_v8 = vsel %vm2212_vm10, %v2202_v45, %v2205_v54 }
 0x106   :  { %v2677_v61 = vsel %vm2594_vm15, %v2676_v63, %v2675_v32  ;;  %v2761_v16 = vsub.s32 0, %v5245_v29  ;;  %v2225_v21 = vsel %vm2215_vm9, %v2211_v26, 1326507024  ;;  %4188 = vmatpush3.msra.mxu1 %v3209_v2  ;;  %v2681_v13 = vsel %vm5217_vm7, 0, %v2679_v52 }
 0x107   :  { %v2680_v37 = vsel %vm5217_vm7, %v4685_v62, %v2677_v61  ;;  %vm2213_vm12 = vcmp.lt.s32.totalorder %v4760_v3, 2  ;;  %v2226_v59 = vsel %vm2214_vm11, %v2208_v39, %v2225_v21  ;;  %v2228_v36 = vshll.u32 %v2188_v28, 8 }
 0x108   :  { %4401 = vcosq.f32 %v2680_v37  ;;  %v4074_v55 = vmin.u32 %v2761_v16, %v5245_v29  ;;  %v2223_v54 = vsel %vm2213_vm12, %v2220_v4, %v2222_v18  ;;  %v5270_v57 = vsel %vm955_vm6, %v5064_v50, 0 }
 0x109   :  { %4403 = vsinq.f32 %v2680_v37  ;;  %v2219_v1 = vsel %vm2213_vm12, %v2216_v23, %v2218_v51  ;;  %v2227_v5 = vsel %vm2213_vm12, %v2224_v8, %v2226_v59  ;;  %v2283_v3 = vand.u32 2147483647, %v4668_v44 }
 0x10a   :  { %v2763_v25 = vclz %v4074_v55  ;;  %v5272_v52 = vmul.u32.u64.low %v2228_v36, %v2227_v5  ;;  %v5273_v45 = vmul.u32.u64.high %v2228_v36, %v2227_v5, %v5272_v52  ;;  %v5279_v39 = vsel %vm1058_vm8, %v5067_v6, 0 }
 0x10b   :  { %v5281_v26 = vand.u32 3, %v2681_v13  ;;  %v5283_v60 = vmul.u32.u64.low %v2228_v36, %v2223_v54  ;;  %v5284_v10 = vmul.u32.u64.high %v2228_v36, %v2223_v54, %v5283_v60  ;;  %v5289_v50 = vmul.f32 %v4648_v34, %v4713_v53 }
 0x10c   :  { %v5293_v32 = vmul.f32 %v4650_v35, %v4713_v53  ;;  %vm2697_vm13 = vcmp.lt.s32.totalorder %v4688_v0, 0  ;;  %v4075_v22 = vadd.s32 4294967294, %v2763_v25  ;;  %v2751_v6 = vadd.s32 %v5166_v56, %v5164_v47 }
 0x10d   :  { %v2781_v27 = vsub.s32 4, %v5229_v42  ;;  %v2235_v58 = vmul.u32 %v2228_v36, %v2219_v1  ;;  %v5301_v28 = vand.u32 8388607, %v2283_v3  ;;  %vm2237_vm15 = vc.u32 %v5273_v45, %v5283_v60 }
 0x10e   :  { %vm4076_vm14 = vcmp.lt.s32.totalorder %v4075_v22, 0  ;;  %v2300_v53 = vshll.u32 %v8769_v19, %v4766_v11  ;;  %v2301_v40 = vshrl.u32 %v8767_v20, %v4785_v9  ;;  %vm2690_vm0 = vcmp.eq.s32.totalorder %v5281_v26, 2 }
 0x10f   :  { %v2766_v47 = vsel %vm4076_vm14, 0, %v4075_v22  ;;  %v2238_v56 = vadd.s32 1, %v5284_v10  ;;  %v2303_v63 = vshll.u32 %v8767_v20, %v4766_v11  ;;  %v2304_v23 = vshrl.u32 %v8768_v24, %v4785_v9 }
 0x110   :  { %vm2687_vm1 = vcmp.eq.s32.totalorder %v5281_v26, 0  ;;  %v2767_v2 = vsub.s32 32, %v2766_v47  ;;  %v2771_v51 = vsub.s32 4294967266, %v2766_v47  ;;  %v2306_v4 = vshll.u32 %v8768_v24, %v4766_v11 }
 0x111   :  { %v2307_v18 = vshrl.u32 %v8770_v7, %v4785_v9  ;;  %vm2686_vm2 = vcmp.lt.s32.totalorder %v5281_v26, 2  ;;  %v2239_v61 = vsel %vm2237_vm15, %v2238_v56, %v5284_v10  ;;  %v2309_v16 = vshll.u32 %v8770_v7, %v4766_v11 }
 0x112   :  { %v2310_v8 = vshrl.u32 %v8771_v49, %v4785_v9  ;;  %v2312_v21 = vshll.u32 %v8771_v49, %v4766_v11  ;;  %vm2684_vm3 = vweird.f32 %v4685_v62  ;;  %v2768_v37 = vshll.u32 %v5245_v29, %v2766_v47 }
 0x113   :  { %v2769_v13 = vshrl.u32 %v2751_v6, %v2767_v2  ;;  %v2772_v59 = vadd.s32 127, %v2771_v51  ;;  %v2240_v55 = vadd.s32 %v2239_v61, %v2235_v58  ;;  %v5333_v54 = vsel %vm2697_vm13, %v2781_v27, %v5229_v42 }
 0x114   :  { %v2299_v36 = vshrl.u32 %v8769_v19, %v4785_v9  ;;  %v2311_v1 = vor.u32 %v2310_v8, %v2309_v16  ;;  %v2313_v5 = vshrl.u32 %v8772_v48, %v4785_v9  ;;  %v2291_v29 = vor.u32 8388608, %v5301_v28 }
 0x115   :  { %v2770_v11 = vor.u32 %v2769_v13, %v2768_v37  ;;  %v2773_v25 = vshll.u32 %v2772_v59, 23  ;;  %v2241_v52 = vadd.s32 536870912, %v2240_v55  ;;  %v4402_v10 = vpop.eup %4401  ;;  %v2302_v22 = vor.u32 %v2301_v40, %v2300_v53 }
 0x116   :  { %v2305_v6 = vor.u32 %v2304_v23, %v2303_v63  ;;  %v2308_v58 = vor.u32 %v2307_v18, %v2306_v4  ;;  %v2314_v47 = vor.u32 %v2313_v5, %v2312_v21  ;;  %v4404_v56 = vpop.eup %4403  ;;  %v2691_v42 = vxor.u32 2147483648, %v4402_v10 }
 0x117   :  { %v2774_v27 = vor.u32 4788187, %v2773_v25  ;;  %v2242_v2 = vshrl.u32 %v2241_v52, 30  ;;  %vm2318_vm4 = vcmp.lt.s32.totalorder %v4764_v43, 4  ;;  %v2688_v51 = vxor.u32 2147483648, %v4404_v56 }
 0x118   :  { %vm2315_vm5 = vcmp.lt.s32.totalorder %v4764_v43, 1  ;;  %vm2317_vm6 = vcmp.lt.s32.totalorder %v4764_v43, 3  ;;  %v2324_v9 = vsel %vm2318_vm4, %v2311_v1, 920167782  ;;  %v2692_v28 = vsel %vm2690_vm0, %v2691_v42, %v4404_v56 }
 0x119   :  { %v2775_v53 = vand.u32 2147483647, %v2774_v27  ;;  %v2777_v40 = vcvt.s32.f32 %v2770_v11  ;;  %v2243_v63 = vshll.u32 %v2242_v2, 30  ;;  %v2689_v23 = vsel %vm2687_vm1, %v4402_v10, %v2688_v51 }
 0x11a   :  { %v2323_v4 = vsel %vm2315_vm5, %v2302_v22, %v2305_v6  ;;  %v2327_v18 = vsel %vm2315_vm5, %v2305_v6, %v2308_v58  ;;  %v2328_v61 = vsel %vm2318_vm4, %v2314_v47, 1326507024  ;;  %v2693_v16 = vsel %vm2686_vm2, %v2689_v23, %v2692_v28 }
 0x11b   :  { %v2778_v8 = vmul.f32 %v2777_v40, %v2775_v53  ;;  %v5357_v21 = vsub.s32 %v2240_v55, %v2243_v63  ;;  %v2325_v37 = vsel %vm2317_vm6, %v2308_v58, %v2324_v9  ;;  %v535_v13 = vand.u32 2139095040, %v5289_v50 }
 0x11c   :  { %v2694_v59 = vsel %vm2684_vm3, nan, %v2693_v16  ;;  %vm5366_vm7 = vcmp.le.f32.partialorder %v2695_v31, 0.7853982  ;;  %vm2316_vm8 = vcmp.lt.s32.totalorder %v4764_v43, 2  ;;  %v2320_v11 = vsel %vm2318_vm4, %v2308_v58, 2102212464 }
 0x11d   :  { %4167 = vmatprep.subr.mxu0 %v2694_v59  ;;  %v2779_v26 = vxor.u32 2147483648, %v2778_v8  ;;  %v2246_v55 = vsub.s32 0, %v5357_v21  ;;  %v2329_v25 = vsel %vm2317_vm6, %v2311_v1, %v2328_v61  ;;  %v2784_v62 = vsel %vm5366_vm7, 0, %v5333_v54 }
 0x11e   :  { %4168 = vmatpush3.msra.mxu0 %v2694_v59  ;;  %v2326_v31 = vsel %vm2316_vm8, %v2323_v4, %v2325_v37  ;;  %v2330_v52 = vsel %vm2316_vm8, %v2327_v18, %v2329_v25  ;;  %v2331_v10 = vshll.u32 %v2291_v29, 8  ;;  %v2266_v56 = vsub.s32 4, %v2242_v2 }
 0x11f   :  { %v2780_v47 = vsel %vm2697_vm13, %v2779_v26, %v2778_v8  ;;  %v4054_v58 = vmin.u32 %v2246_v55, %v5357_v21  ;;  %v2319_v1 = vsel %vm2315_vm5, %v2299_v36, %v2302_v22  ;;  %v2321_v42 = vsel %vm2317_vm6, %v2305_v6, %v2320_v11  ;;  %v8790_v36 = vld [vmem:[#allocation19_spill] sm:$0xff]  ;;  %v8793_v26 = vld [vmem:[#allocation50_spill] sm:$0xff] }
 0x120   :  { %v2783_v54 = vsel %vm5366_vm7, %v4688_v0, %v2780_v47  ;;  %v5393_v27 = vmul.u32.u64.low %v2331_v10, %v2330_v52  ;;  %v5394_v51 = vmul.u32.u64.high %v2331_v10, %v2330_v52, %v5393_v27  ;;  %v5401_v53 = vshrl.u32 %v5270_v57, 5  ;;  %v8794_v52 = vld [vmem:[#allocation44_spill] sm:$0xff] }
 0x121   :  { %4405 = vcosq.f32 %v2783_v54  ;;  %v2248_v29 = vclz %v4054_v58  ;;  %v5396_v9 = vmul.u32.u64.low %v2331_v10, %v2326_v31  ;;  %v5397_v28 = vmul.u32.u64.high %v2331_v10, %v2326_v31, %v5396_v9 }
 0x122   :  { %4407 = vsinq.f32 %v2783_v54  ;;  %vm2182_vm9 = vcmp.lt.s32.totalorder %v4662_v41, 0  ;;  %v1768_v22 = vand.u32 2147483647, %v8790_v36  ;;  %v5406_v40 = vand.u32 31, %v5270_v57 }
 0x123   :  { %v4055_v6 = vadd.s32 4294967294, %v2248_v29  ;;  %v5410_v63 = vsel %vm2182_vm9, %v2266_v56, %v2242_v2  ;;  %v2322_v23 = vsel %vm2316_vm8, %v2319_v1, %v2321_v42  ;;  %v5414_v4 = vshrl.u32 %v535_v13, 23 }
 0x124   :  { %v638_v18 = vand.u32 2139095040, %v5293_v32  ;;  %v5417_v61 = vand.u32 3, %v2784_v62  ;;  %vm2340_vm10 = vc.u32 %v5394_v51, %v5396_v9  ;;  %vm5423_vm11 = vcmp.le.f32.partialorder %v2180_v12, 0.7853982 }
 0x125   :  { %v2236_v2 = vadd.s32 %v5283_v60, %v5273_v45  ;;  %vm4056_vm12 = vcmp.lt.s32.totalorder %v4055_v6, 0  ;;  %v2341_v43 = vadd.s32 1, %v5397_v28  ;;  %v2269_v8 = vsel %vm5423_vm11, 0, %v5410_v63 }
 0x126   :  { %v2251_v16 = vsel %vm4056_vm12, 0, %v4055_v6  ;;  %v2338_v37 = vmul.u32 %v2331_v10, %v2322_v23  ;;  %v5435_v13 = vand.u32 8388607, %v1768_v22  ;;  %v1786_v45 = vshrl.u32 %v8767_v20, %v8793_v26 }
 0x127   :  { %v2252_v12 = vsub.s32 32, %v2251_v16  ;;  %v2256_v59 = vsub.s32 4294967266, %v2251_v16  ;;  %v2342_v5 = vsel %vm2340_vm10, %v2341_v43, %v5397_v28  ;;  %vm2793_vm13 = vcmp.eq.s32.totalorder %v5417_v61, 2 }
 0x128   :  { %v2253_v60 = vshll.u32 %v5357_v21, %v2251_v16  ;;  %v2343_v55 = vadd.s32 %v2342_v5, %v2338_v37  ;;  %v1789_v11 = vshrl.u32 %v8768_v24, %v8793_v26  ;;  %v1792_v25 = vshrl.u32 %v8770_v7, %v8793_v26 }
 0x129   :  { %vm2790_vm14 = vcmp.eq.s32.totalorder %v5417_v61, 0  ;;  %v2254_v62 = vshrl.u32 %v2236_v2, %v2252_v12  ;;  %v2257_v31 = vadd.s32 127, %v2256_v59  ;;  %v1794_v10 = vshll.u32 %v8770_v7, %v8794_v52  ;;  %v8795_v12 = vld [vmem:[#allocation48_spill] sm:$0xff] }
 0x12a   :  { %v1795_v47 = vshrl.u32 %v8771_v49, %v8793_v26  ;;  %vm2789_vm15 = vcmp.lt.s32.totalorder %v5417_v61, 2  ;;  %v2344_v21 = vadd.s32 536870912, %v2343_v55  ;;  %v1785_v58 = vshll.u32 %v8769_v19, %v8794_v52 }
 0x12b   :  { %v1791_v56 = vshll.u32 %v8768_v24, %v8794_v52  ;;  %v1798_v1 = vshrl.u32 %v8772_v48, %v8793_v26  ;;  %vm2787_vm0 = vweird.f32 %v4688_v0  ;;  %v2255_v54 = vor.u32 %v2254_v62, %v2253_v60 }
 0x12c   :  { %v2258_v42 = vshll.u32 %v2257_v31, 23  ;;  %v1788_v27 = vshll.u32 %v8767_v20, %v8794_v52  ;;  %v1796_v29 = vor.u32 %v1795_v47, %v1794_v10  ;;  %v5461_v28 = vshrl.u32 %v2344_v21, 30 }
 0x12d   :  { %v1784_v6 = vshrl.u32 %v8769_v19, %v8793_v26  ;;  %v1793_v23 = vor.u32 %v1792_v25, %v1791_v56  ;;  %v1797_v2 = vshll.u32 %v8771_v49, %v8794_v52  ;;  %v1787_v16 = vor.u32 %v1786_v45, %v1785_v58 }
 0x12e   :  { %v2259_v43 = vor.u32 4788187, %v2258_v42  ;;  %v1790_v37 = vor.u32 %v1789_v11, %v1788_v27  ;;  %vm1803_vm1 = vcmp.lt.s32.totalorder %v8795_v12, 4  ;;  %v4406_v59 = vpop.eup %4405  ;;  %v2346_v5 = vshll.u32 %v5461_v28, 30 }
 0x12f   :  { %v1776_v60 = vor.u32 8388608, %v5435_v13  ;;  %v1799_v62 = vor.u32 %v1798_v1, %v1797_v2  ;;  %v1809_v31 = vsel %vm1803_vm1, %v1796_v29, 920167782  ;;  %v4408_v10 = vpop.eup %4407  ;;  %v2794_v26 = vxor.u32 2147483648, %v4406_v59 }
 0x130   :  { %v2260_v25 = vand.u32 2147483647, %v2259_v43  ;;  %v2262_v47 = vcvt.s32.f32 %v2255_v54  ;;  %vm1800_vm2 = vcmp.lt.s32.totalorder %v8795_v12, 1  ;;  %v2791_v52 = vxor.u32 2147483648, %v4408_v10 }
 0x131   :  { %v5473_v45 = vsub.s32 %v2343_v55, %v2346_v5  ;;  %vm1802_vm3 = vcmp.lt.s32.totalorder %v8795_v12, 3  ;;  %v1805_v11 = vsel %vm1803_vm1, %v1793_v23, 2102212464  ;;  %v2795_v13 = vsel %vm2793_vm13, %v2794_v26, %v4408_v10 }
 0x132   :  { %v2263_v21 = vmul.f32 %v2262_v47, %v2260_v25  ;;  %v1808_v58 = vsel %vm1800_vm2, %v1787_v16, %v1790_v37  ;;  %v1810_v56 = vsel %vm1802_vm3, %v1793_v23, %v1809_v31  ;;  %v2792_v1 = vsel %vm2790_vm14, %v4406_v59, %v2791_v52 }
 0x133   :  { %v2349_v55 = vsub.s32 0, %v5473_v45  ;;  %v1812_v54 = vsel %vm1800_vm2, %v1790_v37, %v1793_v23  ;;  %v1813_v42 = vsel %vm1803_vm1, %v1799_v62, 1326507024  ;;  %v2796_v27 = vsel %vm2789_vm15, %v2792_v1, %v2795_v13 }
 0x134   :  { %v2264_v2 = vxor.u32 2147483648, %v2263_v21  ;;  %vm1801_vm4 = vcmp.lt.s32.totalorder %v8795_v12, 2  ;;  %v1814_v43 = vsel %vm1802_vm3, %v1796_v29, %v1813_v42  ;;  %v2797_v59 = vsel %vm2787_vm0, nan, %v2796_v27 }
 0x135   :  { %v4058_v5 = vmin.u32 %v2349_v55, %v5473_v45  ;;  %v1811_v23 = vsel %vm1801_vm4, %v1808_v58, %v1810_v56  ;;  %v1816_v31 = vshll.u32 %v1776_v60, 8  ;;  %4189 = vmatprep.subr.mxu1 %v2797_v59  ;;  %v1804_v62 = vsel %vm1800_vm2, %v1784_v6, %v1787_v16  ;;  %v8798_v58 = vld [vmem:[#allocation20_spill] sm:$0xff] }
 0x136   :  { %v2265_v61 = vsel %vm2182_vm9, %v2264_v2, %v2263_v21  ;;  %v1806_v10 = vsel %vm1802_vm3, %v1790_v37, %v1805_v11  ;;  %v1815_v0 = vsel %vm1801_vm4, %v1812_v54, %v1814_v43  ;;  %4190 = vmatpush3.msra.mxu1 %v2797_v59  ;;  %v2369_v47 = vsub.s32 4, %v5461_v28 }
 0x137   :  { %v2268_v29 = vsel %vm5423_vm11, %v4662_v41, %v2265_v61  ;;  %v2351_v26 = vclz %v4058_v5  ;;  %v5512_v60 = vmul.u32.u64.low %v1816_v31, %v1815_v0  ;;  %v5513_v25 = vmul.u32.u64.high %v1816_v31, %v1815_v0, %v5512_v60 }
 0x138   :  { %4409 = vcosq.f32 %v2268_v29  ;;  %v5516_v52 = vmul.u32.u64.low %v1816_v31, %v1811_v23  ;;  %v5517_v6 = vmul.u32.u64.high %v1816_v31, %v1811_v23, %v5516_v52  ;;  %v5522_v16 = vshrl.u32 %v638_v18, 23 }
 0x139   :  { %4411 = vsinq.f32 %v2268_v29  ;;  %v4059_v37 = vadd.s32 4294967294, %v2351_v26  ;;  %v1807_v11 = vsel %vm1801_vm4, %v1804_v62, %v1806_v10  ;;  %v5527_v13 = vadd.s32 4294967169, %v5414_v4 }
 0x13a   :  { %vm5531_vm5 = vcmp.le.f32.partialorder %v2283_v3, 0.7853982  ;;  %vm2285_vm6 = vcmp.lt.s32.totalorder %v4668_v44, 0  ;;  %v1871_v56 = vand.u32 2147483647, %v8798_v58  ;;  %v5541_v18 = vand.u32 3, %v2269_v8 }
 0x13b   :  { %v2339_v4 = vadd.s32 %v5396_v9, %v5394_v51  ;;  %vm4060_vm7 = vcmp.lt.s32.totalorder %v4059_v37, 0  ;;  %vm1825_vm8 = vc.u32 %v5513_v25, %v5516_v52  ;;  %v5550_v12 = vsel %vm2285_vm6, %v2369_v47, %v5461_v28 }
 0x13c   :  { %v2354_v3 = vsel %vm4060_vm7, 0, %v4059_v37  ;;  %v1823_v1 = vmul.u32 %v1816_v31, %v1807_v11  ;;  %v1826_v57 = vadd.s32 1, %v5517_v6  ;;  %v1888_v8 = vshll.u32 %v8769_v19, %v4847_v46 }
 0x13d   :  { %v2355_v55 = vsub.s32 32, %v2354_v3  ;;  %v2359_v63 = vsub.s32 4294967266, %v2354_v3  ;;  %v1889_v51 = vshrl.u32 %v8767_v20, %v4944_v14  ;;  %v1878_v54 = vand.u32 8388607, %v1871_v56 }
 0x13e   :  { %v1827_v9 = vsel %vm1825_vm8, %v1826_v57, %v5517_v6  ;;  %v1891_v28 = vshll.u32 %v8767_v20, %v4847_v46  ;;  %v1892_v42 = vshrl.u32 %v8768_v24, %v4944_v14  ;;  %vm2278_vm9 = vcmp.eq.s32.totalorder %v5541_v18, 2 }
 0x13f   :  { %v2356_v27 = vshll.u32 %v5473_v45, %v2354_v3  ;;  %v2357_v2 = vshrl.u32 %v2339_v4, %v2355_v55  ;;  %v2360_v43 = vadd.s32 127, %v2359_v63  ;;  %v1828_v59 = vadd.s32 %v1827_v9, %v1823_v1  ;;  %v8799_v55 = vld [vmem:[#allocation49_spill] sm:$0xff] }
 0x140   :  { %vm2275_vm10 = vcmp.eq.s32.totalorder %v5541_v18, 0  ;;  %v1895_v5 = vshrl.u32 %v8770_v7, %v4944_v14  ;;  %v1897_v23 = vshll.u32 %v8770_v7, %v4847_v46  ;;  %v1898_v31 = vshrl.u32 %v8771_v49, %v4944_v14 }
 0x141   :  { %v1900_v61 = vshll.u32 %v8771_v49, %v4847_v46  ;;  %vm2274_vm11 = vcmp.lt.s32.totalorder %v5541_v18, 2  ;;  %v2358_v45 = vor.u32 %v2357_v2, %v2356_v27  ;;  %v2361_v62 = vshll.u32 %v2360_v43, 23 }
 0x142   :  { %v1829_v10 = vadd.s32 536870912, %v1828_v59  ;;  %v1901_v0 = vshrl.u32 %v8772_v48, %v4944_v14  ;;  %vm2272_vm12 = vweird.f32 %v4662_v41  ;;  %v1890_v29 = vor.u32 %v1889_v51, %v1888_v8 }
 0x143   :  { %v1893_v26 = vor.u32 %v1892_v42, %v1891_v28  ;;  %v1894_v60 = vshll.u32 %v8768_v24, %v4847_v46  ;;  %v1899_v47 = vor.u32 %v1898_v31, %v1897_v23  ;;  %v2362_v6 = vor.u32 4788187, %v2361_v62 }
 0x144   :  { %v2372_v37 = vsel %vm5531_vm5, 0, %v5550_v12  ;;  %v1830_v11 = vshrl.u32 %v1829_v10, 30  ;;  %v1902_v4 = vor.u32 %v1901_v0, %v1900_v61  ;;  %v1879_v3 = vor.u32 8388608, %v1878_v54 }
 0x145   :  { %v1887_v1 = vshrl.u32 %v8769_v19, %v4944_v14  ;;  %v1896_v57 = vor.u32 %v1895_v5, %v1894_v60  ;;  %vm1903_vm13 = vcmp.lt.s32.totalorder %v8799_v55, 1  ;;  %v4410_v63 = vpop.eup %4409  ;;  %v2363_v8 = vand.u32 2147483647, %v2362_v6 }
 0x146   :  { %v2365_v51 = vcvt.s32.f32 %v2358_v45  ;;  %v1831_v9 = vshll.u32 %v1830_v11, 30  ;;  %vm1906_vm14 = vcmp.lt.s32.totalorder %v8799_v55, 4  ;;  %v4412_v46 = vpop.eup %4411  ;;  %v2279_v28 = vxor.u32 2147483648, %v4410_v63 }
 0x147   :  { %vm1905_vm15 = vcmp.lt.s32.totalorder %v8799_v55, 3  ;;  %v1911_v12 = vsel %vm1903_vm13, %v1890_v29, %v1893_v26  ;;  %v1912_v54 = vsel %vm1906_vm14, %v1899_v47, 920167782  ;;  %v2276_v14 = vxor.u32 2147483648, %v4412_v46 }
 0x148   :  { %v2366_v42 = vmul.f32 %v2365_v51, %v2363_v8  ;;  %v5593_v27 = vsub.s32 %v1828_v59, %v1831_v9  ;;  %v1916_v2 = vsel %vm1906_vm14, %v1902_v4, 1326507024  ;;  %v2280_v43 = vsel %vm2278_vm9, %v2279_v28, %v4412_v46 }
 0x149   :  { %vm1904_vm0 = vcmp.lt.s32.totalorder %v8799_v55, 2  ;;  %v1913_v5 = vsel %vm1905_vm15, %v1896_v57, %v1912_v54  ;;  %v1915_v23 = vsel %vm1903_vm13, %v1893_v26, %v1896_v57  ;;  %v2277_v31 = vsel %vm2275_vm10, %v4410_v63, %v2276_v14  ;;  %v8800_v54 = vld [vmem:[#allocation29_spill] sm:$0xff] }
 0x14a   :  { %v2367_v61 = vxor.u32 2147483648, %v2366_v42  ;;  %v1834_v59 = vsub.s32 0, %v5593_v27  ;;  %v1908_v45 = vsel %vm1906_vm14, %v1896_v57, 2102212464  ;;  %v2281_v62 = vsel %vm2274_vm11, %v2277_v31, %v2280_v43 }
 0x14b   :  { %v1907_v10 = vsel %vm1903_vm13, %v1887_v1, %v1890_v29  ;;  %v1914_v0 = vsel %vm1904_vm0, %v1911_v12, %v1913_v5  ;;  %v1917_v60 = vsel %vm1905_vm15, %v1899_v47, %v1916_v2  ;;  %v2282_v6 = vsel %vm2272_vm12, nan, %v2281_v62 }
 0x14c   :  { %v2368_v4 = vsel %vm2285_vm6, %v2367_v61, %v2366_v42  ;;  %v4038_v57 = vmin.u32 %v1834_v59, %v5593_v27  ;;  %v1919_v63 = vshll.u32 %v1879_v3, 8  ;;  %4169 = vmatprep.subr.mxu0 %v2282_v6  ;;  %v1854_v29 = vsub.s32 4, %v1830_v11  ;;  %v8803_v61 = vld [vmem:[#allocation34_spill] sm:$0xff] }
 0x14d   :  { %v2371_v18 = vsel %vm5531_vm5, %v4668_v44, %v2368_v4  ;;  %v1909_v1 = vsel %vm1905_vm15, %v1893_v26, %v1908_v45  ;;  %v1918_v47 = vsel %vm1904_vm0, %v1915_v23, %v1917_v60  ;;  %4170 = vmatpush3.msra.mxu0 %v2282_v6  ;;  %v3993_v3 = vadd.s32 4294967169, %v5522_v16 }
 0x14e   :  { %4413 = vcosq.f32 %v2371_v18  ;;  %v1836_v41 = vclz %v4038_v57  ;;  %v5629_v8 = vmul.u32.u64.low %v1919_v63, %v1918_v47  ;;  %v5630_v51 = vmul.u32.u64.high %v1919_v63, %v1918_v47, %v5629_v8 }
 0x14f   :  { %4415 = vsinq.f32 %v2371_v18  ;;  %v5633_v9 = vmul.u32.u64.low %v1919_v63, %v1914_v0  ;;  %v5634_v46 = vmul.u32.u64.high %v1919_v63, %v1914_v0, %v5633_v9  ;;  %v5638_v21 = vsub.s32 32, %v5406_v40 }
 0x150   :  { %v5641_v26 = vshrl.u32 %v5279_v39, 5  ;;  %v5644_v28 = vand.u32 31, %v5279_v39  ;;  %v4039_v12 = vadd.s32 4294967294, %v1836_v41  ;;  %v5648_v14 = vmul.f32 %v4648_v34, %v8800_v54 }
 0x151   :  { %v5650_v16 = vand.u32 3, %v2372_v37  ;;  %vm1770_vm1 = vcmp.lt.s32.totalorder %v8790_v36, 0  ;;  %v1910_v42 = vsel %vm1904_vm0, %v1907_v10, %v1909_v1  ;;  %v5656_v2 = vadd.s32 1, %v5527_v13 }
 0x152   :  { %vm4040_vm2 = vcmp.lt.s32.totalorder %v4039_v12, 0  ;;  %v5660_v39 = vsel %vm1770_vm1, %v1854_v29, %v1830_v11  ;;  %vm1928_vm3 = vc.u32 %v5630_v51, %v5633_v9  ;;  %v5664_v34 = vadd.s32 1, %v3993_v3 }
 0x153   :  { %vm5668_vm4 = vcmp.le.f32.partialorder %v1768_v22, 0.7853982  ;;  %v1839_v55 = vsel %vm4040_vm2, 0, %v4039_v12  ;;  %v1929_v13 = vadd.s32 1, %v5634_v46  ;;  %v1824_v43 = vadd.s32 %v5516_v52, %v5513_v25 }
 0x154   :  { %v1840_v5 = vsub.s32 32, %v1839_v55  ;;  %v1844_v11 = vsub.s32 4294967266, %v1839_v55  ;;  %v1926_v23 = vmul.u32 %v1919_v63, %v1910_v42  ;;  %vm2381_vm5 = vcmp.eq.s32.totalorder %v5650_v16, 2 }
 0x155   :  { %v1857_v31 = vsel %vm5668_vm4, 0, %v5660_v39  ;;  %v1930_v22 = vsel %vm1928_vm3, %v1929_v13, %v5634_v46  ;;  %v1356_v59 = vand.u32 2147483647, %v8803_v61  ;;  %v1374_v45 = vshrl.u32 %v8767_v20, %v5072_v30 }
 0x156   :  { %vm2378_vm6 = vcmp.eq.s32.totalorder %v5650_v16, 0  ;;  %v1841_v25 = vshll.u32 %v5593_v27, %v1839_v55  ;;  %v1842_v52 = vshrl.u32 %v1824_v43, %v1840_v5  ;;  %v1845_v62 = vadd.s32 127, %v1844_v11 }
 0x157   :  { %v1931_v10 = vadd.s32 %v1930_v22, %v1926_v23  ;;  %vm2377_vm7 = vcmp.lt.s32.totalorder %v5650_v16, 2  ;;  %v1377_v0 = vshrl.u32 %v8768_v24, %v5072_v30  ;;  %v1380_v60 = vshrl.u32 %v8770_v7, %v5072_v30 }
 0x158   :  { %v1382_v6 = vshll.u32 %v8770_v7, %v4983_v33  ;;  %v1383_v4 = vshrl.u32 %v8771_v49, %v5072_v30  ;;  %vm2375_vm8 = vweird.f32 %v4668_v44  ;;  %v1843_v27 = vor.u32 %v1842_v52, %v1841_v25 }
 0x159   :  { %v1846_v57 = vshll.u32 %v1845_v62, 23  ;;  %v1932_v63 = vadd.s32 536870912, %v1931_v10  ;;  %v1373_v18 = vshll.u32 %v8769_v19, %v4983_v33  ;;  %v1376_v29 = vshll.u32 %v8767_v20, %v4983_v33 }
 0x15a   :  { %v1379_v1 = vshll.u32 %v8768_v24, %v4983_v33  ;;  %v1384_v47 = vor.u32 %v1383_v4, %v1382_v6  ;;  %v1386_v41 = vshrl.u32 %v8772_v48, %v5072_v30  ;;  %v1363_v46 = vand.u32 8388607, %v1356_v59 }
 0x15b   :  { %v1847_v8 = vor.u32 4788187, %v1846_v57  ;;  %v5703_v3 = vshrl.u32 %v1932_v63, 30  ;;  %v1375_v12 = vor.u32 %v1374_v45, %v1373_v18  ;;  %v4414_v42 = vpop.eup %4413  ;;  %v1850_v55 = vcvt.s32.f32 %v1843_v27 }
 0x15c   :  { %v1378_v13 = vor.u32 %v1377_v0, %v1376_v29  ;;  %v1381_v43 = vor.u32 %v1380_v60, %v1379_v1  ;;  %v1385_v5 = vshll.u32 %v8771_v49, %v4983_v33  ;;  %v4416_v11 = vpop.eup %4415  ;;  %v2382_v23 = vxor.u32 2147483648, %v4414_v42 }
 0x15d   :  { %v1848_v22 = vand.u32 2147483647, %v1847_v8  ;;  %v1934_v25 = vshll.u32 %v5703_v3, 30  ;;  %vm1391_vm9 = vcmp.lt.s32.totalorder %v4977_v15, 4  ;;  %vm543_vm10 = vcmp.gt.s32.totalorder %v5656_v2, 0 }
 0x15e   :  { %vm646_vm11 = vcmp.gt.s32.totalorder %v5664_v34, 0  ;;  %v2379_v52 = vxor.u32 2147483648, %v4416_v11  ;;  %v1372_v45 = vshrl.u32 %v8769_v19, %v5072_v30  ;;  %v1387_v62 = vor.u32 %v1386_v41, %v1385_v5 }
 0x15f   :  { %v1397_v0 = vsel %vm1391_vm9, %v1384_v47, 920167782  ;;  %v2383_v33 = vsel %vm2381_vm5, %v2382_v23, %v4416_v11  ;;  %v1851_v60 = vmul.f32 %v1850_v55, %v1848_v22  ;;  %v5719_v6 = vsub.s32 %v1931_v10, %v1934_v25 }
 0x160   :  { %vm1388_vm12 = vcmp.lt.s32.totalorder %v4977_v15, 1  ;;  %v2380_v4 = vsel %vm2378_vm6, %v4414_v42, %v2379_v52  ;;  %v1364_v27 = vor.u32 8388608, %v1363_v46  ;;  %vm1390_vm13 = vcmp.lt.s32.totalorder %v4977_v15, 3 }
 0x161   :  { %v1396_v30 = vsel %vm1388_vm12, %v1375_v12, %v1378_v13  ;;  %v2384_v57 = vsel %vm2377_vm7, %v2380_v4, %v2383_v33  ;;  %v1852_v63 = vxor.u32 2147483648, %v1851_v60  ;;  %v1937_v18 = vsub.s32 0, %v5719_v6  ;;  %v8804_v4 = vld [vmem:[#allocation35_spill] sm:$0xff] }
 0x162   :  { %v1398_v10 = vsel %vm1390_vm13, %v1381_v43, %v1397_v0  ;;  %v2385_v29 = vsel %vm2375_vm8, nan, %v2384_v57  ;;  %v1393_v1 = vsel %vm1391_vm9, %v1381_v43, 2102212464  ;;  %v1400_v41 = vsel %vm1388_vm12, %v1378_v13, %v1381_v43 }
 0x163   :  { %v1401_v8 = vsel %vm1391_vm9, %v1387_v62, 1326507024  ;;  %4191 = vmatprep.subr.mxu1 %v2385_v29  ;;  %v1853_v16 = vsel %vm1770_vm1, %v1852_v63, %v1851_v60  ;;  %v4042_v46 = vmin.u32 %v1937_v18, %v5719_v6  ;;  %vm1389_vm14 = vcmp.lt.s32.totalorder %v4977_v15, 2 }
 0x164   :  { %v1392_v44 = vsel %vm1388_vm12, %v1372_v45, %v1375_v12  ;;  %4192 = vmatpush3.msra.mxu1 %v2385_v29  ;;  %v1856_v42 = vsel %vm5668_vm4, %v8790_v36, %v1853_v16  ;;  %v1399_v55 = vsel %vm1389_vm14, %v1396_v30, %v1398_v10  ;;  %v1402_v43 = vsel %vm1390_vm13, %v1384_v47, %v1401_v8 }
 0x165   :  { %v1404_v5 = vshll.u32 %v1364_v27, 8  ;;  %4417 = vcosq.f32 %v1856_v42  ;;  %v1939_v11 = vclz %v4042_v46  ;;  %v1394_v23 = vsel %vm1390_vm13, %v1378_v13, %v1393_v1 }
 0x166   :  { %v1403_v12 = vsel %vm1389_vm14, %v1400_v41, %v1402_v43  ;;  %4419 = vsinq.f32 %v1856_v42  ;;  %v1957_v22 = vsub.s32 4, %v5703_v3  ;;  %v5763_v45 = vmul.f32 %v4650_v35, %v8800_v54 }
 0x167   :  { %v5758_v25 = vmul.u32.u64.low %v1404_v5, %v1403_v12  ;;  %v5759_v52 = vmul.u32.u64.high %v1404_v5, %v1403_v12, %v5758_v25  ;;  %v4043_v47 = vadd.s32 4294967294, %v1939_v11  ;;  %v123_v13 = vand.u32 2139095040, %v5648_v14 }
 0x168   :  { %v5765_v62 = vmul.u32.u64.low %v1404_v5, %v1399_v55  ;;  %v5766_v0 = vmul.u32.u64.high %v1404_v5, %v1399_v55, %v5765_v62  ;;  %v5774_v33 = vand.u32 3, %v1857_v31  ;;  %v1395_v60 = vsel %vm1389_vm14, %v1392_v44, %v1394_v23 }
 0x169   :  { %v1459_v27 = vand.u32 2147483647, %v8804_v4  ;;  %v5782_v35 = vsel %vm543_vm10, %v5656_v2, 0  ;;  %v5787_v54 = vsel %vm646_vm11, %v5664_v34, 0  ;;  %vm1873_vm15 = vcmp.lt.s32.totalorder %v8798_v58, 0 }
 0x16a   :  { %vm4044_vm0 = vcmp.lt.s32.totalorder %v4043_v47, 0  ;;  %v1927_v39 = vadd.s32 %v5633_v9, %v5630_v51  ;;  %v5795_v37 = vsel %vm1873_vm15, %v1957_v22, %v5703_v3  ;;  %vm1413_vm1 = vc.u32 %v5759_v52, %v5765_v62 }
 0x16b   :  { %v1942_v15 = vsel %vm4044_vm0, 0, %v4043_v47  ;;  %v1411_v30 = vmul.u32 %v1404_v5, %v1395_v60  ;;  %v1414_v34 = vadd.s32 1, %v5766_v0  ;;  %vm1866_vm2 = vcmp.eq.s32.totalorder %v5774_v33, 2 }
 0x16c   :  { %v1943_v2 = vsub.s32 32, %v1942_v15  ;;  %v1947_v31 = vsub.s32 4294967266, %v1942_v15  ;;  %v5803_v57 = vand.u32 8388607, %v1459_v27  ;;  %v1476_v51 = vshll.u32 %v8769_v19, %v4988_v38 }
 0x16d   :  { %v1477_v9 = vshrl.u32 %v8767_v20, %v5075_v17  ;;  %v1480_v3 = vshrl.u32 %v8768_v24, %v5075_v17  ;;  %vm1863_vm3 = vcmp.eq.s32.totalorder %v5774_v33, 0  ;;  %v1944_v63 = vshll.u32 %v5719_v6, %v1942_v15  ;;  %v8807_v15 = vld [vmem:[#allocation57_spill] sm:$0xff] }
 0x16e   :  { %v1945_v18 = vshrl.u32 %v1927_v39, %v1943_v2  ;;  %v1948_v10 = vadd.s32 127, %v1947_v31  ;;  %v1415_v29 = vsel %vm1413_vm1, %v1414_v34, %v5766_v0  ;;  %vm1862_vm4 = vcmp.lt.s32.totalorder %v5774_v33, 2 }
 0x16f   :  { %v1416_v1 = vadd.s32 %v1415_v29, %v1411_v30  ;;  %v1483_v41 = vshrl.u32 %v8770_v7, %v5075_v17  ;;  %v1485_v8 = vshll.u32 %v8770_v7, %v4988_v38  ;;  %v1486_v16 = vshrl.u32 %v8771_v49, %v5075_v17 }
 0x170   :  { %vm1860_vm5 = vweird.f32 %v8790_v36  ;;  %v1946_v46 = vor.u32 %v1945_v18, %v1944_v63  ;;  %v1949_v6 = vshll.u32 %v1948_v10, 23  ;;  %v1479_v44 = vshll.u32 %v8767_v20, %v4988_v38 }
 0x171   :  { %v1489_v42 = vshrl.u32 %v8772_v48, %v5075_v17  ;;  %v1417_v55 = vadd.s32 536870912, %v1416_v1  ;;  %v1475_v43 = vshrl.u32 %v8769_v19, %v5075_v17  ;;  %v1482_v5 = vshll.u32 %v8768_v24, %v4988_v38 }
 0x172   :  { %v1487_v11 = vor.u32 %v1486_v16, %v1485_v8  ;;  %vm5832_vm6 = vcmp.le.f32.partialorder %v1871_v56, 0.7853982  ;;  %v1950_v12 = vor.u32 4788187, %v1949_v6  ;;  %v1478_v22 = vor.u32 %v1477_v9, %v1476_v51  ;;  %v4418_v0 = vpop.eup %4417 }
 0x173   :  { %v1481_v25 = vor.u32 %v1480_v3, %v1479_v44  ;;  %v1488_v47 = vshll.u32 %v8771_v49, %v4988_v38  ;;  %v1953_v60 = vcvt.s32.f32 %v1946_v46  ;;  %v5838_v39 = vshrl.u32 %v1417_v55, 30  ;;  %v4420_v2 = vpop.eup %4419 }
 0x174   :  { %v1484_v17 = vor.u32 %v1483_v41, %v1482_v5  ;;  %vm1494_vm7 = vcmp.lt.s32.totalorder %v8807_v15, 4  ;;  %v1867_v31 = vxor.u32 2147483648, %v4418_v0  ;;  %v1951_v30 = vand.u32 2147483647, %v1950_v12 }
 0x175   :  { %v1490_v56 = vor.u32 %v1489_v42, %v1488_v47  ;;  %v1500_v34 = vsel %vm1494_vm7, %v1487_v11, 920167782  ;;  %v1864_v63 = vxor.u32 2147483648, %v4420_v2  ;;  %v1419_v51 = vshll.u32 %v5838_v39, 30 }
 0x176   :  { %v1467_v9 = vor.u32 8388608, %v5803_v57  ;;  %vm1491_vm8 = vcmp.lt.s32.totalorder %v8807_v15, 1  ;;  %v1868_v38 = vsel %vm1866_vm2, %v1867_v31, %v4420_v2  ;;  %v1954_v3 = vmul.f32 %v1953_v60, %v1951_v30 }
 0x177   :  { %vm1493_vm9 = vcmp.lt.s32.totalorder %v8807_v15, 3  ;;  %v1499_v18 = vsel %vm1491_vm8, %v1478_v22, %v1481_v25  ;;  %v1865_v10 = vsel %vm1863_vm3, %v4418_v0, %v1864_v63  ;;  %v5853_v29 = vsub.s32 %v1416_v1, %v1419_v51  ;;  %v8808_v51 = vld [vmem:[#allocation47_spill] sm:$0xff] }
 0x178   :  { %v1501_v41 = vsel %vm1493_vm9, %v1484_v17, %v1500_v34  ;;  %v1503_v57 = vsel %vm1491_vm8, %v1481_v25, %v1484_v17  ;;  %v1869_v8 = vsel %vm1862_vm4, %v1865_v10, %v1868_v38  ;;  %v1955_v16 = vxor.u32 2147483648, %v1954_v3 }
 0x179   :  { %v1496_v46 = vsel %vm1494_vm7, %v1484_v17, 2102212464  ;;  %v1504_v6 = vsel %vm1494_vm7, %v1490_v56, 1326507024  ;;  %v1870_v1 = vsel %vm1860_vm5, nan, %v1869_v8  ;;  %v1422_v44 = vsub.s32 0, %v5853_v29 }
 0x17a   :  { %vm1492_vm10 = vcmp.lt.s32.totalorder %v8807_v15, 2  ;;  %v1505_v42 = vsel %vm1493_vm9, %v1487_v11, %v1504_v6  ;;  %4171 = vmatprep.subr.mxu0 %v1870_v1  ;;  %v1956_v33 = vsel %vm1873_vm15, %v1955_v16, %v1954_v3  ;;  %v1507_v12 = vshll.u32 %v1467_v9, 8 }
 0x17b   :  { %v1502_v55 = vsel %vm1492_vm10, %v1499_v18, %v1501_v41  ;;  %v1506_v5 = vsel %vm1492_vm10, %v1503_v57, %v1505_v42  ;;  %v1959_v36 = vsel %vm5832_vm6, %v8798_v58, %v1956_v33  ;;  %4172 = vmatpush3.msra.mxu0 %v1870_v1  ;;  %v4022_v47 = vmin.u32 %v1422_v44, %v5853_v29 }
 0x17c   :  { %v1495_v11 = vsel %vm1491_vm8, %v1475_v43, %v1478_v22  ;;  %v1497_v0 = vsel %vm1493_vm9, %v1481_v25, %v1496_v46  ;;  %v1960_v60 = vsel %vm5832_vm6, 0, %v5795_v37  ;;  %4421 = vcosq.f32 %v1959_v36 }
 0x17d   :  { %v5888_v17 = vmul.u32.u64.low %v1507_v12, %v1506_v5  ;;  %v5889_v2 = vmul.u32.u64.high %v1507_v12, %v1506_v5, %v5888_v17  ;;  %4423 = vsinq.f32 %v1959_v36  ;;  %v1424_v31 = vclz %v4022_v47 }
 0x17e   :  { %v5891_v30 = vmul.u32.u64.low %v1507_v12, %v1502_v55  ;;  %v5892_v56 = vmul.u32.u64.high %v1507_v12, %v1502_v55, %v5891_v30  ;;  %v5896_v34 = vsub.s32 32, %v5644_v28  ;;  %v5899_v43 = vshrl.u32 %v5782_v35, 5 }
 0x17f   :  { %v226_v22 = vand.u32 2139095040, %v5763_v45  ;;  %v1498_v37 = vsel %vm1492_vm10, %v1495_v11, %v1497_v0  ;;  %v5905_v23 = vand.u32 31, %v5782_v35  ;;  %v5907_v25 = vand.u32 3, %v1960_v60 }
 0x180   :  { %v4023_v63 = vadd.s32 4294967294, %v1424_v31  ;;  %v944_v9 = vand.u32 2147483647, %v8808_v51  ;;  %v5911_v38 = vand.u32 31, %v5787_v54  ;;  %v5915_v3 = vshrl.u32 %v123_v13, 23 }
 0x181   :  { %vm1516_vm11 = vc.u32 %v5889_v2, %v5891_v30  ;;  %v962_v15 = vshrl.u32 %v8767_v20, %v5638_v21  ;;  %v1412_v35 = vadd.s32 %v5765_v62, %v5759_v52  ;;  %v1514_v18 = vmul.u32 %v1507_v12, %v1498_v37 }
 0x182   :  { %vm4024_vm12 = vcmp.lt.s32.totalorder %v4023_v63, 0  ;;  %v1517_v10 = vadd.s32 1, %v5892_v56  ;;  %v961_v57 = vshll.u32 %v8769_v19, %v5406_v40  ;;  %v964_v13 = vshll.u32 %v8767_v20, %v5406_v40 }
 0x183   :  { %v1427_v41 = vsel %vm4024_vm12, 0, %v4023_v63  ;;  %v965_v8 = vshrl.u32 %v8768_v24, %v5638_v21  ;;  %vm1969_vm13 = vcmp.eq.s32.totalorder %v5907_v25, 2  ;;  %v951_v62 = vand.u32 8388607, %v944_v9 }
 0x184   :  { %v1428_v16 = vsub.s32 32, %v1427_v41  ;;  %v1432_v46 = vsub.s32 4294967266, %v1427_v41  ;;  %v1518_v52 = vsel %vm1516_vm11, %v1517_v10, %v5892_v56  ;;  %vm1966_vm14 = vcmp.eq.s32.totalorder %v5907_v25, 0 }
 0x185   :  { %v1429_v6 = vshll.u32 %v5853_v29, %v1427_v41  ;;  %v1519_v1 = vadd.s32 %v1518_v52, %v1514_v18  ;;  %v963_v44 = vor.u32 %v962_v15, %v961_v57  ;;  %v968_v42 = vshrl.u32 %v8770_v7, %v5638_v21 }
 0x186   :  { %vm1965_vm15 = vcmp.lt.s32.totalorder %v5907_v25, 2  ;;  %v1430_v33 = vshrl.u32 %v1412_v35, %v1428_v16  ;;  %v1433_v55 = vadd.s32 127, %v1432_v46  ;;  %v970_v5 = vshll.u32 %v8770_v7, %v5406_v40 }
 0x187   :  { %v971_v12 = vshrl.u32 %v8771_v49, %v5638_v21  ;;  %vm1963_vm0 = vweird.f32 %v8798_v58  ;;  %v1520_v36 = vadd.s32 536870912, %v1519_v1  ;;  %v966_v47 = vor.u32 %v965_v8, %v964_v13 }
 0x188   :  { %v967_v29 = vshll.u32 %v8768_v24, %v5406_v40  ;;  %v974_v11 = vshrl.u32 %v8772_v48, %v5638_v21  ;;  %vm1358_vm1 = vcmp.lt.s32.totalorder %v8803_v61, 0  ;;  %v1431_v0 = vor.u32 %v1430_v33, %v1429_v6 }
 0x189   :  { %v1434_v60 = vshll.u32 %v1433_v55, 23  ;;  %v972_v17 = vor.u32 %v971_v12, %v970_v5  ;;  %v973_v31 = vshll.u32 %v8771_v49, %v5406_v40  ;;  %v1442_v56 = vsub.s32 4, %v5838_v39  ;;  %v4422_v35 = vpop.eup %4421 }
 0x18a   :  { %v5952_v37 = vshrl.u32 %v1520_v36, 30  ;;  %v952_v63 = vor.u32 8388608, %v951_v62  ;;  %v969_v15 = vor.u32 %v968_v42, %v967_v29  ;;  %vm5956_vm2 = vcmp.le.f32.partialorder %v1356_v59, 0.7853982  ;;  %v4424_v40 = vpop.eup %4423 }
 0x18b   :  { %v1435_v10 = vor.u32 4788187, %v1434_v60  ;;  %v975_v41 = vor.u32 %v974_v11, %v973_v31  ;;  %vm976_vm3 = vcmp.lt.s32.totalorder %v5401_v53, 1  ;;  %vm978_vm4 = vcmp.lt.s32.totalorder %v5401_v53, 3 }
 0x18c   :  { %v1970_v57 = vxor.u32 2147483648, %v4422_v35  ;;  %v1438_v13 = vcvt.s32.f32 %v1431_v0  ;;  %v1522_v8 = vshll.u32 %v5952_v37, 30  ;;  %vm979_vm5 = vcmp.lt.s32.totalorder %v5401_v53, 4 }
 0x18d   :  { %v1967_v16 = vxor.u32 2147483648, %v4424_v40  ;;  %v1436_v46 = vand.u32 2147483647, %v1435_v10  ;;  %v984_v59 = vsel %vm976_vm3, %v963_v44, %v966_v47  ;;  %v985_v52 = vsel %vm979_vm5, %v972_v17, 920167782 }
 0x18e   :  { %v1971_v62 = vsel %vm1969_vm13, %v1970_v57, %v4424_v40  ;;  %v5970_v6 = vsub.s32 %v1519_v1, %v1522_v8  ;;  %v960_v42 = vshrl.u32 %v8769_v19, %v5638_v21  ;;  %v986_v33 = vsel %vm978_vm4, %v969_v15, %v985_v52 }
 0x18f   :  { %v1968_v55 = vsel %vm1966_vm14, %v4422_v35, %v1967_v16  ;;  %v1439_v5 = vmul.f32 %v1438_v13, %v1436_v46  ;;  %vm977_vm6 = vcmp.lt.s32.totalorder %v5401_v53, 2  ;;  %v981_v12 = vsel %vm979_vm5, %v969_v15, 2102212464 }
 0x190   :  { %v1972_v36 = vsel %vm1965_vm15, %v1968_v55, %v1971_v62  ;;  %v1525_v1 = vsub.s32 0, %v5970_v6  ;;  %v987_v21 = vsel %vm977_vm6, %v984_v59, %v986_v33  ;;  %v988_v29 = vsel %vm976_vm3, %v966_v47, %v969_v15 }
 0x191   :  { %v1973_v11 = vsel %vm1963_vm0, nan, %v1972_v36  ;;  %v1440_v0 = vxor.u32 2147483648, %v1439_v5  ;;  %v989_v60 = vsel %vm979_vm5, %v975_v41, 1326507024  ;;  %v992_v31 = vshll.u32 %v952_v63, 8 }
 0x192   :  { %4193 = vmatprep.subr.mxu1 %v1973_v11  ;;  %v1443_v25 = vsel %vm1358_vm1, %v1442_v56, %v5838_v39  ;;  %v4026_v35 = vmin.u32 %v1525_v1, %v5970_v6  ;;  %v980_v10 = vsel %vm976_vm3, %v960_v42, %v963_v44  ;;  %v982_v15 = vsel %vm978_vm4, %v966_v47, %v981_v12  ;;  %v8813_v12 = vld [vmem:[#allocation51_spill] sm:$0xff] }
 0x193   :  { %4194 = vmatpush3.msra.mxu1 %v1973_v11  ;;  %v1441_v58 = vsel %vm1358_vm1, %v1440_v0, %v1439_v5  ;;  %v990_v63 = vsel %vm978_vm4, %v972_v17, %v989_v60  ;;  %v6004_v41 = vmul.u32.u64.low %v992_v31, %v987_v21  ;;  %v6005_v40 = vmul.u32.u64.high %v992_v31, %v987_v21, %v6004_v41 }
 0x194   :  { %v1444_v39 = vsel %vm5956_vm2, %v8803_v61, %v1441_v58  ;;  %v1527_v56 = vclz %v4026_v35  ;;  %v1545_v44 = vsub.s32 4, %v5952_v37  ;;  %v991_v47 = vsel %vm977_vm6, %v988_v29, %v990_v63 }
 0x195   :  { %v1445_v57 = vsel %vm5956_vm2, 0, %v1443_v25  ;;  %4425 = vcosq.f32 %v1444_v39  ;;  %v6016_v13 = vmul.u32.u64.low %v992_v31, %v991_v47  ;;  %v6017_v17 = vmul.u32.u64.high %v992_v31, %v991_v47, %v6016_v13 }
 0x196   :  { %v6020_v8 = vsub.s32 32, %v5905_v23  ;;  %4427 = vsinq.f32 %v1444_v39  ;;  %v4027_v16 = vadd.s32 4294967294, %v1527_v56  ;;  %v983_v46 = vsel %vm977_vm6, %v980_v10, %v982_v15 }
 0x197   :  { %v6025_v59 = vadd.s32 4294967169, %v5915_v3  ;;  %v227_v52 = vshrl.u32 %v226_v22, 23  ;;  %vm1461_vm7 = vcmp.lt.s32.totalorder %v8804_v4, 0  ;;  %v1002_v18 = vadd.s32 1, %v6005_v40 }
 0x198   :  { %v6031_v62 = vand.u32 3, %v1445_v57  ;;  %vm6035_vm8 = vcmp.le.f32.partialorder %v1459_v27, 0.7853982  ;;  %vm4028_vm9 = vcmp.lt.s32.totalorder %v4027_v16, 0  ;;  %v6042_v53 = vsel %vm1461_vm7, %v1545_v44, %v5952_v37 }
 0x199   :  { %v1515_v22 = vadd.s32 %v5891_v30, %v5889_v2  ;;  %v1530_v3 = vsel %vm4028_vm9, 0, %v4027_v16  ;;  %v999_v33 = vmul.u32 %v992_v31, %v983_v46  ;;  %vm1001_vm10 = vc.u32 %v6017_v17, %v6004_v41 }
 0x19a   :  { %v1531_v55 = vsub.s32 32, %v1530_v3  ;;  %v1535_v5 = vsub.s32 4294967266, %v1530_v3  ;;  %v1003_v27 = vsel %vm1001_vm10, %v1002_v18, %v6005_v40  ;;  %v1047_v36 = vand.u32 2147483647, %v8813_v12 }
 0x19b   :  { %v6050_v1 = vadd.s32 4294967169, %v227_v52  ;;  %v1548_v37 = vsel %vm6035_vm8, 0, %v6042_v53  ;;  %v1004_v21 = vadd.s32 %v1003_v27, %v999_v33  ;;  %v1065_v2 = vshrl.u32 %v8767_v20, %v5896_v34 }
 0x19c   :  { %vm1454_vm11 = vcmp.eq.s32.totalorder %v6031_v62, 2  ;;  %v1532_v30 = vshll.u32 %v5970_v6, %v1530_v3  ;;  %v1533_v29 = vshrl.u32 %v1515_v22, %v1531_v55  ;;  %v1536_v11 = vadd.s32 127, %v1535_v5 }
 0x19d   :  { %v1068_v0 = vshrl.u32 %v8768_v24, %v5896_v34  ;;  %vm1451_vm12 = vcmp.eq.s32.totalorder %v6031_v62, 0  ;;  %v1005_v60 = vadd.s32 536870912, %v1004_v21  ;;  %v1071_v31 = vshrl.u32 %v8770_v7, %v5896_v34 }
 0x19e   :  { %v1073_v25 = vshll.u32 %v8770_v7, %v5644_v28  ;;  %v1074_v35 = vshrl.u32 %v8771_v49, %v5896_v34  ;;  %vm1450_vm13 = vcmp.lt.s32.totalorder %v6031_v62, 2  ;;  %v1534_v6 = vor.u32 %v1533_v29, %v1532_v30 }
 0x19f   :  { %v1537_v10 = vshll.u32 %v1536_v11, 23  ;;  %v1054_v15 = vand.u32 8388607, %v1047_v36  ;;  %v1064_v58 = vshll.u32 %v8769_v19, %v5644_v28  ;;  %vm1448_vm14 = vweird.f32 %v8803_v61 }
 0x1a0   :  { %v1006_v63 = vshrl.u32 %v1005_v60, 30  ;;  %v1067_v40 = vshll.u32 %v8767_v20, %v5644_v28  ;;  %v1070_v39 = vshll.u32 %v8768_v24, %v5644_v28  ;;  %v1075_v56 = vor.u32 %v1074_v35, %v1073_v25 }
 0x1a1   :  { %v1538_v44 = vor.u32 4788187, %v1537_v10  ;;  %v1063_v47 = vshrl.u32 %v8769_v19, %v5896_v34  ;;  %v1066_v57 = vor.u32 %v1065_v2, %v1064_v58  ;;  %v1077_v13 = vshrl.u32 %v8772_v48, %v5896_v34 }
 0x1a2   :  { %v1007_v16 = vshll.u32 %v1006_v63, 30  ;;  %v1069_v46 = vor.u32 %v1068_v0, %v1067_v40  ;;  %v1072_v52 = vor.u32 %v1071_v31, %v1070_v39  ;;  %vm1082_vm15 = vcmp.lt.s32.totalorder %v5641_v26, 4  ;;  %v4426_v18 = vpop.eup %4425 }
 0x1a3   :  { %v1539_v22 = vand.u32 2147483647, %v1538_v44  ;;  %v1541_v3 = vcvt.s32.f32 %v1534_v6  ;;  %v1076_v33 = vshll.u32 %v8771_v49, %v5644_v28  ;;  %v1088_v55 = vsel %vm1082_vm15, %v1075_v56, 920167782  ;;  %v4428_v5 = vpop.eup %4427 }
 0x1a4   :  { %v1455_v27 = vxor.u32 2147483648, %v4426_v18  ;;  %v6087_v2 = vsub.s32 %v1004_v21, %v1007_v16  ;;  %v1055_v30 = vor.u32 8388608, %v1054_v15  ;;  %vm1079_vm0 = vcmp.lt.s32.totalorder %v5641_v26, 1 }
 0x1a5   :  { %v1452_v34 = vxor.u32 2147483648, %v4428_v5  ;;  %v1542_v29 = vmul.f32 %v1541_v3, %v1539_v22  ;;  %v1078_v11 = vor.u32 %v1077_v13, %v1076_v33  ;;  %vm1081_vm1 = vcmp.lt.s32.totalorder %v5641_v26, 3 }
 0x1a6   :  { %v1456_v0 = vsel %vm1454_vm11, %v1455_v27, %v4428_v5  ;;  %v1010_v28 = vsub.s32 0, %v6087_v2  ;;  %v1087_v60 = vsel %vm1079_vm0, %v1066_v57, %v1069_v46  ;;  %v1089_v21 = vsel %vm1081_vm1, %v1072_v52, %v1088_v55 }
 0x1a7   :  { %v1453_v31 = vsel %vm1451_vm12, %v4426_v18, %v1452_v34  ;;  %v1543_v25 = vxor.u32 2147483648, %v1542_v29  ;;  %v1030_v35 = vsub.s32 4, %v1006_v63  ;;  %vm1080_vm2 = vcmp.lt.s32.totalorder %v5641_v26, 2 }
 0x1a8   :  { %v1457_v6 = vsel %vm1450_vm13, %v1453_v31, %v1456_v0  ;;  %v4006_v10 = vmin.u32 %v1010_v28, %v6087_v2  ;;  %v1084_v15 = vsel %vm1082_vm15, %v1072_v52, 2102212464  ;;  %v1091_v58 = vsel %vm1079_vm0, %v1069_v46, %v1072_v52 }
 0x1a9   :  { %v1458_v40 = vsel %vm1448_vm14, nan, %v1457_v6  ;;  %v1544_v39 = vsel %vm1461_vm7, %v1543_v25, %v1542_v29  ;;  %v1090_v44 = vsel %vm1080_vm2, %v1087_v60, %v1089_v21  ;;  %v1092_v62 = vsel %vm1082_vm15, %v1078_v11, 1326507024 }
 0x1aa   :  { %4173 = vmatprep.subr.mxu0 %v1458_v40  ;;  %v1547_v13 = vsel %vm6035_vm8, %v8804_v4, %v1544_v39  ;;  %v1012_v16 = vclz %v4006_v10  ;;  %v1093_v52 = vsel %vm1081_vm1, %v1075_v56, %v1092_v62  ;;  %v1095_v61 = vshll.u32 %v1055_v30, 8 }
 0x1ab   :  { %4429 = vcosq.f32 %v1547_v13  ;;  %4174 = vmatpush3.msra.mxu0 %v1458_v40  ;;  %v1083_v18 = vsel %vm1079_vm0, %v1063_v47, %v1066_v57  ;;  %v1085_v22 = vsel %vm1081_vm1, %v1069_v46, %v1084_v15  ;;  %v1094_v3 = vsel %vm1080_vm2, %v1091_v58, %v1093_v52 }
 0x1ac   :  { %4431 = vsinq.f32 %v1547_v13  ;;  %v4007_v33 = vadd.s32 4294967294, %v1012_v16  ;;  %v6127_v55 = vmul.u32.u64.low %v1095_v61, %v1094_v3  ;;  %v6128_v5 = vmul.u32.u64.high %v1095_v61, %v1094_v3, %v6127_v55 }
 0x1ad   :  { %v6134_v56 = vand.u32 3, %v1548_v37  ;;  %vm946_vm3 = vcmp.lt.s32.totalorder %v8808_v51, 0  ;;  %v6137_v47 = vmul.u32.u64.low %v1095_v61, %v1090_v44  ;;  %v6138_v57 = vmul.u32.u64.high %v1095_v61, %v1090_v44, %v6137_v47 }
 0x1ae   :  { %vm4008_vm4 = vcmp.lt.s32.totalorder %v4007_v33, 0  ;;  %v6143_v46 = vsel %vm946_vm3, %v1030_v35, %v1006_v63  ;;  %v1086_v27 = vsel %vm1080_vm2, %v1083_v18, %v1085_v22  ;;  %v532_v42 = vand.u32 2147483647, %v5289_v50 }
 0x1af   :  { %v6149_v53 = vsub.s32 32, %v5911_v38  ;;  %v6152_v37 = vadd.s32 1, %v6025_v59  ;;  %v6155_v30 = vadd.s32 1, %v6050_v1  ;;  %v1015_v34 = vsel %vm4008_vm4, 0, %v4007_v33 }
 0x1b0   :  { %vm6159_vm5 = vcmp.le.f32.partialorder %v944_v9, 0.7853982  ;;  %v1000_v26 = vadd.s32 %v6004_v41, %v6017_v17  ;;  %v1016_v29 = vsub.s32 32, %v1015_v34  ;;  %v1020_v11 = vsub.s32 4294967266, %v1015_v34 }
 0x1b1   :  { %v1033_v59 = vsel %vm6159_vm5, 0, %v6143_v46  ;;  %v1102_v0 = vmul.u32 %v1095_v61, %v1086_v27  ;;  %vm1104_vm6 = vc.u32 %v6128_v5, %v6137_v47  ;;  %v1105_v1 = vadd.s32 1, %v6138_v57 }
 0x1b2   :  { %vm1557_vm7 = vcmp.eq.s32.totalorder %v6134_v56, 2  ;;  %v1017_v9 = vshll.u32 %v6087_v2, %v1015_v34  ;;  %v1018_v28 = vshrl.u32 %v1000_v26, %v1016_v29  ;;  %v1021_v60 = vadd.s32 127, %v1020_v11 }
 0x1b3   :  { %v6175_v41 = vand.u32 8388607, %v532_v42  ;;  %vm1554_vm8 = vcmp.eq.s32.totalorder %v6134_v56, 0  ;;  %v1106_v17 = vsel %vm1104_vm6, %v1105_v1, %v6138_v57  ;;  %v550_v21 = vshrl.u32 %v8767_v20, %v6020_v8 }
 0x1b4   :  { %v556_v31 = vshrl.u32 %v8770_v7, %v6020_v8  ;;  %v559_v25 = vshrl.u32 %v8771_v49, %v6020_v8  ;;  %vm1553_vm9 = vcmp.lt.s32.totalorder %v6134_v56, 2  ;;  %v1019_v2 = vor.u32 %v1018_v28, %v1017_v9 }
 0x1b5   :  { %v1022_v35 = vshll.u32 %v1021_v60, 23  ;;  %v1107_v6 = vadd.s32 %v1106_v17, %v1102_v0  ;;  %v558_v10 = vshll.u32 %v8770_v7, %v5905_v23  ;;  %vm1551_vm10 = vweird.f32 %v8804_v4 }
 0x1b6   :  { %v548_v15 = vshrl.u32 %v8769_v19, %v6020_v8  ;;  %v549_v58 = vshll.u32 %v8769_v19, %v5905_v23  ;;  %v553_v40 = vshrl.u32 %v8768_v24, %v6020_v8  ;;  %v562_v39 = vshrl.u32 %v8772_v48, %v6020_v8 }
 0x1b7   :  { %vm131_vm11 = vcmp.gt.s32.totalorder %v6152_v37, 0  ;;  %v1023_v44 = vor.u32 4788187, %v1022_v35  ;;  %v1108_v62 = vadd.s32 536870912, %v1107_v6  ;;  %v555_v13 = vshll.u32 %v8768_v24, %v5905_v23 }
 0x1b8   :  { %v560_v16 = vor.u32 %v559_v25, %v558_v10  ;;  %v540_v52 = vor.u32 8388608, %v6175_v41  ;;  %v551_v61 = vor.u32 %v550_v21, %v549_v58  ;;  %v552_v18 = vshll.u32 %v8767_v20, %v5905_v23  ;;  %v4430_v3 = vpop.eup %4429 }
 0x1b9   :  { %v561_v22 = vshll.u32 %v8771_v49, %v5905_v23  ;;  %v1024_v33 = vand.u32 2147483647, %v1023_v44  ;;  %v1026_v8 = vcvt.s32.f32 %v1019_v2  ;;  %v1109_v55 = vshrl.u32 %v1108_v62, 30  ;;  %v4432_v27 = vpop.eup %4431 }
 0x1ba   :  { %v557_v57 = vor.u32 %v556_v31, %v555_v13  ;;  %v1558_v34 = vxor.u32 2147483648, %v4430_v3  ;;  %v554_v26 = vor.u32 %v553_v40, %v552_v18  ;;  %vm567_vm12 = vcmp.lt.s32.totalorder %v5899_v43, 4 }
 0x1bb   :  { %v563_v29 = vor.u32 %v562_v39, %v561_v22  ;;  %vm234_vm13 = vcmp.gt.s32.totalorder %v6155_v30, 0  ;;  %v1555_v11 = vxor.u32 2147483648, %v4432_v27  ;;  %v1027_v0 = vmul.f32 %v1026_v8, %v1024_v33 }
 0x1bc   :  { %v1110_v1 = vshll.u32 %v1109_v55, 30  ;;  %v573_v9 = vsel %vm567_vm12, %v560_v16, 920167782  ;;  %v1559_v23 = vsel %vm1557_vm7, %v1558_v34, %v4432_v27  ;;  %vm564_vm14 = vcmp.lt.s32.totalorder %v5899_v43, 1  ;;  %v8816_v27 = vld [vmem:[#allocation16_spill] sm:$0xff] }
 0x1bd   :  { %vm565_vm15 = vcmp.lt.s32.totalorder %v5899_v43, 2  ;;  %vm566_vm0 = vcmp.lt.s32.totalorder %v5899_v43, 3  ;;  %v1556_v28 = vsel %vm1554_vm8, %v4430_v3, %v1555_v11  ;;  %v1028_v60 = vxor.u32 2147483648, %v1027_v0 }
 0x1be   :  { %v6216_v41 = vsub.s32 %v1107_v6, %v1110_v1  ;;  %v569_v17 = vsel %vm567_vm12, %v557_v57, 2102212464  ;;  %v1560_v21 = vsel %vm1553_vm9, %v1556_v28, %v1559_v23  ;;  %v572_v31 = vsel %vm564_vm14, %v551_v61, %v554_v26 }
 0x1bf   :  { %v574_v25 = vsel %vm566_vm0, %v557_v57, %v573_v9  ;;  %v577_v2 = vsel %vm567_vm12, %v563_v29, 1326507024  ;;  %v1561_v35 = vsel %vm1551_vm10, nan, %v1560_v21  ;;  %v1029_v6 = vsel %vm946_vm3, %v1028_v60, %v1027_v0 }
 0x1c0   :  { %v1113_v10 = vsub.s32 0, %v6216_v41  ;;  %v576_v56 = vsel %vm564_vm14, %v554_v26, %v557_v57  ;;  %4195 = vmatprep.subr.mxu1 %v1561_v35  ;;  %v1032_v58 = vsel %vm6159_vm5, %v8808_v51, %v1029_v6  ;;  %v568_v40 = vsel %vm564_vm14, %v548_v15, %v551_v61 }
 0x1c1   :  { %v570_v4 = vsel %vm566_vm0, %v554_v26, %v569_v17  ;;  %v578_v39 = vsel %vm566_vm0, %v560_v16, %v577_v2  ;;  %4196 = vmatpush3.msra.mxu1 %v1561_v35  ;;  %4433 = vcosq.f32 %v1032_v58  ;;  %v575_v62 = vsel %vm565_vm15, %v572_v31, %v574_v25 }
 0x1c2   :  { %v4010_v44 = vmin.u32 %v1113_v10, %v6216_v41  ;;  %v580_v13 = vshll.u32 %v540_v52, 8  ;;  %v6250_v18 = vsel %vm131_vm11, %v6152_v37, 0  ;;  %4435 = vsinq.f32 %v1032_v58 }
 0x1c3   :  { %v1133_v15 = vsub.s32 4, %v1109_v55  ;;  %v579_v61 = vsel %vm565_vm15, %v576_v56, %v578_v39  ;;  %v635_v33 = vand.u32 2147483647, %v5293_v32  ;;  %v6262_v52 = vand.u32 3, %v1033_v59 }
 0x1c4   :  { %v1115_v22 = vclz %v4010_v44  ;;  %v6254_v16 = vmul.u32.u64.low %v580_v13, %v579_v61  ;;  %v6255_v3 = vmul.u32.u64.high %v580_v13, %v579_v61, %v6254_v16  ;;  %v571_v37 = vsel %vm565_vm15, %v568_v40, %v570_v4 }
 0x1c5   :  { %v6266_v8 = vmul.u32.u64.low %v580_v13, %v575_v62  ;;  %v6267_v57 = vmul.u32.u64.high %v580_v13, %v575_v62, %v6266_v8  ;;  %v8817_v34 = vand.u32 2139095040, %v8816_v27  ;;  %v6275_v29 = vshrl.u32 %v5787_v54, 5 }
 0x1c6   :  { %vm1049_vm1 = vcmp.lt.s32.totalorder %v8813_v12, 0  ;;  %v4011_v63 = vadd.s32 4294967294, %v1115_v22  ;;  %v6279_v46 = vand.u32 31, %v6250_v18  ;;  %v6284_v43 = vsel %vm234_vm13, %v6155_v30, 0 }
 0x1c7   :  { %v6272_v26 = vshrl.u32 %v8817_v34, 23  ;;  %v1103_v59 = vadd.s32 %v6137_v47, %v6128_v5  ;;  %v6290_v11 = vsel %vm1049_vm1, %v1133_v15, %v1109_v55  ;;  %v587_v54 = vmul.u32 %v580_v13, %v571_v37 }
 0x1c8   :  { %vm4012_vm2 = vcmp.lt.s32.totalorder %v4011_v63, 0  ;;  %vm589_vm3 = vc.u32 %v6255_v3, %v6266_v8  ;;  %v6296_v0 = vand.u32 8388607, %v635_v33  ;;  %vm1042_vm4 = vcmp.eq.s32.totalorder %v6262_v52, 2 }
 0x1c9   :  { %v1118_v30 = vsel %vm4012_vm2, 0, %v4011_v63  ;;  %v590_v1 = vadd.s32 1, %v6267_v57  ;;  %v652_v5 = vshll.u32 %v8769_v19, %v5911_v38  ;;  %v653_v47 = vshrl.u32 %v8767_v20, %v6149_v53 }
 0x1ca   :  { %vm1039_vm5 = vcmp.eq.s32.totalorder %v6262_v52, 0  ;;  %v1119_v55 = vsub.s32 32, %v1118_v30  ;;  %v1123_v9 = vsub.s32 4294967266, %v1118_v30  ;;  %v655_v23 = vshll.u32 %v8767_v20, %v5911_v38 }
 0x1cb   :  { %v656_v28 = vshrl.u32 %v8768_v24, %v6149_v53  ;;  %vm1038_vm6 = vcmp.lt.s32.totalorder %v6262_v52, 2  ;;  %v591_v60 = vsel %vm589_vm3, %v590_v1, %v6267_v57  ;;  %v659_v17 = vshrl.u32 %v8770_v7, %v6149_v53 }
 0x1cc   :  { %v661_v21 = vshll.u32 %v8770_v7, %v5911_v38  ;;  %v662_v31 = vshrl.u32 %v8771_v49, %v6149_v53  ;;  %vm1036_vm7 = vweird.f32 %v8808_v51  ;;  %v1120_v25 = vshll.u32 %v6216_v41, %v1118_v30 }
 0x1cd   :  { %v1121_v2 = vshrl.u32 %v1103_v59, %v1119_v55  ;;  %v1124_v35 = vadd.s32 127, %v1123_v9  ;;  %v592_v6 = vadd.s32 %v591_v60, %v587_v54  ;;  %v658_v10 = vshll.u32 %v8768_v24, %v5911_v38 }
 0x1ce   :  { %v663_v56 = vor.u32 %v662_v31, %v661_v21  ;;  %v664_v58 = vshll.u32 %v8771_v49, %v5911_v38  ;;  %v665_v40 = vshrl.u32 %v8772_v48, %v6149_v53  ;;  %v643_v62 = vor.u32 8388608, %v6296_v0  ;;  %v4434_v13 = vpop.eup %4433 }
 0x1cf   :  { %v1122_v4 = vor.u32 %v1121_v2, %v1120_v25  ;;  %v1125_v39 = vshll.u32 %v1124_v35, 23  ;;  %v593_v44 = vadd.s32 536870912, %v592_v6  ;;  %v654_v41 = vor.u32 %v653_v47, %v652_v5  ;;  %v4436_v16 = vpop.eup %4435 }
 0x1d0   :  { %v657_v15 = vor.u32 %v656_v28, %v655_v23  ;;  %v660_v61 = vor.u32 %v659_v17, %v658_v10  ;;  %v666_v22 = vor.u32 %v665_v40, %v664_v58  ;;  %v1043_v37 = vxor.u32 2147483648, %v4434_v13 }
 0x1d1   :  { %v1126_v57 = vor.u32 4788187, %v1125_v39  ;;  %v594_v34 = vshrl.u32 %v593_v44, 30  ;;  %vm670_vm8 = vcmp.lt.s32.totalorder %v6275_v29, 4  ;;  %v1040_v38 = vxor.u32 2147483648, %v4436_v16 }
 0x1d2   :  { %vm667_vm9 = vcmp.lt.s32.totalorder %v6275_v29, 1  ;;  %vm669_vm10 = vcmp.lt.s32.totalorder %v6275_v29, 3  ;;  %v676_v63 = vsel %vm670_vm8, %v663_v56, 920167782  ;;  %v1044_v59 = vsel %vm1042_vm4, %v1043_v37, %v4436_v16 }
 0x1d3   :  { %v1127_v54 = vand.u32 2147483647, %v1126_v57  ;;  %v1129_v0 = vcvt.s32.f32 %v1122_v4  ;;  %v595_v30 = vshll.u32 %v594_v34, 30  ;;  %v1041_v1 = vsel %vm1039_vm5, %v4434_v13, %v1040_v38 }
 0x1d4   :  { %v675_v5 = vsel %vm667_vm9, %v654_v41, %v657_v15  ;;  %v679_v47 = vsel %vm667_vm9, %v657_v15, %v660_v61  ;;  %v680_v55 = vsel %vm670_vm8, %v666_v22, 1326507024  ;;  %v1045_v9 = vsel %vm1038_vm6, %v1041_v1, %v1044_v59  ;;  %v8820_v22 = vld [vmem:[#allocation56_spill] sm:$0xff] }
 0x1d5   :  { %v1130_v23 = vmul.f32 %v1129_v0, %v1127_v54  ;;  %v6343_v28 = vsub.s32 %v592_v6, %v595_v30  ;;  %v677_v60 = vsel %vm669_vm10, %v660_v61, %v676_v63  ;;  %v1046_v17 = vsel %vm1036_vm7, nan, %v1045_v9 }
 0x1d6   :  { %vm6351_vm11 = vcmp.le.f32.partialorder %v1047_v36, 0.7853982  ;;  %v651_v31 = vshrl.u32 %v8769_v19, %v6149_v53  ;;  %vm668_vm12 = vcmp.lt.s32.totalorder %v6275_v29, 2  ;;  %4175 = vmatprep.subr.mxu0 %v1046_v17  ;;  %v672_v2 = vsel %vm670_vm8, %v660_v61, 2102212464 }
 0x1d7   :  { %v1131_v52 = vxor.u32 2147483648, %v1130_v23  ;;  %v598_v25 = vsub.s32 0, %v6343_v28  ;;  %v681_v51 = vsel %vm669_vm10, %v663_v56, %v680_v55  ;;  %v1136_v36 = vsel %vm6351_vm11, 0, %v6290_v11  ;;  %4176 = vmatpush3.msra.mxu0 %v1046_v17 }
 0x1d8   :  { %v678_v53 = vsel %vm668_vm12, %v675_v5, %v677_v60  ;;  %v682_v35 = vsel %vm668_vm12, %v679_v47, %v681_v51  ;;  %v683_v6 = vshll.u32 %v643_v62, 8  ;;  %v618_v40 = vsub.s32 4, %v594_v34 }
 0x1d9   :  { %v1132_v10 = vsel %vm1049_vm1, %v1131_v52, %v1130_v23  ;;  %v3990_v58 = vmin.u32 %v598_v25, %v6343_v28  ;;  %v671_v56 = vsel %vm667_vm9, %v651_v31, %v654_v41  ;;  %v673_v4 = vsel %vm669_vm10, %v657_v15, %v672_v2 }
 0x1da   :  { %v1135_v11 = vsel %vm6351_vm11, %v8813_v12, %v1132_v10  ;;  %v6380_v39 = vmul.u32.u64.low %v683_v6, %v682_v35  ;;  %v6381_v44 = vmul.u32.u64.high %v683_v6, %v682_v35, %v6380_v39  ;;  %v6388_v16 = vadd.s32 4294967169, %v8820_v22 }
 0x1db   :  { %4437 = vcosq.f32 %v1135_v11  ;;  %v600_v62 = vclz %v3990_v58  ;;  %v6383_v13 = vmul.u32.u64.low %v683_v6, %v678_v53  ;;  %v6384_v61 = vmul.u32.u64.high %v683_v6, %v678_v53, %v6383_v13 }
 0x1dc   :  { %4439 = vsinq.f32 %v1135_v11  ;;  %vm534_vm13 = vcmp.lt.s32.totalorder %v5289_v50, 0  ;;  %v120_v41 = vand.u32 2147483647, %v5648_v14  ;;  %v135_v37 = vsub.s32 32, %v6279_v46 }
 0x1dd   :  { %v3991_v15 = vadd.s32 4294967294, %v600_v62  ;;  %v6395_v57 = vsel %vm534_vm13, %v618_v40, %v594_v34  ;;  %v674_v38 = vsel %vm668_vm12, %v671_v56, %v673_v4  ;;  %v6400_v63 = vshrl.u32 %v6250_v18, 5 }
 0x1de   :  { %v6403_v59 = vand.u32 31, %v6284_v43  ;;  %v6405_v54 = vand.u32 3, %v1136_v36  ;;  %vm692_vm14 = vc.u32 %v6381_v44, %v6383_v13  ;;  %vm6411_vm15 = vcmp.le.f32.partialorder %v532_v42, 0.7853982 }
 0x1df   :  { %v588_v29 = vadd.s32 %v6266_v8, %v6255_v3  ;;  %vm3992_vm0 = vcmp.lt.s32.totalorder %v3991_v15, 0  ;;  %v693_v18 = vadd.s32 1, %v6384_v61  ;;  %v621_v30 = vsel %vm6411_vm15, 0, %v6395_v57 }
 0x1e0   :  { %v603_v34 = vsel %vm3992_vm0, 0, %v3991_v15  ;;  %v690_v1 = vmul.u32 %v683_v6, %v674_v38  ;;  %v6423_v5 = vand.u32 8388607, %v120_v41  ;;  %v138_v9 = vshrl.u32 %v8767_v20, %v135_v37 }
 0x1e1   :  { %v604_v42 = vsub.s32 32, %v603_v34  ;;  %v608_v47 = vsub.s32 4294967266, %v603_v34  ;;  %v694_v55 = vsel %vm692_vm14, %v693_v18, %v6384_v61  ;;  %vm1145_vm1 = vcmp.eq.s32.totalorder %v6405_v54, 2 }
 0x1e2   :  { %v605_v3 = vshll.u32 %v6343_v28, %v603_v34  ;;  %v695_v8 = vadd.s32 %v694_v55, %v690_v1  ;;  %v141_v23 = vshrl.u32 %v8768_v24, %v135_v37  ;;  %v144_v60 = vshrl.u32 %v8770_v7, %v135_v37 }
 0x1e3   :  { %vm1142_vm2 = vcmp.eq.s32.totalorder %v6405_v54, 0  ;;  %v606_v17 = vshrl.u32 %v588_v29, %v604_v42  ;;  %v609_v21 = vadd.s32 127, %v608_v47  ;;  %v146_v31 = vshll.u32 %v8770_v7, %v6279_v46 }
 0x1e4   :  { %v147_v52 = vshrl.u32 %v8771_v49, %v135_v37  ;;  %vm1141_vm3 = vcmp.lt.s32.totalorder %v6405_v54, 2  ;;  %v696_v25 = vadd.s32 536870912, %v695_v8  ;;  %v137_v28 = vshll.u32 %v8769_v19, %v6279_v46 }
 0x1e5   :  { %v143_v2 = vshll.u32 %v8768_v24, %v6279_v46  ;;  %v150_v51 = vshrl.u32 %v8772_v48, %v135_v37  ;;  %vm1139_vm4 = vweird.f32 %v8813_v12  ;;  %v607_v36 = vor.u32 %v606_v17, %v605_v3 }
 0x1e6   :  { %v610_v53 = vshll.u32 %v609_v21, 23  ;;  %v140_v35 = vshll.u32 %v8767_v20, %v6279_v46  ;;  %v148_v6 = vor.u32 %v147_v52, %v146_v31  ;;  %v6444_v10 = vshrl.u32 %v696_v25, 30 }
 0x1e7   :  { %v136_v58 = vshrl.u32 %v8769_v19, %v135_v37  ;;  %v145_v40 = vor.u32 %v144_v60, %v143_v2  ;;  %v149_v56 = vshll.u32 %v8771_v49, %v6279_v46  ;;  %v139_v4 = vor.u32 %v138_v9, %v137_v28 }
 0x1e8   :  { %v611_v11 = vor.u32 4788187, %v610_v53  ;;  %v142_v39 = vor.u32 %v141_v23, %v140_v35  ;;  %vm155_vm5 = vcmp.lt.s32.totalorder %v6400_v63, 4  ;;  %v4438_v62 = vpop.eup %4437  ;;  %v698_v61 = vshll.u32 %v6444_v10, 30 }
 0x1e9   :  { %v128_v22 = vor.u32 8388608, %v6423_v5  ;;  %v151_v15 = vor.u32 %v150_v51, %v149_v56  ;;  %v161_v38 = vsel %vm155_vm5, %v148_v6, 920167782  ;;  %v4440_v29 = vpop.eup %4439  ;;  %v1146_v37 = vxor.u32 2147483648, %v4438_v62 }
 0x1ea   :  { %v612_v18 = vand.u32 2147483647, %v611_v11  ;;  %v614_v34 = vcvt.s32.f32 %v607_v36  ;;  %vm152_vm6 = vcmp.lt.s32.totalorder %v6400_v63, 1  ;;  %v1143_v46 = vxor.u32 2147483648, %v4440_v29 }
 0x1eb   :  { %v6455_v1 = vsub.s32 %v695_v8, %v698_v61  ;;  %vm154_vm7 = vcmp.lt.s32.totalorder %v6400_v63, 3  ;;  %v157_v42 = vsel %vm155_vm5, %v145_v40, 2102212464  ;;  %v1147_v5 = vsel %vm1145_vm1, %v1146_v37, %v4440_v29 }
 0x1ec   :  { %v615_v47 = vmul.f32 %v614_v34, %v612_v18  ;;  %v160_v55 = vsel %vm152_vm6, %v139_v4, %v142_v39  ;;  %v162_v9 = vsel %vm154_vm7, %v145_v40, %v161_v38  ;;  %v1144_v3 = vsel %vm1142_vm2, %v4438_v62, %v1143_v46 }
 0x1ed   :  { %v701_v8 = vsub.s32 0, %v6455_v1  ;;  %v164_v23 = vsel %vm152_vm6, %v142_v39, %v145_v40  ;;  %v165_v60 = vsel %vm155_vm5, %v151_v15, 1326507024  ;;  %v1148_v17 = vsel %vm1141_vm3, %v1144_v3, %v1147_v5 }
 0x1ee   :  { %v616_v21 = vxor.u32 2147483648, %v615_v47  ;;  %vm153_vm8 = vcmp.lt.s32.totalorder %v6400_v63, 2  ;;  %v166_v31 = vsel %vm154_vm7, %v148_v6, %v165_v60  ;;  %v1149_v52 = vsel %vm1139_vm4, nan, %v1148_v17 }
 0x1ef   :  { %v3994_v25 = vmin.u32 %v701_v8, %v6455_v1  ;;  %v163_v28 = vsel %vm153_vm8, %v160_v55, %v162_v9  ;;  %v168_v2 = vshll.u32 %v128_v22, 8  ;;  %4197 = vmatprep.subr.mxu1 %v1149_v52  ;;  %v156_v51 = vsel %vm152_vm6, %v136_v58, %v139_v4 }
 0x1f0   :  { %v617_v54 = vsel %vm534_vm13, %v616_v21, %v615_v47  ;;  %v158_v36 = vsel %vm154_vm7, %v142_v39, %v157_v42  ;;  %v167_v12 = vsel %vm153_vm8, %v164_v23, %v166_v31  ;;  %4198 = vmatpush3.msra.mxu1 %v1149_v52  ;;  %v721_v56 = vsub.s32 4, %v6444_v10 }
 0x1f1   :  { %v620_v53 = vsel %vm6411_vm15, %v5289_v50, %v617_v54  ;;  %v703_v35 = vclz %v3994_v25  ;;  %v6494_v6 = vmul.u32.u64.low %v168_v2, %v167_v12  ;;  %v6495_v40 = vmul.u32.u64.high %v168_v2, %v167_v12, %v6494_v6 }
 0x1f2   :  { %4441 = vcosq.f32 %v620_v53  ;;  %v6498_v11 = vmul.u32.u64.low %v168_v2, %v163_v28  ;;  %v6499_v58 = vmul.u32.u64.high %v168_v2, %v163_v28, %v6498_v11  ;;  %v238_v4 = vsub.s32 32, %v6403_v59 }
 0x1f3   :  { %4443 = vsinq.f32 %v620_v53  ;;  %v3995_v39 = vadd.s32 4294967294, %v703_v35  ;;  %v159_v62 = vsel %vm153_vm8, %v156_v51, %v158_v36  ;;  %v6506_v61 = vshrl.u32 %v6284_v43, 5 }
 0x1f4   :  { %vm6510_vm9 = vcmp.le.f32.partialorder %v635_v33, 0.7853982  ;;  %vm637_vm10 = vcmp.lt.s32.totalorder %v5293_v32, 0  ;;  %v223_v15 = vand.u32 2147483647, %v5763_v45  ;;  %v6520_v38 = vand.u32 3, %v621_v30 }
 0x1f5   :  { %v691_v43 = vadd.s32 %v6383_v13, %v6381_v44  ;;  %vm3996_vm11 = vcmp.lt.s32.totalorder %v3995_v39, 0  ;;  %vm177_vm12 = vc.u32 %v6495_v40, %v6498_v11  ;;  %v6529_v63 = vsel %vm637_vm10, %v721_v56, %v6444_v10 }
 0x1f6   :  { %v706_v33 = vsel %vm3996_vm11, 0, %v3995_v39  ;;  %v175_v29 = vmul.u32 %v168_v2, %v159_v62  ;;  %v178_v0 = vadd.s32 1, %v6499_v58  ;;  %v240_v30 = vshll.u32 %v8769_v19, %v6403_v59 }
 0x1f7   :  { %v707_v37 = vsub.s32 32, %v706_v33  ;;  %v711_v57 = vsub.s32 4294967266, %v706_v33  ;;  %v241_v44 = vshrl.u32 %v8767_v20, %v238_v4  ;;  %v230_v18 = vand.u32 8388607, %v223_v15 }
 0x1f8   :  { %v179_v13 = vsel %vm177_vm12, %v178_v0, %v6499_v58  ;;  %v243_v34 = vshll.u32 %v8767_v20, %v6403_v59  ;;  %v244_v10 = vshrl.u32 %v8768_v24, %v238_v4  ;;  %vm630_vm13 = vcmp.eq.s32.totalorder %v6520_v38, 2 }
 0x1f9   :  { %v708_v46 = vshll.u32 %v6455_v1, %v706_v33  ;;  %v709_v42 = vshrl.u32 %v691_v43, %v707_v37  ;;  %v712_v5 = vadd.s32 127, %v711_v57  ;;  %v180_v47 = vadd.s32 %v179_v13, %v175_v29 }
 0x1fa   :  { %vm627_vm14 = vcmp.eq.s32.totalorder %v6520_v38, 0  ;;  %v247_v55 = vshrl.u32 %v8770_v7, %v238_v4  ;;  %v249_v9 = vshll.u32 %v8770_v7, %v6403_v59  ;;  %v250_v3 = vshrl.u32 %v8771_v49, %v238_v4 }
 0x1fb   :  { %v252_v8 = vshll.u32 %v8771_v49, %v6403_v59  ;;  %vm626_vm15 = vcmp.lt.s32.totalorder %v6520_v38, 2  ;;  %v710_v23 = vor.u32 %v709_v42, %v708_v46  ;;  %v713_v60 = vshll.u32 %v712_v5, 23 }
 0x1fc   :  { %v181_v1 = vadd.s32 536870912, %v180_v47  ;;  %v253_v17 = vshrl.u32 %v8772_v48, %v238_v4  ;;  %vm624_vm0 = vweird.f32 %v5289_v50  ;;  %v242_v21 = vor.u32 %v241_v44, %v240_v30 }
 0x1fd   :  { %v245_v31 = vor.u32 %v244_v10, %v243_v34  ;;  %v246_v52 = vshll.u32 %v8768_v24, %v6403_v59  ;;  %v251_v25 = vor.u32 %v250_v3, %v249_v9  ;;  %v714_v28 = vor.u32 4788187, %v713_v60 }
 0x1fe   :  { %v724_v2 = vsel %vm6510_vm9, 0, %v6529_v63  ;;  %v6558_v54 = vshrl.u32 %v181_v1, 30  ;;  %v254_v51 = vor.u32 %v253_v17, %v252_v8  ;;  %v231_v36 = vor.u32 8388608, %v230_v18  ;;  %v6612_v17 = vld [vmem:[%s8626_s1] sm:$0xff] }
 0x1ff   :  { %v239_v12 = vshrl.u32 %v8769_v19, %v238_v4  ;;  %v248_v53 = vor.u32 %v247_v55, %v246_v52  ;;  %vm255_vm1 = vcmp.lt.s32.totalorder %v6506_v61, 1  ;;  %v4442_v35 = vpop.eup %4441  ;;  %v715_v6 = vand.u32 2147483647, %v714_v28  ;;  %v8826_v28 = vld [vmem:[#allocation52_spill] sm:$0xff] }
 0x200   :  { %v717_v56 = vcvt.s32.f32 %v710_v23  ;;  %v183_v59 = vshll.u32 %v6558_v54, 30  ;;  %vm258_vm2 = vcmp.lt.s32.totalorder %v6506_v61, 4  ;;  %v4444_v58 = vpop.eup %4443  ;;  %v631_v39 = vxor.u32 2147483648, %v4442_v35 }
 0x201   :  { %vm257_vm3 = vcmp.lt.s32.totalorder %v6506_v61, 3  ;;  %v263_v62 = vsel %vm255_vm1, %v242_v21, %v245_v31  ;;  %v264_v4 = vsel %vm258_vm2, %v251_v25, 920167782  ;;  %v628_v43 = vxor.u32 2147483648, %v4444_v58 }
 0x202   :  { %v718_v33 = vmul.f32 %v717_v56, %v715_v6  ;;  %v6569_v63 = vsub.s32 %v180_v47, %v183_v59  ;;  %v268_v29 = vsel %vm258_vm2, %v254_v51, 1326507024  ;;  %v632_v0 = vsel %vm630_vm13, %v631_v39, %v4444_v58 }
 0x203   :  { %vm256_vm4 = vcmp.lt.s32.totalorder %v6506_v61, 2  ;;  %v265_v37 = vsel %vm257_vm3, %v248_v53, %v264_v4  ;;  %v267_v57 = vsel %vm255_vm1, %v245_v31, %v248_v53  ;;  %v629_v30 = vsel %vm627_vm14, %v4442_v35, %v628_v43  ;;  %v8830_v43 = vld [vmem:[#allocation7_spill] sm:$0xff] }
 0x204   :  { %v719_v44 = vxor.u32 2147483648, %v718_v33  ;;  %v186_v13 = vsub.s32 0, %v6569_v63  ;;  %v260_v18 = vsel %vm258_vm2, %v248_v53, 2102212464  ;;  %v633_v34 = vsel %vm626_vm15, %v629_v30, %v632_v0 }
 0x205   :  { %v259_v10 = vsel %vm255_vm1, %v239_v12, %v242_v21  ;;  %v266_v46 = vsel %vm256_vm4, %v263_v62, %v265_v37  ;;  %v269_v42 = vsel %vm257_vm3, %v251_v25, %v268_v29  ;;  %v634_v5 = vsel %vm624_vm0, nan, %v633_v34  ;;  %v8827_v12 = vld [vmem:[#allocation55_spill] sm:$0xff] }
 0x206   :  { %v720_v47 = vsel %vm637_vm10, %v719_v44, %v718_v33  ;;  %v3974_v55 = vmin.u32 %v186_v13, %v6569_v63  ;;  %v271_v9 = vshll.u32 %v231_v36, 8  ;;  %4177 = vmatprep.subr.mxu0 %v634_v5  ;;  %v206_v3 = vsub.s32 4, %v6558_v54  ;;  %v8831_v29 = vld [vmem:[#allocation27_spill] sm:$0xff]  ;;  %v8832_v13 = vld [vmem:[#allocation22_spill] sm:$0xff] }
 0x207   :  { %v723_v38 = vsel %vm6510_vm9, %v5293_v32, %v720_v47  ;;  %v261_v8 = vsel %vm257_vm3, %v245_v31, %v260_v18  ;;  %v270_v50 = vsel %vm256_vm4, %v267_v57, %v269_v42  ;;  %4178 = vmatpush3.msra.mxu0 %v634_v5  ;;  %v4033_v22 = vadd.s32 4294967169, %v6272_v26  ;;  %v8825_v31 = vld [vmem:[#allocation54_spill] sm:$0xff] }
 0x208   :  { %4445 = vcosq.f32 %v723_v38  ;;  %v188_v23 = vclz %v3974_v55  ;;  %v6606_v60 = vmul.u32.u64.low %v271_v9, %v270_v50  ;;  %v6607_v1 = vmul.u32.u64.high %v271_v9, %v270_v50, %v6606_v60 }
 0x209   :  { %4447 = vsinq.f32 %v723_v38  ;;  %v6615_v21 = vmul.u32.u64.low %v271_v9, %v266_v46  ;;  %v6616_v52 = vmul.u32.u64.high %v271_v9, %v266_v46, %v6615_v21  ;;  %v6620_v25 = vsub.s32 32, %v8825_v31 }
 0x20a   :  { %v6623_v51 = vshrl.u32 %v8826_v28, 5  ;;  %v3975_v36 = vadd.s32 4294967294, %v188_v23  ;;  %vm3484_vm5 = vcmask 523264   ;;  %v6626_v53 = vsub.s32 32, %v8827_v12 }
 0x20b   :  { %v6628_v35 = vand.u32 3, %v724_v2  ;;  %vm122_vm6 = vcmp.lt.s32.totalorder %v5648_v14, 0  ;;  %v262_v26 = vsel %vm256_vm4, %v259_v10, %v261_v8  ;;  %4181 = vmatprep.mubr.msk.f32.mxu0 %vm3484_vm5, %v6612_v17  ;;  %4203 = vmatprep.mubr.msk.f32.mxu1 %vm3484_vm5, %v6612_v17  ;;  %v6638_v6 = vadd.s32 1, %v6388_v16 }
 0x20c   :  { %vm3976_vm7 = vcmp.lt.s32.totalorder %v3975_v36, 0  ;;  %v6643_v2 = vsel %vm122_vm6, %v206_v3, %v6558_v54  ;;  %vm280_vm8 = vc.u32 %v6607_v1, %v6615_v21  ;;  %v6647_v61 = vadd.s32 1, %v4033_v22 }
 0x20d   :  { %vm6651_vm9 = vcmp.le.f32.partialorder %v120_v41, 0.7853982  ;;  %v191_v59 = vsel %vm3976_vm7, 0, %v3975_v36  ;;  %v281_v16 = vadd.s32 1, %v6616_v52  ;;  %v176_v58 = vadd.s32 %v6498_v11, %v6495_v40 }
 0x20e   :  { %v192_v39 = vsub.s32 32, %v191_v59  ;;  %v196_v54 = vsub.s32 4294967266, %v191_v59  ;;  %v278_v62 = vmul.u32 %v271_v9, %v262_v26  ;;  %vm733_vm10 = vcmp.eq.s32.totalorder %v6628_v35, 2 }
 0x20f   :  { %v209_v4 = vsel %vm6651_vm9, 0, %v6643_v2  ;;  %v282_v41 = vsel %vm280_vm8, %v281_v16, %v6616_v52  ;;  %v3210_v33 = vand.u32 2147483647, %v8830_v43  ;;  %v3228_v0 = vshrl.u32 %v8767_v20, %v8831_v29 }
 0x210   :  { %vm730_vm11 = vcmp.eq.s32.totalorder %v6628_v35, 0  ;;  %v193_v40 = vshll.u32 %v6569_v63, %v191_v59  ;;  %v194_v11 = vshrl.u32 %v176_v58, %v192_v39  ;;  %v197_v37 = vadd.s32 127, %v196_v54  ;;  %v8833_v58 = vld [vmem:[#allocation21_spill] sm:$0xff] }
 0x211   :  { %v283_v57 = vadd.s32 %v282_v41, %v278_v62  ;;  %vm729_vm12 = vcmp.lt.s32.totalorder %v6628_v35, 2  ;;  %v3231_v30 = vshrl.u32 %v8768_v24, %v8831_v29  ;;  %v3234_v44 = vshrl.u32 %v8770_v7, %v8831_v29 }
 0x212   :  { %v3236_v18 = vshll.u32 %v8770_v7, %v8832_v13  ;;  %v3237_v34 = vshrl.u32 %v8771_v49, %v8831_v29  ;;  %vm727_vm13 = vweird.f32 %v5293_v32  ;;  %v195_v63 = vor.u32 %v194_v11, %v193_v40 }
 0x213   :  { %v198_v10 = vshll.u32 %v197_v37, 23  ;;  %v284_v46 = vadd.s32 536870912, %v283_v57  ;;  %v3227_v42 = vshll.u32 %v8769_v19, %v8832_v13  ;;  %v3230_v5 = vshll.u32 %v8767_v20, %v8832_v13 }
 0x214   :  { %v3233_v47 = vshll.u32 %v8768_v24, %v8832_v13  ;;  %v3238_v55 = vor.u32 %v3237_v34, %v3236_v18  ;;  %v3240_v9 = vshrl.u32 %v8772_v48, %v8831_v29  ;;  %v3217_v8 = vand.u32 8388607, %v3210_v33 }
 0x215   :  { %v199_v38 = vor.u32 4788187, %v198_v10  ;;  %v6686_v3 = vshrl.u32 %v284_v46, 30  ;;  %v3229_v50 = vor.u32 %v3228_v0, %v3227_v42  ;;  %v4446_v23 = vpop.eup %4445  ;;  %v202_v60 = vcvt.s32.f32 %v195_v63 }
 0x216   :  { %v3232_v22 = vor.u32 %v3231_v30, %v3230_v5  ;;  %v3235_v52 = vor.u32 %v3234_v44, %v3233_v47  ;;  %v3239_v28 = vshll.u32 %v8771_v49, %v8832_v13  ;;  %v4448_v36 = vpop.eup %4447  ;;  %vm1573_vm14 = vcmp.gt.s32.totalorder %v6638_v6, 0 }
 0x217   :  { %v734_v26 = vxor.u32 2147483648, %v4446_v23  ;;  %v200_v59 = vand.u32 2147483647, %v199_v38  ;;  %v286_v16 = vshll.u32 %v6686_v3, 30  ;;  %vm3245_vm15 = vcmp.lt.s32.totalorder %v8833_v58, 4 }
 0x218   :  { %vm1676_vm0 = vcmp.gt.s32.totalorder %v6647_v61, 0  ;;  %v731_v39 = vxor.u32 2147483648, %v4448_v36  ;;  %v3226_v54 = vshrl.u32 %v8769_v19, %v8831_v29  ;;  %v3241_v62 = vor.u32 %v3240_v9, %v3239_v28 }
 0x219   :  { %v3251_v41 = vsel %vm3245_vm15, %v3238_v55, 920167782  ;;  %v735_v0 = vsel %vm733_vm10, %v734_v26, %v4448_v36  ;;  %v203_v40 = vmul.f32 %v202_v60, %v200_v59  ;;  %v6702_v11 = vsub.s32 %v283_v57, %v286_v16  ;;  %v8834_v36 = vld [vmem:[#allocation17_spill] sm:$0xff] }
 0x21a   :  { %vm3242_vm1 = vcmp.lt.s32.totalorder %v8833_v58, 1  ;;  %v732_v37 = vsel %vm730_vm11, %v4446_v23, %v731_v39  ;;  %v3218_v30 = vor.u32 8388608, %v3217_v8  ;;  %vm3244_vm2 = vcmp.lt.s32.totalorder %v8833_v58, 3 }
 0x21b   :  { %v3250_v29 = vsel %vm3242_vm1, %v3229_v50, %v3232_v22  ;;  %v736_v44 = vsel %vm729_vm12, %v732_v37, %v735_v0  ;;  %v204_v13 = vxor.u32 2147483648, %v203_v40  ;;  %v289_v18 = vsub.s32 0, %v6702_v11 }
 0x21c   :  { %v3252_v57 = vsel %vm3244_vm2, %v3235_v52, %v3251_v41  ;;  %v737_v34 = vsel %vm727_vm13, nan, %v736_v44  ;;  %vm3243_vm3 = vcmp.lt.s32.totalorder %v8833_v58, 2  ;;  %v3254_v63 = vsel %vm3242_vm1, %v3232_v22, %v3235_v52 }
 0x21d   :  { %v3255_v10 = vsel %vm3245_vm15, %v3241_v62, 1326507024  ;;  %4199 = vmatprep.subr.mxu1 %v737_v34  ;;  %v205_v35 = vsel %vm122_vm6, %v204_v13, %v203_v40  ;;  %v3978_v46 = vmin.u32 %v289_v18, %v6702_v11  ;;  %v3246_v42 = vsel %vm3242_vm1, %v3226_v54, %v3229_v50  ;;  %v8835_v54 = vld [vmem:[#allocation18_spill] sm:$0xff]  ;;  %v8840_v13 = vld [vmem:[#allocation28_spill] sm:$0xff] }
 0x21e   :  { %v3247_v32 = vsel %vm3245_vm15, %v3235_v52, 2102212464  ;;  %4200 = vmatpush3.msra.mxu1 %v737_v34  ;;  %v208_v5 = vsel %vm6651_vm9, %v5648_v14, %v205_v35  ;;  %v3253_v47 = vsel %vm3243_vm3, %v3250_v29, %v3252_v57  ;;  %v3256_v9 = vsel %vm3244_vm2, %v3238_v55, %v3255_v10  ;;  %v8839_v29 = vld [vmem:[#allocation23_spill] sm:$0xff] }
 0x21f   :  { %v3258_v38 = vshll.u32 %v3218_v30, 8  ;;  %4449 = vcosq.f32 %v208_v5  ;;  %v291_v8 = vclz %v3978_v46  ;;  %v309_v23 = vsub.s32 4, %v6686_v3 }
 0x220   :  { %v3257_v50 = vsel %vm3243_vm3, %v3254_v63, %v3256_v9  ;;  %4451 = vsinq.f32 %v208_v5  ;;  %v3248_v60 = vsel %vm3244_vm2, %v3232_v22, %v3247_v32  ;;  %v1153_v26 = vand.u32 2139095040, %v8834_v36 }
 0x221   :  { %v6741_v52 = vmul.u32.u64.low %v3258_v38, %v3257_v50  ;;  %v6742_v28 = vmul.u32.u64.high %v3258_v38, %v3257_v50, %v6741_v52  ;;  %v3979_v59 = vadd.s32 4294967294, %v291_v8  ;;  %v6752_v39 = vsel %vm1573_vm14, %v6638_v6, 0 }
 0x222   :  { %v6745_v16 = vmul.u32.u64.low %v3258_v38, %v3253_v47  ;;  %v6746_v55 = vmul.u32.u64.high %v3258_v38, %v3253_v47, %v6745_v16  ;;  %v1256_v62 = vand.u32 2139095040, %v8835_v54  ;;  %v6759_v22 = vand.u32 3, %v209_v4 }
 0x223   :  { %vm225_vm4 = vcmp.lt.s32.totalorder %v5763_v45, 0  ;;  %v6765_v41 = vsel %vm1676_vm0, %v6647_v61, 0  ;;  %vm3980_vm6 = vcmp.lt.s32.totalorder %v3979_v59, 0  ;;  %v3249_v56 = vsel %vm3243_vm3, %v3246_v42, %v3248_v60  ;;  %v8838_v61 = vld [vmem:[#allocation8_spill] sm:$0xff] }
 0x224   :  { %v6770_v6 = vsel %vm225_vm4, %v309_v23, %v6686_v3  ;;  %vm6776_vm7 = vcmp.le.f32.partialorder %v223_v15, 0.7853982  ;;  %v294_v4 = vsel %vm3980_vm6, 0, %v3979_v59  ;;  %vm3267_vm8 = vc.u32 %v6742_v28, %v6745_v16 }
 0x225   :  { %v8718_v0 = vand.u32 2147483647, %v8838_v61  ;;  %v279_v40 = vadd.s32 %v6615_v21, %v6607_v1  ;;  %v295_v3 = vsub.s32 32, %v294_v4  ;;  %v299_v37 = vsub.s32 4294967266, %v294_v4 }
 0x226   :  { %v3268_v58 = vadd.s32 1, %v6746_v55  ;;  %vm218_vm9 = vcmp.eq.s32.totalorder %v6759_v22, 2  ;;  %v312_v15 = vsel %vm6776_vm7, 0, %v6770_v6  ;;  %v3265_v30 = vmul.u32 %v3258_v38, %v3249_v56 }
 0x227   :  { %v3330_v44 = vshll.u32 %v8769_v19, %v8839_v29  ;;  %v3331_v18 = vshrl.u32 %v8767_v20, %v8840_v13  ;;  %vm215_vm10 = vcmp.eq.s32.totalorder %v6759_v22, 0  ;;  %v296_v1 = vshll.u32 %v6702_v11, %v294_v4 }
 0x228   :  { %v297_v21 = vshrl.u32 %v279_v40, %v295_v3  ;;  %v300_v57 = vadd.s32 127, %v299_v37  ;;  %v3269_v34 = vsel %vm3267_vm8, %v3268_v58, %v6746_v55  ;;  %vm214_vm11 = vcmp.lt.s32.totalorder %v6759_v22, 2 }
 0x229   :  { %v3270_v63 = vadd.s32 %v3269_v34, %v3265_v30  ;;  %v3320_v10 = vand.u32 8388607, %v8718_v0  ;;  %v3334_v35 = vshrl.u32 %v8768_v24, %v8840_v13  ;;  %v3340_v46 = vshrl.u32 %v8771_v49, %v8840_v13 }
 0x22a   :  { %vm212_vm12 = vweird.f32 %v5648_v14  ;;  %v298_v42 = vor.u32 %v297_v21, %v296_v1  ;;  %v301_v11 = vshll.u32 %v300_v57, 23  ;;  %v3337_v32 = vshrl.u32 %v8770_v7, %v8840_v13 }
 0x22b   :  { %v3339_v5 = vshll.u32 %v8770_v7, %v8839_v29  ;;  %v3271_v47 = vadd.s32 536870912, %v3270_v63  ;;  %v3329_v9 = vshrl.u32 %v8769_v19, %v8840_v13  ;;  %v3333_v38 = vshll.u32 %v8767_v20, %v8839_v29 }
 0x22c   :  { %v3343_v8 = vshrl.u32 %v8772_v48, %v8840_v13  ;;  %v302_v23 = vor.u32 4788187, %v301_v11  ;;  %v3332_v50 = vor.u32 %v3331_v18, %v3330_v44  ;;  %v3336_v60 = vshll.u32 %v8768_v24, %v8839_v29  ;;  %v4450_v59 = vpop.eup %4449  ;;  %v8841_v18 = vld [vmem:[#allocation26_spill] sm:$0xff] }
 0x22d   :  { %v3341_v52 = vor.u32 %v3340_v46, %v3339_v5  ;;  %v3272_v55 = vshrl.u32 %v3271_v47, 30  ;;  %v3321_v56 = vor.u32 8388608, %v3320_v10  ;;  %v3335_v4 = vor.u32 %v3334_v35, %v3333_v38  ;;  %v4452_v3 = vpop.eup %4451 }
 0x22e   :  { %v3342_v40 = vshll.u32 %v8771_v49, %v8839_v29  ;;  %v219_v37 = vxor.u32 2147483648, %v4450_v59  ;;  %v303_v58 = vand.u32 2147483647, %v302_v23  ;;  %v305_v30 = vcvt.s32.f32 %v298_v42 }
 0x22f   :  { %v3338_v1 = vor.u32 %v3337_v32, %v3336_v60  ;;  %v216_v21 = vxor.u32 2147483648, %v4452_v3  ;;  %vm3212_vm13 = vcmp.lt.s32.totalorder %v8830_v43, 0  ;;  %v3273_v44 = vshll.u32 %v3272_v55, 30 }
 0x230   :  { %v3344_v13 = vor.u32 %v3343_v8, %v3342_v40  ;;  %vm3348_vm14 = vcmp.lt.s32.totalorder %v8841_v18, 4  ;;  %v220_v57 = vsel %vm218_vm9, %v219_v37, %v4452_v3  ;;  %v306_v34 = vmul.f32 %v305_v30, %v303_v58 }
 0x231   :  { %vm3345_vm15 = vcmp.lt.s32.totalorder %v8841_v18, 1  ;;  %v3354_v29 = vsel %vm3348_vm14, %v3341_v52, 920167782  ;;  %v217_v10 = vsel %vm215_vm10, %v4450_v59, %v216_v21  ;;  %v6828_v35 = vsub.s32 %v3270_v63, %v3273_v44  ;;  %v6844_v63 = vld [vmem:[%s8626_s1 + $0x8] sm:$0xff]  ;;  %v6859_v59 = vld [vmem:[%s8626_s1 + $0x10] sm:$0xff] }
 0x232   :  { %vm3347_vm0 = vcmp.lt.s32.totalorder %v8841_v18, 3  ;;  %v3353_v46 = vsel %vm3345_vm15, %v3332_v50, %v3335_v4  ;;  %v221_v42 = vsel %vm214_vm11, %v217_v10, %v220_v57  ;;  %v307_v11 = vxor.u32 2147483648, %v306_v34 }
 0x233   :  { %v3350_v32 = vsel %vm3348_vm14, %v3338_v1, 2102212464  ;;  %v3355_v5 = vsel %vm3347_vm0, %v3338_v1, %v3354_v29  ;;  %v222_v47 = vsel %vm212_vm12, nan, %v221_v42  ;;  %v3276_v38 = vsub.s32 0, %v6828_v35 }
 0x234   :  { %v3357_v22 = vsel %vm3345_vm15, %v3335_v4, %v3338_v1  ;;  %v3358_v8 = vsel %vm3348_vm14, %v3344_v13, 1326507024  ;;  %4179 = vmatprep.subr.mxu0 %v222_v47  ;;  %v308_v23 = vsel %vm225_vm4, %v307_v11, %v306_v34  ;;  %v3296_v60 = vsub.s32 4, %v3272_v55 }
 0x235   :  { %vm3346_vm1 = vcmp.lt.s32.totalorder %v8841_v18, 2  ;;  %v3359_v14 = vsel %vm3347_vm0, %v3341_v52, %v3358_v8  ;;  %v311_v40 = vsel %vm6776_vm7, %v5763_v45, %v308_v23  ;;  %4180 = vmatpush3.msra.mxu0 %v222_v47  ;;  %v4094_v3 = vmin.u32 %v3276_v38, %v6828_v35  ;;  %v8844_v18 = vld [vmem:[#allocation11_spill] sm:$0xff] }
 0x236   :  { %v3356_v37 = vsel %vm3346_vm1, %v3353_v46, %v3355_v5  ;;  %v3361_v58 = vshll.u32 %v3321_v56, 8  ;;  %4453 = vcosq.f32 %v311_v40  ;;  %4182 = vmatmul.mubr.msk.f32.vlgmr.msra.gmra.mxu0 %vm3484_vm5, %v6844_v63  ;;  %v3349_v52 = vsel %vm3345_vm15, %v3329_v9, %v3332_v50  ;;  %v6883_v56 = vld [vmem:[%s8626_s1 + $0x18] sm:$0xff] }
 0x237   :  { %v3351_v30 = vsel %vm3347_vm0, %v3335_v4, %v3350_v32  ;;  %v3360_v1 = vsel %vm3346_vm1, %v3357_v22, %v3359_v14  ;;  %4455 = vsinq.f32 %v311_v40  ;;  %v3278_v21 = vclz %v4094_v3  ;;  %4184 = vmatprep.mubr.msk.f32.mxu0 %vm3484_vm5, %v6859_v59  ;;  %v8845_v32 = vld [vmem:[#allocation45_spill] sm:$0xff]  ;;  %v8846_v3 = vld [vmem:[#allocation39_spill] sm:$0xff] }
 0x238   :  { %v6875_v44 = vmul.u32.u64.low %v3361_v58, %v3360_v1  ;;  %v6876_v13 = vmul.u32.u64.high %v3361_v58, %v3360_v1, %v6875_v44  ;;  %v6886_v9 = vshrl.u32 %v6752_v39, 5  ;;  %v6890_v50 = vsel %vm3212_vm13, %v3296_v60, %v3272_v55 }
 0x239   :  { %v6892_v4 = vmul.u32.u64.low %v3361_v58, %v3356_v37  ;;  %v6893_v57 = vmul.u32.u64.high %v3361_v58, %v3356_v37, %v6892_v4  ;;  %v6897_v34 = vand.u32 31, %v6752_v39  ;;  %v6903_v29 = vand.u32 3, %v312_v15 }
 0x23a   :  { %v4095_v10 = vadd.s32 4294967294, %v3278_v21  ;;  %v3352_v46 = vsel %vm3346_vm1, %v3349_v52, %v3351_v30  ;;  %v6908_v55 = vshrl.u32 %v6765_v41, 5  ;;  %v6912_v42 = vshrl.u32 %v1153_v26, 23  ;;  %4185 = vmatmul.mubr.msk.f32.gmra.mxu0 %vm3484_vm5, %v6883_v56 }
 0x23b   :  { %v6916_v39 = vshrl.u32 %v1256_v62, 23  ;;  %vm6920_vm2 = vcmp.le.f32.partialorder %v3210_v33, 0.7853982  ;;  %v3266_v2 = vadd.s32 %v6745_v16, %v6742_v28  ;;  %vm3370_vm4 = vc.u32 %v6876_v13, %v6892_v4  ;;  %4225 = vmatprep.mubr.msk.f32.mxu0 %vm3484_vm5, %v6612_v17 }
 0x23c   :  { %vm4096_vm3 = vcmp.lt.s32.totalorder %v4095_v10, 0  ;;  %v3368_v62 = vmul.u32 %v3361_v58, %v3352_v46  ;;  %v3371_v15 = vadd.s32 1, %v6893_v57  ;;  %v8719_v11 = vand.u32 2147483647, %v8844_v18 }
 0x23d   :  { %v3281_v33 = vsel %vm4096_vm3, 0, %v4095_v10  ;;  %vm321_vm6 = vcmp.eq.s32.totalorder %v6903_v29, 2  ;;  %v2816_v5 = vshrl.u32 %v8767_v20, %v8845_v32  ;;  %v2819_v47 = vshrl.u32 %v8768_v24, %v8845_v32 }
 0x23e   :  { %v3282_v28 = vsub.s32 32, %v3281_v33  ;;  %v3286_v16 = vsub.s32 4294967266, %v3281_v33  ;;  %vm318_vm7 = vcmp.eq.s32.totalorder %v6903_v29, 0  ;;  %v3283_v38 = vshll.u32 %v6828_v35, %v3281_v33 }
 0x23f   :  { %v3372_v22 = vsel %vm3370_vm4, %v3371_v15, %v6893_v57  ;;  %v2822_v8 = vshrl.u32 %v8770_v7, %v8845_v32  ;;  %v2825_v23 = vshrl.u32 %v8771_v49, %v8845_v32  ;;  %vm317_vm8 = vcmp.lt.s32.totalorder %v6903_v29, 2 }
 0x240   :  { %v3284_v60 = vshrl.u32 %v3266_v2, %v3282_v28  ;;  %v3287_v14 = vadd.s32 127, %v3286_v16  ;;  %v3373_v40 = vadd.s32 %v3372_v22, %v3368_v62  ;;  %v2824_v37 = vshll.u32 %v8770_v7, %v8846_v3 }
 0x241   :  { %vm315_vm9 = vweird.f32 %v5763_v45  ;;  %v2815_v35 = vshll.u32 %v8769_v19, %v8846_v3  ;;  %v2818_v58 = vshll.u32 %v8767_v20, %v8846_v3  ;;  %v2821_v52 = vshll.u32 %v8768_v24, %v8846_v3 }
 0x242   :  { %v2828_v30 = vshrl.u32 %v8772_v48, %v8845_v32  ;;  %v3285_v1 = vor.u32 %v3284_v60, %v3283_v38  ;;  %v3288_v21 = vshll.u32 %v3287_v14, 23  ;;  %v3374_v44 = vadd.s32 536870912, %v3373_v40 }
 0x243   :  { %v2826_v57 = vor.u32 %v2825_v23, %v2824_v37  ;;  %v2805_v10 = vand.u32 8388607, %v8719_v11  ;;  %v2814_v46 = vshrl.u32 %v8769_v19, %v8845_v32  ;;  %v2817_v2 = vor.u32 %v2816_v5, %v2815_v35  ;;  %v4454_v62 = vpop.eup %4453  ;;  %v8847_v23 = vld [vmem:[#allocation42_spill] sm:$0xff] }
 0x244   :  { %v2827_v33 = vshll.u32 %v8771_v49, %v8846_v3  ;;  %v3289_v15 = vor.u32 4788187, %v3288_v21  ;;  %v3375_v28 = vshrl.u32 %v3374_v44, 30  ;;  %v2820_v16 = vor.u32 %v2819_v47, %v2818_v58  ;;  %v4456_v0 = vpop.eup %4455 }
 0x245   :  { %v2823_v22 = vor.u32 %v2822_v8, %v2821_v52  ;;  %v322_v38 = vxor.u32 2147483648, %v4454_v62  ;;  %v3292_v60 = vcvt.s32.f32 %v3285_v1  ;;  %vm2833_vm10 = vcmp.lt.s32.totalorder %v8847_v23, 4 }
 0x246   :  { %v2829_v14 = vor.u32 %v2828_v30, %v2827_v33  ;;  %v319_v37 = vxor.u32 2147483648, %v4456_v0  ;;  %v3290_v11 = vand.u32 2147483647, %v3289_v15  ;;  %v3376_v26 = vshll.u32 %v3375_v28, 30 }
 0x247   :  { %v2839_v32 = vsel %vm2833_vm10, %v2826_v57, 920167782  ;;  %v323_v5 = vsel %vm321_vm6, %v322_v38, %v4456_v0  ;;  %v2806_v3 = vor.u32 8388608, %v2805_v10  ;;  %vm2830_vm11 = vcmp.lt.s32.totalorder %v8847_v23, 1 }
 0x248   :  { %vm2832_vm12 = vcmp.lt.s32.totalorder %v8847_v23, 3  ;;  %v320_v47 = vsel %vm318_vm7, %v4454_v62, %v319_v37  ;;  %v3293_v8 = vmul.f32 %v3292_v60, %v3290_v11  ;;  %v6976_v35 = vsub.s32 %v3373_v40, %v3376_v26 }
 0x249   :  { %v2835_v58 = vsel %vm2833_vm10, %v2823_v22, 2102212464  ;;  %v324_v52 = vsel %vm317_vm8, %v320_v47, %v323_v5  ;;  %v2838_v0 = vsel %vm2830_vm11, %v2817_v2, %v2820_v16  ;;  %v2840_v30 = vsel %vm2832_vm12, %v2823_v22, %v2839_v32 }
 0x24a   :  { %v2843_v1 = vsel %vm2833_vm10, %v2829_v14, 1326507024  ;;  %v325_v11 = vsel %vm315_vm9, nan, %v324_v52  ;;  %v3294_v26 = vxor.u32 2147483648, %v3293_v8  ;;  %v3379_v40 = vsub.s32 0, %v6976_v35 }
 0x24b   :  { %v2842_v21 = vsel %vm2830_vm11, %v2820_v16, %v2823_v22  ;;  %4201 = vmatprep.subr.mxu1 %v325_v11  ;;  %vm2831_vm14 = vcmp.lt.s32.totalorder %v8847_v23, 2  ;;  %v2834_v29 = vsel %vm2830_vm11, %v2814_v46, %v2817_v2  ;;  %v2836_v44 = vsel %vm2832_vm12, %v2820_v16, %v2835_v58  ;;  %v8848_v16 = vld [vmem:[#allocation12_spill] sm:$0xff]  ;;  %v8856_v58 = vld [vmem:[#allocation9_spill] sm:$0xff] }
 0x24c   :  { %v2844_v10 = vsel %vm2832_vm12, %v2826_v57, %v2843_v1  ;;  %4202 = vmatpush3.msra.mxu1 %v325_v11  ;;  %v3295_v45 = vsel %vm3212_vm13, %v3294_v26, %v3293_v8  ;;  %v4098_v33 = vmin.u32 %v3379_v40, %v6976_v35  ;;  %v2841_v62 = vsel %vm2831_vm14, %v2838_v0, %v2840_v30  ;;  %v8854_v0 = vld [vmem:[#allocation46_spill] sm:$0xff] }
 0x24d   :  { %v2846_v15 = vshll.u32 %v2806_v3, 8  ;;  %4204 = vmatmul.mubr.msk.f32.vlgmr.msra.gmra.mxu1 %vm3484_vm5, %v6844_v63  ;;  %v3298_v46 = vsel %vm6920_vm2, %v8830_v43, %v3295_v45  ;;  %v3399_v2 = vsub.s32 4, %v3375_v28  ;;  %v2845_v57 = vsel %vm2831_vm14, %v2842_v21, %v2844_v10 }
 0x24e   :  { %v2901_v22 = vand.u32 2147483647, %v8848_v16  ;;  %4457 = vcosq.f32 %v3298_v46  ;;  %v3381_v38 = vclz %v4098_v33  ;;  %4206 = vmatprep.mubr.msk.f32.mxu1 %vm3484_vm5, %v6859_v59  ;;  %v2837_v63 = vsel %vm2831_vm14, %v2834_v29, %v2836_v44 }
 0x24f   :  { %v7013_v60 = vmul.u32.u64.low %v2846_v15, %v2845_v57  ;;  %v7014_v14 = vmul.u32.u64.high %v2846_v15, %v2845_v57, %v7013_v60  ;;  %4459 = vsinq.f32 %v3298_v46  ;;  %v7025_v5 = vadd.s32 4294967169, %v6912_v42 }
 0x250   :  { %v7020_v37 = vmul.u32.u64.low %v2846_v15, %v2841_v62  ;;  %v7021_v32 = vmul.u32.u64.high %v2846_v15, %v2841_v62, %v7020_v37  ;;  %v7028_v3 = vadd.s32 4294967169, %v6916_v39  ;;  %vm3315_vm13 = vcmp.lt.s32.totalorder %v8838_v61, 0 }
 0x251   :  { %v4099_v47 = vadd.s32 4294967294, %v3381_v38  ;;  %v8849_v59 = vsel %vm6920_vm2, 0, %v6890_v50  ;;  %v8850_v23 = vand.u32 2147483647, %v8838_v61  ;;  %v3369_v42 = vadd.s32 %v6892_v4, %v6876_v13  ;;  %4207 = vmatmul.mubr.msk.f32.gmra.mxu1 %vm3484_vm5, %v6883_v56 }
 0x252   :  { %v7035_v8 = vand.u32 3, %v8849_v59  ;;  %v7047_v39 = vsel %vm3315_vm13, %v3399_v2, %v3375_v28  ;;  %v2853_v50 = vmul.u32 %v2846_v15, %v2837_v63  ;;  %vm2855_vm1 = vc.u32 %v7014_v14, %v7020_v37  ;;  %4247 = vmatprep.mubr.msk.f32.mxu1 %vm3484_vm5, %v6612_v17  ;;  %v8853_v28 = vld [vmem:[#allocation40_spill] sm:$0xff] }
 0x253   :  { %vm7039_vm15 = vcmp.le.f32.partialorder %v8850_v23, 0.7853982  ;;  %vm4100_vm0 = vcmp.lt.s32.totalorder %v4099_v47, 0  ;;  %v7055_v6 = vand.u32 8388607, %v2901_v22  ;;  %v2856_v4 = vadd.s32 1, %v7021_v32 }
 0x254   :  { %v3384_v13 = vsel %vm4100_vm0, 0, %v4099_v47  ;;  %v2918_v52 = vshll.u32 %v8769_v19, %v8853_v28  ;;  %v2919_v56 = vshrl.u32 %v8767_v20, %v8854_v0  ;;  %v2921_v11 = vshll.u32 %v8767_v20, %v8853_v28 }
 0x255   :  { %v3385_v30 = vsub.s32 32, %v3384_v13  ;;  %v3389_v1 = vsub.s32 4294967266, %v3384_v13  ;;  %v2922_v26 = vshrl.u32 %v8768_v24, %v8854_v0  ;;  %v2857_v40 = vsel %vm2855_vm1, %v2856_v4, %v7021_v32 }
 0x256   :  { %v2925_v17 = vshrl.u32 %v8770_v7, %v8854_v0  ;;  %v2927_v21 = vshll.u32 %v8770_v7, %v8853_v28  ;;  %v2928_v29 = vshrl.u32 %v8771_v49, %v8854_v0  ;;  %vm3305_vm2 = vcmp.eq.s32.totalorder %v7035_v8, 0 }
 0x257   :  { %v3386_v44 = vshll.u32 %v6976_v35, %v3384_v13  ;;  %v3387_v10 = vshrl.u32 %v3369_v42, %v3385_v30  ;;  %v3390_v45 = vadd.s32 127, %v3389_v1  ;;  %v2858_v33 = vadd.s32 %v2857_v40, %v2853_v50  ;;  %v8855_v50 = vld [vmem:[#allocation43_spill] sm:$0xff] }
 0x258   :  { %vm3304_vm3 = vcmp.lt.s32.totalorder %v7035_v8, 2  ;;  %v2924_v62 = vshll.u32 %v8768_v24, %v8853_v28  ;;  %v2929_v15 = vor.u32 %v2928_v29, %v2927_v21  ;;  %v2930_v46 = vshll.u32 %v8771_v49, %v8853_v28 }
 0x259   :  { %v2931_v2 = vshrl.u32 %v8772_v48, %v8854_v0  ;;  %vm3302_vm4 = vweird.f32 %v8830_v43  ;;  %vm3308_vm6 = vcmp.eq.s32.totalorder %v7035_v8, 2  ;;  %v3388_v35 = vor.u32 %v3387_v10, %v3386_v44 }
 0x25a   :  { %v3391_v57 = vshll.u32 %v3390_v45, 23  ;;  %v2859_v38 = vadd.s32 536870912, %v2858_v33  ;;  %v2920_v60 = vor.u32 %v2919_v56, %v2918_v52  ;;  %v2923_v63 = vor.u32 %v2922_v26, %v2921_v11 }
 0x25b   :  { %v2926_v32 = vor.u32 %v2925_v17, %v2924_v62  ;;  %v2932_v47 = vor.u32 %v2931_v2, %v2930_v46  ;;  %v3402_v23 = vsel %vm7039_vm15, 0, %v7047_v39  ;;  %vm2936_vm7 = vcmp.lt.s32.totalorder %v8855_v50, 4  ;;  %v4458_v13 = vpop.eup %4457 }
 0x25c   :  { %v3392_v59 = vor.u32 4788187, %v3391_v57  ;;  %v2860_v42 = vshrl.u32 %v2859_v38, 30  ;;  %v2909_v4 = vor.u32 8388608, %v7055_v6  ;;  %vm2933_vm8 = vcmp.lt.s32.totalorder %v8855_v50, 1  ;;  %v4460_v52 = vpop.eup %4459 }
 0x25d   :  { %vm2935_vm9 = vcmp.lt.s32.totalorder %v8855_v50, 3  ;;  %v2942_v28 = vsel %vm2936_vm7, %v2929_v15, 920167782  ;;  %v3309_v56 = vxor.u32 2147483648, %v4458_v13  ;;  %v3395_v1 = vcvt.s32.f32 %v3388_v35 }
 0x25e   :  { %v3393_v30 = vand.u32 2147483647, %v3392_v59  ;;  %v2861_v11 = vshll.u32 %v2860_v42, 30  ;;  %v3306_v26 = vxor.u32 2147483648, %v4460_v52  ;;  %v2941_v39 = vsel %vm2933_vm8, %v2920_v60, %v2923_v63 }
 0x25f   :  { %v2945_v40 = vsel %vm2933_vm8, %v2923_v63, %v2926_v32  ;;  %v2946_v6 = vsel %vm2936_vm7, %v2932_v47, 1326507024  ;;  %v3310_v17 = vsel %vm3308_vm6, %v3309_v56, %v4460_v52  ;;  %v2943_v44 = vsel %vm2935_vm9, %v2926_v32, %v2942_v28 }
 0x260   :  { %v3396_v21 = vmul.f32 %v3395_v1, %v3393_v30  ;;  %v7103_v29 = vsub.s32 %v2858_v33, %v2861_v11  ;;  %v3307_v10 = vsel %vm3305_vm2, %v4458_v13, %v3306_v26  ;;  %v2917_v45 = vshrl.u32 %v8769_v19, %v8854_v0 }
 0x261   :  { %v2938_v62 = vsel %vm2936_vm7, %v2926_v32, 2102212464  ;;  %v2947_v46 = vsel %vm2935_vm9, %v2929_v15, %v2946_v6  ;;  %v3311_v2 = vsel %vm3304_vm3, %v3307_v10, %v3310_v17  ;;  %vm2934_vm10 = vcmp.lt.s32.totalorder %v8855_v50, 2 }
 0x262   :  { %v3397_v33 = vxor.u32 2147483648, %v3396_v21  ;;  %v2864_v35 = vsub.s32 0, %v7103_v29  ;;  %v3312_v57 = vsel %vm3302_vm4, nan, %v3311_v2  ;;  %v2944_v0 = vsel %vm2934_vm10, %v2941_v39, %v2943_v44  ;;  %v8860_v44 = vld [vmem:[#allocation32_spill] sm:$0xff] }
 0x263   :  { %v2948_v38 = vsel %vm2934_vm10, %v2945_v40, %v2947_v46  ;;  %v2949_v32 = vshll.u32 %v2909_v4, 8  ;;  %4209 = vmatprep.subr.mxu0 %v3312_v57  ;;  %v2937_v47 = vsel %vm2933_vm8, %v2917_v45, %v2920_v60  ;;  %v2939_v43 = vsel %vm2935_vm9, %v2923_v63, %v2938_v62 }
 0x264   :  { %v3398_v8 = vsel %vm3315_vm13, %v3397_v33, %v3396_v21  ;;  %v4078_v15 = vmin.u32 %v2864_v35, %v7103_v29  ;;  %4210 = vmatpush3.msra.mxu0 %v3312_v57  ;;  %v2884_v13 = vsub.s32 4, %v2860_v42  ;;  %v7143_v60 = vand.u32 31, %v6765_v41 }
 0x265   :  { %v3401_v59 = vsel %vm7039_vm15, %v8838_v61, %v3398_v8  ;;  %v7135_v28 = vmul.u32.u64.low %v2949_v32, %v2948_v38  ;;  %v7136_v4 = vmul.u32.u64.high %v2949_v32, %v2948_v38, %v7135_v28  ;;  %v2940_v63 = vsel %vm2934_vm10, %v2937_v47, %v2939_v43 }
 0x266   :  { %4461 = vcosq.f32 %v3401_v59  ;;  %v2866_v52 = vclz %v4078_v15  ;;  %v7138_v56 = vmul.u32.u64.low %v2949_v32, %v2944_v0  ;;  %v7139_v30 = vmul.u32.u64.high %v2949_v32, %v2944_v0, %v7138_v56 }
 0x267   :  { %4463 = vsinq.f32 %v3401_v59  ;;  %v2386_v1 = vand.u32 2147483647, %v8856_v58  ;;  %v7149_v11 = vadd.s32 1, %v7025_v5  ;;  %v7152_v26 = vadd.s32 1, %v7028_v3 }
 0x268   :  { %vm2800_vm11 = vcmp.lt.s32.totalorder %v8844_v18, 0  ;;  %v4079_v39 = vadd.s32 4294967294, %v2866_v52  ;;  %v7155_v40 = vand.u32 3, %v3402_v23  ;;  %v8857_v41 = vand.u32 2147483647, %v8844_v18 }
 0x269   :  { %v2854_v50 = vadd.s32 %v7020_v37, %v7014_v14  ;;  %vm2958_vm14 = vc.u32 %v7136_v4, %v7138_v56  ;;  %v7169_v5 = vsel %vm2800_vm11, %v2884_v13, %v2860_v42  ;;  %v2956_v3 = vmul.u32 %v2949_v32, %v2940_v63  ;;  %v8861_v14 = vld [vmem:[#allocation37_spill] sm:$0xff] }
 0x26a   :  { %vm7159_vm12 = vcmp.le.f32.partialorder %v8857_v41, 0.7853982  ;;  %vm4080_vm13 = vcmp.lt.s32.totalorder %v4079_v39, 0  ;;  %v2959_v23 = vadd.s32 1, %v7139_v30  ;;  %v7174_v21 = vand.u32 8388607, %v2386_v1 }
 0x26b   :  { %v2869_v17 = vsel %vm4080_vm13, 0, %v4079_v39  ;;  %v2403_v10 = vshll.u32 %v8769_v19, %v8860_v44  ;;  %v2404_v37 = vshrl.u32 %v8767_v20, %v8861_v14  ;;  %v2406_v42 = vshll.u32 %v8767_v20, %v8860_v44 }
 0x26c   :  { %v2870_v45 = vsub.s32 32, %v2869_v17  ;;  %v2874_v62 = vsub.s32 4294967266, %v2869_v17  ;;  %v2960_v46 = vsel %vm2958_vm14, %v2959_v23, %v7139_v30  ;;  %v2871_v2 = vshll.u32 %v7103_v29, %v2869_v17 }
 0x26d   :  { %v2961_v33 = vadd.s32 %v2960_v46, %v2956_v3  ;;  %v2409_v35 = vshll.u32 %v8768_v24, %v8860_v44  ;;  %v2412_v57 = vshll.u32 %v8770_v7, %v8860_v44  ;;  %v2410_v32 = vshrl.u32 %v8770_v7, %v8861_v14 }
 0x26e   :  { %v2872_v0 = vshrl.u32 %v2854_v50, %v2870_v45  ;;  %v2875_v38 = vadd.s32 127, %v2874_v62  ;;  %v2413_v8 = vshrl.u32 %v8771_v49, %v8861_v14  ;;  %vm3407_vm15 = vcmp.lt.s32.totalorder %v7155_v40, 2  ;;  %v8862_v62 = vld [vmem:[#allocation36_spill] sm:$0xff] }
 0x26f   :  { %v2962_v15 = vadd.s32 536870912, %v2961_v33  ;;  %v2407_v29 = vshrl.u32 %v8768_v24, %v8861_v14  ;;  %v2415_v47 = vshll.u32 %v8771_v49, %v8860_v44  ;;  %v2416_v43 = vshrl.u32 %v8772_v48, %v8861_v14 }
 0x270   :  { %vm3405_vm0 = vweird.f32 %v8838_v61  ;;  %vm3408_vm1 = vcmp.eq.s32.totalorder %v7155_v40, 0  ;;  %v2873_v59 = vor.u32 %v2872_v0, %v2871_v2  ;;  %v2876_v13 = vshll.u32 %v2875_v38, 23 }
 0x271   :  { %v2414_v28 = vor.u32 %v2413_v8, %v2412_v57  ;;  %vm3411_vm2 = vcmp.eq.s32.totalorder %v7155_v40, 2  ;;  %v2887_v52 = vsel %vm7159_vm12, 0, %v7169_v5  ;;  %v2963_v30 = vshrl.u32 %v2962_v15, 30 }
 0x272   :  { %v2402_v63 = vshrl.u32 %v8769_v19, %v8861_v14  ;;  %v2877_v39 = vor.u32 4788187, %v2876_v13  ;;  %v2394_v41 = vor.u32 8388608, %v7174_v21  ;;  %v2405_v50 = vor.u32 %v2404_v37, %v2403_v10 }
 0x273   :  { %v2411_v3 = vor.u32 %v2410_v32, %v2409_v35  ;;  %v4462_v23 = vpop.eup %4461  ;;  %v2964_v17 = vshll.u32 %v2963_v30, 30  ;;  %v2408_v44 = vor.u32 %v2407_v29, %v2406_v42  ;;  %v2417_v45 = vor.u32 %v2416_v43, %v2415_v47 }
 0x274   :  { %vm2421_vm3 = vcmp.lt.s32.totalorder %v8862_v62, 4  ;;  %v4464_v46 = vpop.eup %4463  ;;  %v3412_v2 = vxor.u32 2147483648, %v4462_v23  ;;  %v2878_v57 = vand.u32 2147483647, %v2877_v39  ;;  %v2880_v0 = vcvt.s32.f32 %v2873_v59 }
 0x275   :  { %v2427_v5 = vsel %vm2421_vm3, %v2414_v28, 920167782  ;;  %v3409_v38 = vxor.u32 2147483648, %v4464_v46  ;;  %v7211_v14 = vsub.s32 %v2961_v33, %v2964_v17  ;;  %vm2418_vm4 = vcmp.lt.s32.totalorder %v8862_v62, 1 }
 0x276   :  { %vm2419_vm6 = vcmp.lt.s32.totalorder %v8862_v62, 2  ;;  %v3413_v21 = vsel %vm3411_vm2, %v3412_v2, %v4464_v46  ;;  %v2881_v10 = vmul.f32 %v2880_v0, %v2878_v57  ;;  %vm2420_vm7 = vcmp.lt.s32.totalorder %v8862_v62, 3 }
 0x277   :  { %v2423_v37 = vsel %vm2421_vm3, %v2411_v3, 2102212464  ;;  %v3410_v42 = vsel %vm3408_vm1, %v4462_v23, %v3409_v38  ;;  %v2967_v35 = vsub.s32 0, %v7211_v14  ;;  %v2426_v33 = vsel %vm2418_vm4, %v2405_v50, %v2408_v44 }
 0x278   :  { %v2428_v32 = vsel %vm2420_vm7, %v2411_v3, %v2427_v5  ;;  %v3414_v8 = vsel %vm3407_vm15, %v3410_v42, %v3413_v21  ;;  %v2882_v15 = vxor.u32 2147483648, %v2881_v10  ;;  %v2430_v29 = vsel %vm2418_vm4, %v2408_v44, %v2411_v3  ;;  %v8865_v21 = vld [vmem:[#allocation10_spill] sm:$0xff]  ;;  %v8867_v42 = vld [vmem:[#allocation41_spill] sm:$0xff] }
 0x279   :  { %v2431_v47 = vsel %vm2421_vm3, %v2417_v45, 1326507024  ;;  %v3415_v43 = vsel %vm3405_vm0, nan, %v3414_v8  ;;  %v4082_v59 = vmin.u32 %v2967_v35, %v7211_v14  ;;  %v2422_v13 = vsel %vm2418_vm4, %v2402_v63, %v2405_v50 }
 0x27a   :  { %v2424_v39 = vsel %vm2420_vm7, %v2408_v44, %v2423_v37  ;;  %4231 = vmatprep.subr.mxu1 %v3415_v43  ;;  %v2883_v40 = vsel %vm2800_vm11, %v2882_v15, %v2881_v10  ;;  %v2429_v3 = vsel %vm2419_vm6, %v2426_v33, %v2428_v32  ;;  %v2432_v23 = vsel %vm2420_vm7, %v2414_v28, %v2431_v47 }
 0x27b   :  { %v2434_v61 = vshll.u32 %v2394_v41, 8  ;;  %4232 = vmatpush3.msra.mxu1 %v3415_v43  ;;  %v2886_v17 = vsel %vm7159_vm12, %v8844_v18, %v2883_v40  ;;  %v2969_v63 = vclz %v4082_v59  ;;  %v2987_v50 = vsub.s32 4, %v2963_v30 }
 0x27c   :  { %v2433_v44 = vsel %vm2419_vm6, %v2430_v29, %v2432_v23  ;;  %4465 = vcosq.f32 %v2886_v17  ;;  %v2425_v45 = vsel %vm2419_vm6, %v2422_v13, %v2424_v39  ;;  %v7260_v6 = vand.u32 3, %v2887_v52 }
 0x27d   :  { %v7253_v46 = vmul.u32.u64.low %v2434_v61, %v2433_v44  ;;  %v7254_v2 = vmul.u32.u64.high %v2434_v61, %v2433_v44, %v7253_v46  ;;  %4467 = vsinq.f32 %v2886_v17  ;;  %v4083_v28 = vadd.s32 4294967294, %v2969_v63 }
 0x27e   :  { %v7256_v41 = vmul.u32.u64.low %v2434_v61, %v2429_v3  ;;  %v7257_v57 = vmul.u32.u64.high %v2434_v61, %v2429_v3, %v7256_v41  ;;  %vm7264_vm8 = vcmp.le.f32.partialorder %v2901_v22, 0.7853982  ;;  %vm2903_vm9 = vcmp.lt.s32.totalorder %v8848_v16, 0  ;;  %v8866_v22 = vld [vmem:[#allocation33_spill] sm:$0xff] }
 0x27f   :  { %v2957_v62 = vadd.s32 %v7138_v56, %v7136_v4  ;;  %vm4084_vm10 = vcmp.lt.s32.totalorder %v4083_v28, 0  ;;  %v7273_v5 = vsel %vm2903_vm9, %v2987_v50, %v2963_v30  ;;  %v2441_v38 = vmul.u32 %v2434_v61, %v2425_v45 }
 0x280   :  { %v2489_v52 = vand.u32 2147483647, %v8865_v21  ;;  %v2972_v10 = vsel %vm4084_vm10, 0, %v4083_v28  ;;  %vm2443_vm11 = vc.u32 %v7254_v2, %v7256_v41  ;;  %v2506_v37 = vshll.u32 %v8769_v19, %v8866_v22 }
 0x281   :  { %v2507_v35 = vshrl.u32 %v8767_v20, %v8867_v42  ;;  %v2973_v33 = vsub.s32 32, %v2972_v10  ;;  %v2977_v4 = vsub.s32 4294967266, %v2972_v10  ;;  %v2444_v56 = vadd.s32 1, %v7257_v57 }
 0x282   :  { %v2509_v30 = vshll.u32 %v8767_v20, %v8866_v22  ;;  %v2974_v32 = vshll.u32 %v7211_v14, %v2972_v10  ;;  %v2510_v8 = vshrl.u32 %v8768_v24, %v8867_v42  ;;  %v2512_v15 = vshll.u32 %v8768_v24, %v8866_v22 }
 0x283   :  { %v2513_v29 = vshrl.u32 %v8770_v7, %v8867_v42  ;;  %v2975_v47 = vshrl.u32 %v2957_v62, %v2973_v33  ;;  %v2978_v43 = vadd.s32 127, %v2977_v4  ;;  %v2445_v59 = vsel %vm2443_vm11, %v2444_v56, %v7257_v57 }
 0x284   :  { %v2515_v13 = vshll.u32 %v8770_v7, %v8866_v22  ;;  %vm2893_vm12 = vcmp.eq.s32.totalorder %v7260_v6, 0  ;;  %v2446_v39 = vadd.s32 %v2445_v59, %v2441_v38  ;;  %v2496_v14 = vand.u32 8388607, %v2489_v52 }
 0x285   :  { %v2516_v40 = vshrl.u32 %v8771_v49, %v8867_v42  ;;  %vm2892_vm14 = vcmp.lt.s32.totalorder %v7260_v6, 2  ;;  %v2976_v3 = vor.u32 %v2975_v47, %v2974_v32  ;;  %v2979_v23 = vshll.u32 %v2978_v43, 23 }
 0x286   :  { %v2518_v61 = vshll.u32 %v8771_v49, %v8866_v22  ;;  %v2519_v17 = vshrl.u32 %v8772_v48, %v8867_v42  ;;  %vm2890_vm13 = vweird.f32 %v8844_v18  ;;  %vm2896_vm15 = vcmp.eq.s32.totalorder %v7260_v6, 2  ;;  %v8868_v22 = vld [vmem:[#allocation38_spill] sm:$0xff] }
 0x287   :  { %v2990_v63 = vsel %vm7264_vm8, 0, %v7273_v5  ;;  %v2447_v50 = vadd.s32 536870912, %v2446_v39  ;;  %v2517_v44 = vor.u32 %v2516_v40, %v2515_v13  ;;  %v2980_v45 = vor.u32 4788187, %v2979_v23 }
 0x288   :  { %v2508_v46 = vor.u32 %v2507_v35, %v2506_v37  ;;  %v2511_v28 = vor.u32 %v2510_v8, %v2509_v30  ;;  %v2514_v57 = vor.u32 %v2513_v29, %v2512_v15  ;;  %v2497_v38 = vor.u32 8388608, %v2496_v14 }
 0x289   :  { %v7310_v62 = vshrl.u32 %v2447_v50, 30  ;;  %v2505_v10 = vshrl.u32 %v8769_v19, %v8867_v42  ;;  %vm2524_vm0 = vcmp.lt.s32.totalorder %v8868_v22, 4  ;;  %v4466_v33 = vpop.eup %4465  ;;  %v2981_v4 = vand.u32 2147483647, %v2980_v45 }
 0x28a   :  { %v2983_v56 = vcvt.s32.f32 %v2976_v3  ;;  %v2520_v32 = vor.u32 %v2519_v17, %v2518_v61  ;;  %v2530_v5 = vsel %vm2524_vm0, %v2517_v44, 920167782  ;;  %v4468_v47 = vpop.eup %4467  ;;  %vm1161_vm1 = vcmp.gt.s32.totalorder %v7149_v11, 0 }
 0x28b   :  { %vm1264_vm2 = vcmp.gt.s32.totalorder %v7152_v26, 0  ;;  %v2897_v37 = vxor.u32 2147483648, %v4466_v33  ;;  %v2449_v35 = vshll.u32 %v7310_v62, 30  ;;  %vm2521_vm3 = vcmp.lt.s32.totalorder %v8868_v22, 1 }
 0x28c   :  { %vm2523_vm4 = vcmp.lt.s32.totalorder %v8868_v22, 3  ;;  %v2894_v42 = vxor.u32 2147483648, %v4468_v47  ;;  %v2984_v30 = vmul.f32 %v2983_v56, %v2981_v4  ;;  %v2529_v8 = vsel %vm2521_vm3, %v2508_v46, %v2511_v28 }
 0x28d   :  { %v2531_v15 = vsel %vm2523_vm4, %v2514_v57, %v2530_v5  ;;  %v2898_v29 = vsel %vm2896_vm15, %v2897_v37, %v4468_v47  ;;  %v7328_v43 = vsub.s32 %v2446_v39, %v2449_v35  ;;  %vm2522_vm6 = vcmp.lt.s32.totalorder %v8868_v22, 2 }
 0x28e   :  { %v2533_v59 = vsel %vm2521_vm3, %v2511_v28, %v2514_v57  ;;  %v2895_v13 = vsel %vm2893_vm12, %v4466_v33, %v2894_v42  ;;  %v2985_v14 = vxor.u32 2147483648, %v2984_v30  ;;  %v2526_v40 = vsel %vm2524_vm0, %v2514_v57, 2102212464  ;;  %v8870_v42 = vld [vmem:[#allocation25_spill] sm:$0xff] }
 0x28f   :  { %v2534_v3 = vsel %vm2524_vm0, %v2520_v32, 1326507024  ;;  %v2899_v23 = vsel %vm2892_vm14, %v2895_v13, %v2898_v29  ;;  %v2452_v39 = vsub.s32 0, %v7328_v43  ;;  %v2532_v61 = vsel %vm2522_vm6, %v2529_v8, %v2531_v15  ;;  %v8871_v29 = vld [vmem:[#allocation13_spill] sm:$0xff] }
 0x290   :  { %v2535_v17 = vsel %vm2523_vm4, %v2517_v44, %v2534_v3  ;;  %v2900_v50 = vsel %vm2890_vm13, nan, %v2899_v23  ;;  %v2986_v45 = vsel %vm2903_vm9, %v2985_v14, %v2984_v30  ;;  %v2537_v33 = vshll.u32 %v2497_v38, 8 }
 0x291   :  { %v2536_v57 = vsel %vm2522_vm6, %v2533_v59, %v2535_v17  ;;  %4211 = vmatprep.subr.mxu0 %v2900_v50  ;;  %v2989_v6 = vsel %vm7264_vm8, %v8848_v16, %v2986_v45  ;;  %v4062_v4 = vmin.u32 %v2452_v39, %v7328_v43  ;;  %v2472_v56 = vsub.s32 4, %v7310_v62 }
 0x292   :  { %v2525_v18 = vsel %vm2521_vm3, %v2505_v10, %v2508_v46  ;;  %4469 = vcosq.f32 %v2989_v6  ;;  %4212 = vmatpush3.msra.mxu0 %v2900_v50  ;;  %v2527_v44 = vsel %vm2523_vm4, %v2511_v28, %v2526_v40  ;;  %v7369_v37 = vsub.s32 32, %v6897_v34  ;;  %v8869_v46 = vld [vmem:[#allocation24_spill] sm:$0xff] }
 0x293   :  { %v7361_v32 = vmul.u32.u64.low %v2537_v33, %v2536_v57  ;;  %v7362_v5 = vmul.u32.u64.high %v2537_v33, %v2536_v57, %v7361_v32  ;;  %4471 = vsinq.f32 %v2989_v6  ;;  %v2454_v38 = vclz %v4062_v4 }
 0x294   :  { %v7364_v47 = vmul.u32.u64.low %v2537_v33, %v2532_v61  ;;  %v7365_v0 = vmul.u32.u64.high %v2537_v33, %v2532_v61, %v7364_v47  ;;  %v7372_v35 = vsub.s32 32, %v7143_v60  ;;  %v741_v10 = vand.u32 2139095040, %v8869_v46 }
 0x295   :  { %v844_v30 = vand.u32 2139095040, %v8870_v42  ;;  %v7376_v28 = vand.u32 3, %v2990_v63  ;;  %v4063_v8 = vadd.s32 4294967294, %v2454_v38  ;;  %v2528_v15 = vsel %vm2522_vm6, %v2525_v18, %v2527_v44 }
 0x296   :  { %v1974_v59 = vand.u32 2147483647, %v8871_v29  ;;  %v7384_v13 = vsel %vm1161_vm1, %v7149_v11, 0  ;;  %v7389_v14 = vsel %vm1264_vm2, %v7152_v26, 0  ;;  %vm2388_vm7 = vcmp.lt.s32.totalorder %v8856_v58, 0 }
 0x297   :  { %vm2546_vm8 = vc.u32 %v7362_v5, %v7364_v47  ;;  %v2442_v63 = vadd.s32 %v7256_v41, %v7254_v2  ;;  %vm4064_vm9 = vcmp.lt.s32.totalorder %v4063_v8, 0  ;;  %v7399_v22 = vsel %vm2388_vm7, %v2472_v56, %v7310_v62 }
 0x298   :  { %v2547_v11 = vadd.s32 1, %v7365_v0  ;;  %v2457_v40 = vsel %vm4064_vm9, 0, %v4063_v8  ;;  %v2544_v3 = vmul.u32 %v2537_v33, %v2528_v15  ;;  %v1990_v26 = vshrl.u32 %v8769_v19, %v6620_v25 }
 0x299   :  { %v1992_v23 = vshrl.u32 %v8767_v20, %v6620_v25  ;;  %vm2999_vm10 = vcmp.eq.s32.totalorder %v7376_v28, 2  ;;  %v2458_v39 = vsub.s32 32, %v2457_v40  ;;  %v2462_v2 = vsub.s32 4294967266, %v2457_v40 }
 0x29a   :  { %v2548_v41 = vsel %vm2546_vm8, %v2547_v11, %v7365_v0  ;;  %v7410_v62 = vand.u32 8388607, %v1974_v59  ;;  %vm2996_vm11 = vcmp.eq.s32.totalorder %v7376_v28, 0  ;;  %v1995_v17 = vshrl.u32 %v8768_v24, %v6620_v25 }
 0x29b   :  { %v2549_v61 = vadd.s32 %v2548_v41, %v2544_v3  ;;  %v1997_v50 = vshll.u32 %v8768_v24, %v8825_v31  ;;  %v1998_v45 = vshrl.u32 %v8770_v7, %v6620_v25  ;;  %vm2995_vm12 = vcmp.lt.s32.totalorder %v7376_v28, 2 }
 0x29c   :  { %v2459_v57 = vshll.u32 %v7328_v43, %v2457_v40  ;;  %v2460_v33 = vshrl.u32 %v2442_v63, %v2458_v39  ;;  %v2463_v6 = vadd.s32 127, %v2462_v2  ;;  %v2001_v4 = vshrl.u32 %v8771_v49, %v6620_v25 }
 0x29d   :  { %vm2993_vm14 = vweird.f32 %v8848_v16  ;;  %v2550_v56 = vadd.s32 536870912, %v2549_v61  ;;  %v1991_v18 = vshll.u32 %v8769_v19, %v8825_v31  ;;  %v1999_v44 = vor.u32 %v1998_v45, %v1997_v50  ;;  %v8874_v50 = vld [vmem:[#allocation53_spill] sm:$0xff] }
 0x29e   :  { %v2000_v32 = vshll.u32 %v8770_v7, %v8825_v31  ;;  %vm7430_vm13 = vcmp.le.f32.partialorder %v2386_v1, 0.7853982  ;;  %v2461_v43 = vor.u32 %v2460_v33, %v2459_v57  ;;  %v2464_v0 = vshll.u32 %v2463_v6, 23 }
 0x29f   :  { %v1994_v8 = vshll.u32 %v8767_v20, %v8825_v31  ;;  %v2004_v15 = vshrl.u32 %v8772_v48, %v6620_v25  ;;  %v7438_v63 = vshrl.u32 %v2550_v56, 30  ;;  %v1982_v11 = vor.u32 8388608, %v7410_v62  ;;  %v4470_v39 = vpop.eup %4469 }
 0x2a0   :  { %v1993_v40 = vor.u32 %v1992_v23, %v1991_v18  ;;  %v2002_v3 = vor.u32 %v2001_v4, %v2000_v32  ;;  %v2465_v2 = vor.u32 4788187, %v2464_v0  ;;  %v2003_v41 = vshll.u32 %v8771_v49, %v8825_v31  ;;  %v4472_v45 = vpop.eup %4471 }
 0x2a1   :  { %v1996_v1 = vor.u32 %v1995_v17, %v1994_v8  ;;  %vm2009_vm15 = vcmp.lt.s32.totalorder %v8874_v50, 4  ;;  %v3000_v57 = vxor.u32 2147483648, %v4470_v39  ;;  %v2552_v33 = vshll.u32 %v7438_v63, 30 }
 0x2a2   :  { %vm2006_vm0 = vcmp.lt.s32.totalorder %v8874_v50, 1  ;;  %v2011_v25 = vsel %vm2009_vm15, %v1999_v44, 2102212464  ;;  %v2997_v62 = vxor.u32 2147483648, %v4472_v45  ;;  %v2466_v23 = vand.u32 2147483647, %v2465_v2 }
 0x2a3   :  { %v2468_v6 = vcvt.s32.f32 %v2461_v43  ;;  %v2005_v4 = vor.u32 %v2004_v15, %v2003_v41  ;;  %v3001_v17 = vsel %vm2999_vm10, %v3000_v57, %v4472_v45  ;;  %v7450_v56 = vsub.s32 %v2549_v61, %v2552_v33 }
 0x2a4   :  { %vm2008_vm1 = vcmp.lt.s32.totalorder %v8874_v50, 3  ;;  %v2015_v31 = vsel %vm2009_vm15, %v2002_v3, 920167782  ;;  %v2998_v18 = vsel %vm2996_vm11, %v4470_v39, %v2997_v62  ;;  %v2010_v0 = vsel %vm2006_vm0, %v1990_v26, %v1993_v40 }
 0x2a5   :  { %v2469_v32 = vmul.f32 %v2468_v6, %v2466_v23  ;;  %v2012_v43 = vsel %vm2008_vm1, %v1996_v1, %v2011_v25  ;;  %v3002_v8 = vsel %vm2995_vm12, %v2998_v18, %v3001_v17  ;;  %v2555_v61 = vsub.s32 0, %v7450_v56  ;;  %v8875_v17 = vld [vmem:[#allocation14_spill] sm:$0xff] }
 0x2a6   :  { %v2014_v15 = vsel %vm2006_vm0, %v1993_v40, %v1996_v1  ;;  %v2016_v2 = vsel %vm2008_vm1, %v1999_v44, %v2015_v31  ;;  %v3003_v39 = vsel %vm2993_vm14, nan, %v3002_v8  ;;  %v2018_v26 = vsel %vm2006_vm0, %v1996_v1, %v1999_v44 }
 0x2a7   :  { %v2470_v41 = vxor.u32 2147483648, %v2469_v32  ;;  %v2019_v45 = vsel %vm2009_vm15, %v2005_v4, 1326507024  ;;  %4233 = vmatprep.subr.mxu1 %v3003_v39  ;;  %v2475_v28 = vsel %vm7430_vm13, 0, %v7399_v22  ;;  %v4066_v40 = vmin.u32 %v2555_v61, %v7450_v56 }
 0x2a8   :  { %v2575_v57 = vsub.s32 4, %v7438_v63  ;;  %vm2007_vm2 = vcmp.lt.s32.totalorder %v8874_v50, 2  ;;  %4234 = vmatpush3.msra.mxu1 %v3003_v39  ;;  %v2020_v44 = vsel %vm2008_vm1, %v2002_v3, %v2019_v45  ;;  %v2022_v1 = vshll.u32 %v1982_v11, 8 }
 0x2a9   :  { %v2471_v16 = vsel %vm2388_vm7, %v2470_v41, %v2469_v32  ;;  %v2017_v33 = vsel %vm2007_vm2, %v2014_v15, %v2016_v2  ;;  %v2557_v22 = vclz %v4066_v40  ;;  %v2013_v62 = vsel %vm2007_vm2, %v2010_v0, %v2012_v43 }
 0x2aa   :  { %v2474_v25 = vsel %vm7430_vm13, %v8856_v58, %v2471_v16  ;;  %v2021_v23 = vsel %vm2007_vm2, %v2018_v26, %v2020_v44  ;;  %v2077_v31 = vand.u32 2147483647, %v8875_v17  ;;  %v7496_v11 = vshrl.u32 %v7384_v13, 5 }
 0x2ab   :  { %4473 = vcosq.f32 %v2474_v25  ;;  %v7487_v6 = vmul.u32.u64.low %v2022_v1, %v2021_v23  ;;  %v7488_v4 = vmul.u32.u64.high %v2022_v1, %v2021_v23, %v7487_v6  ;;  %v4067_v18 = vadd.s32 4294967294, %v2557_v22 }
 0x2ac   :  { %4475 = vsinq.f32 %v2474_v25  ;;  %v7491_v32 = vmul.u32.u64.low %v2022_v1, %v2017_v33  ;;  %v7492_v8 = vmul.u32.u64.high %v2022_v1, %v2017_v33, %v7491_v32  ;;  %v7500_v38 = vshrl.u32 %v741_v10, 23 }
 0x2ad   :  { %v7504_v3 = vshrl.u32 %v844_v30, 23  ;;  %vm7508_vm3 = vcmp.le.f32.partialorder %v2489_v52, 0.7853982  ;;  %v7512_v0 = vand.u32 3, %v2475_v28  ;;  %vm2491_vm4 = vcmp.lt.s32.totalorder %v8865_v21, 0 }
 0x2ae   :  { %v2545_v43 = vadd.s32 %v7364_v47, %v7362_v5  ;;  %vm4068_vm6 = vcmp.lt.s32.totalorder %v4067_v18, 0  ;;  %v7520_v30 = vsel %vm2491_vm4, %v2575_v57, %v7438_v63  ;;  %v2029_v61 = vmul.u32 %v2022_v1, %v2013_v62 }
 0x2af   :  { %v2560_v10 = vsel %vm4068_vm6, 0, %v4067_v18  ;;  %vm2031_vm7 = vc.u32 %v7488_v4, %v7491_v32  ;;  %v2032_v2 = vadd.s32 1, %v7492_v8  ;;  %v7527_v39 = vand.u32 8388607, %v2077_v31 }
 0x2b0   :  { %v2561_v52 = vsub.s32 32, %v2560_v10  ;;  %v2565_v15 = vsub.s32 4294967266, %v2560_v10  ;;  %v2562_v5 = vshll.u32 %v7450_v56, %v2560_v10  ;;  %v2094_v47 = vshll.u32 %v8769_v19, %v8827_v12 }
 0x2b1   :  { %v2095_v63 = vshrl.u32 %v8767_v20, %v6626_v53  ;;  %v2098_v41 = vshrl.u32 %v8768_v24, %v6626_v53  ;;  %vm2484_vm8 = vcmp.eq.s32.totalorder %v7512_v0, 2  ;;  %v2033_v28 = vsel %vm2031_vm7, %v2032_v2, %v7492_v8 }
 0x2b2   :  { %v2563_v26 = vshrl.u32 %v2545_v43, %v2561_v52  ;;  %v2566_v45 = vadd.s32 127, %v2565_v15  ;;  %v2101_v40 = vshrl.u32 %v8770_v7, %v6626_v53  ;;  %vm2481_vm9 = vcmp.eq.s32.totalorder %v7512_v0, 0 }
 0x2b3   :  { %v2034_v56 = vadd.s32 %v2033_v28, %v2029_v61  ;;  %v2097_v57 = vshll.u32 %v8767_v20, %v8827_v12  ;;  %v2103_v16 = vshll.u32 %v8770_v7, %v8827_v12  ;;  %v2104_v33 = vshrl.u32 %v8771_v49, %v6626_v53 }
 0x2b4   :  { %vm2480_vm10 = vcmp.lt.s32.totalorder %v7512_v0, 2  ;;  %v2564_v44 = vor.u32 %v2563_v26, %v2562_v5  ;;  %v2567_v1 = vshll.u32 %v2566_v45, 23  ;;  %v2100_v25 = vshll.u32 %v8768_v24, %v8827_v12 }
 0x2b5   :  { %v2107_v22 = vshrl.u32 %v8772_v48, %v6626_v53  ;;  %vm2478_vm11 = vweird.f32 %v8856_v58  ;;  %v2578_v62 = vsel %vm7508_vm3, 0, %v7520_v30  ;;  %v2035_v23 = vadd.s32 536870912, %v2034_v56 }
 0x2b6   :  { %v2096_v6 = vor.u32 %v2095_v63, %v2094_v47  ;;  %v2105_v18 = vor.u32 %v2104_v33, %v2103_v16  ;;  %v2568_v8 = vor.u32 4788187, %v2567_v1  ;;  %v2099_v43 = vor.u32 %v2098_v41, %v2097_v57 }
 0x2b7   :  { %v2102_v10 = vor.u32 %v2101_v40, %v2100_v25  ;;  %v2106_v61 = vshll.u32 %v8771_v49, %v8827_v12  ;;  %v7558_v52 = vshrl.u32 %v2035_v23, 30  ;;  %v2085_v15 = vor.u32 8388608, %v7527_v39 }
 0x2b8   :  { %v2093_v2 = vshrl.u32 %v8769_v19, %v6626_v53  ;;  %vm2112_vm12 = vcmp.lt.s32.totalorder %v6623_v51, 4  ;;  %v4474_v5 = vpop.eup %4473  ;;  %v2569_v30 = vand.u32 2147483647, %v2568_v8  ;;  %v2571_v26 = vcvt.s32.f32 %v2564_v44 }
 0x2b9   :  { %v2108_v47 = vor.u32 %v2107_v22, %v2106_v61  ;;  %v2118_v63 = vsel %vm2112_vm12, %v2105_v18, 920167782  ;;  %v4476_v41 = vpop.eup %4475  ;;  %v2485_v45 = vxor.u32 2147483648, %v4474_v5  ;;  %v2037_v12 = vshll.u32 %v7558_v52, 30 }
 0x2ba   :  { %vm2109_vm14 = vcmp.lt.s32.totalorder %v6623_v51, 1  ;;  %vm2111_vm13 = vcmp.lt.s32.totalorder %v6623_v51, 3  ;;  %v2482_v39 = vxor.u32 2147483648, %v4476_v41  ;;  %v2572_v28 = vmul.f32 %v2571_v26, %v2569_v30 }
 0x2bb   :  { %v2117_v53 = vsel %vm2109_vm14, %v2096_v6, %v2099_v43  ;;  %v2119_v40 = vsel %vm2111_vm13, %v2102_v10, %v2118_v63  ;;  %v2486_v57 = vsel %vm2484_vm8, %v2485_v45, %v4476_v41  ;;  %v7575_v16 = vsub.s32 %v2034_v56, %v2037_v12 }
 0x2bc   :  { %vm2110_vm15 = vcmp.lt.s32.totalorder %v6623_v51, 2  ;;  %v2121_v33 = vsel %vm2109_vm14, %v2099_v43, %v2102_v10  ;;  %v2483_v44 = vsel %vm2481_vm9, %v4474_v5, %v2482_v39  ;;  %v2573_v1 = vxor.u32 2147483648, %v2572_v28 }
 0x2bd   :  { %v2114_v25 = vsel %vm2112_vm12, %v2102_v10, 2102212464  ;;  %v2122_v22 = vsel %vm2112_vm12, %v2108_v47, 1326507024  ;;  %v2487_v23 = vsel %vm2480_vm10, %v2483_v44, %v2486_v57  ;;  %v2040_v56 = vsub.s32 0, %v7575_v16  ;;  %v8878_v57 = vld [vmem:[#allocation15_spill] sm:$0xff] }
 0x2be   :  { %v2120_v8 = vsel %vm2110_vm15, %v2117_v53, %v2119_v40  ;;  %v2123_v61 = vsel %vm2111_vm13, %v2105_v18, %v2122_v22  ;;  %v2488_v5 = vsel %vm2478_vm11, nan, %v2487_v23  ;;  %v2574_v10 = vsel %vm2491_vm4, %v2573_v1, %v2572_v28  ;;  %v8879_v44 = vld [vmem:[#allocation30_spill] sm:$0xff] }
 0x2bf   :  { %v2124_v30 = vsel %vm2110_vm15, %v2121_v33, %v2123_v61  ;;  %v2125_v26 = vshll.u32 %v2085_v15, 8  ;;  %4213 = vmatprep.subr.mxu0 %v2488_v5  ;;  %v2577_v0 = vsel %vm7508_vm3, %v8865_v21, %v2574_v10  ;;  %v4046_v47 = vmin.u32 %v2040_v56, %v7575_v16 }
 0x2c0   :  { %v2060_v63 = vsub.s32 4, %v7558_v52  ;;  %v2113_v58 = vsel %vm2109_vm14, %v2093_v2, %v2096_v6  ;;  %4477 = vcosq.f32 %v2577_v0  ;;  %4214 = vmatpush3.msra.mxu0 %v2488_v5  ;;  %v2115_v18 = vsel %vm2111_vm13, %v2099_v43, %v2114_v25 }
 0x2c1   :  { %v7608_v41 = vmul.u32.u64.low %v2125_v26, %v2124_v30  ;;  %v7609_v45 = vmul.u32.u64.high %v2125_v26, %v2124_v30, %v7608_v41  ;;  %4479 = vsinq.f32 %v2577_v0  ;;  %v2042_v15 = vclz %v4046_v47 }
 0x2c2   :  { %v7611_v12 = vmul.u32.u64.low %v2125_v26, %v2120_v8  ;;  %v7612_v50 = vmul.u32.u64.high %v2125_v26, %v2120_v8, %v7611_v12  ;;  %v7616_v39 = vand.u32 31, %v7384_v13  ;;  %v7619_v28 = vshrl.u32 %v7389_v14, 5 }
 0x2c3   :  { %v7622_v6 = vand.u32 31, %v7389_v14  ;;  %v7625_v43 = vadd.s32 4294967169, %v7500_v38  ;;  %v7627_v2 = vand.u32 3, %v2578_v62  ;;  %v4047_v53 = vadd.s32 4294967294, %v2042_v15 }
 0x2c4   :  { %v2116_v40 = vsel %vm2110_vm15, %v2113_v58, %v2115_v18  ;;  %v1562_v33 = vand.u32 2147483647, %v8878_v57  ;;  %v7633_v13 = vadd.s32 4294967169, %v7504_v3  ;;  %v329_v1 = vand.u32 2139095040, %v8879_v44 }
 0x2c5   :  { %vm1976_vm0 = vcmp.lt.s32.totalorder %v8871_v29, 0  ;;  %vm2134_vm1 = vc.u32 %v7609_v45, %v7611_v12  ;;  %v2030_v14 = vadd.s32 %v7491_v32, %v7488_v4  ;;  %vm4048_vm2 = vcmp.lt.s32.totalorder %v4047_v53, 0 }
 0x2c6   :  { %v7644_v51 = vsel %vm1976_vm0, %v2060_v63, %v7558_v52  ;;  %v2135_v38 = vadd.s32 1, %v7612_v50  ;;  %v2045_v3 = vsel %vm4048_vm2, 0, %v4047_v53  ;;  %v2132_v62 = vmul.u32 %v2125_v26, %v2116_v40 }
 0x2c7   :  { %v1578_v25 = vshrl.u32 %v8769_v19, %v7369_v37  ;;  %v1580_v22 = vshrl.u32 %v8767_v20, %v7369_v37  ;;  %vm2587_vm3 = vcmp.eq.s32.totalorder %v7627_v2, 2  ;;  %v2046_v23 = vsub.s32 32, %v2045_v3 }
 0x2c8   :  { %v2050_v4 = vsub.s32 4294967266, %v2045_v3  ;;  %v2136_v32 = vsel %vm2134_vm1, %v2135_v38, %v7612_v50  ;;  %v7655_v52 = vand.u32 8388607, %v1562_v33  ;;  %vm2584_vm4 = vcmp.eq.s32.totalorder %v7627_v2, 0 }
 0x2c9   :  { %v2137_v56 = vadd.s32 %v2136_v32, %v2132_v62  ;;  %v1583_v8 = vshrl.u32 %v8768_v24, %v7369_v37  ;;  %v1585_v61 = vshll.u32 %v8768_v24, %v6897_v34  ;;  %v1586_v5 = vshrl.u32 %v8770_v7, %v7369_v37 }
 0x2ca   :  { %vm2583_vm6 = vcmp.lt.s32.totalorder %v7627_v2, 2  ;;  %v2047_v10 = vshll.u32 %v7575_v16, %v2045_v3  ;;  %v2048_v30 = vshrl.u32 %v2030_v14, %v2046_v23  ;;  %v2051_v26 = vadd.s32 127, %v2050_v4 }
 0x2cb   :  { %v1589_v0 = vshrl.u32 %v8771_v49, %v7369_v37  ;;  %vm2581_vm7 = vweird.f32 %v8865_v21  ;;  %v2138_v47 = vadd.s32 536870912, %v2137_v56  ;;  %v1579_v63 = vshll.u32 %v8769_v19, %v6897_v34 }
 0x2cc   :  { %v1587_v58 = vor.u32 %v1586_v5, %v1585_v61  ;;  %v1588_v18 = vshll.u32 %v8770_v7, %v6897_v34  ;;  %vm7675_vm8 = vcmp.le.f32.partialorder %v1974_v59, 0.7853982  ;;  %v2049_v16 = vor.u32 %v2048_v30, %v2047_v10 }
 0x2cd   :  { %v2052_v15 = vshll.u32 %v2051_v26, 23  ;;  %v1582_v50 = vshll.u32 %v8767_v20, %v6897_v34  ;;  %v1592_v53 = vshrl.u32 %v8772_v48, %v7369_v37  ;;  %v7683_v40 = vshrl.u32 %v2138_v47, 30  ;;  %v4478_v62 = vpop.eup %4477 }
 0x2ce   :  { %v1570_v14 = vor.u32 8388608, %v7655_v52  ;;  %v1581_v38 = vor.u32 %v1580_v22, %v1579_v63  ;;  %v1590_v3 = vor.u32 %v1589_v0, %v1588_v18  ;;  %v1591_v4 = vshll.u32 %v8771_v49, %v6897_v34  ;;  %v4480_v32 = vpop.eup %4479 }
 0x2cf   :  { %v2053_v23 = vor.u32 4788187, %v2052_v15  ;;  %v1584_v59 = vor.u32 %v1583_v8, %v1582_v50  ;;  %vm1597_vm9 = vcmp.lt.s32.totalorder %v6886_v9, 4  ;;  %v2588_v61 = vxor.u32 2147483648, %v4478_v62 }
 0x2d0   :  { %v2140_v5 = vshll.u32 %v7683_v40, 30  ;;  %vm1594_vm10 = vcmp.lt.s32.totalorder %v6886_v9, 1  ;;  %v1599_v37 = vsel %vm1597_vm9, %v1587_v58, 2102212464  ;;  %v2585_v52 = vxor.u32 2147483648, %v4480_v32 }
 0x2d1   :  { %v2054_v22 = vand.u32 2147483647, %v2053_v23  ;;  %v2056_v10 = vcvt.s32.f32 %v2049_v16  ;;  %v1593_v30 = vor.u32 %v1592_v53, %v1591_v4  ;;  %v2589_v8 = vsel %vm2587_vm3, %v2588_v61, %v4480_v32 }
 0x2d2   :  { %v7695_v26 = vsub.s32 %v2137_v56, %v2140_v5  ;;  %vm1596_vm11 = vcmp.lt.s32.totalorder %v6886_v9, 3  ;;  %v1603_v34 = vsel %vm1597_vm9, %v1590_v3, 920167782  ;;  %v2586_v0 = vsel %vm2584_vm4, %v4478_v62, %v2585_v52 }
 0x2d3   :  { %v2057_v47 = vmul.f32 %v2056_v10, %v2054_v22  ;;  %v1598_v63 = vsel %vm1594_vm10, %v1578_v25, %v1581_v38  ;;  %v1600_v18 = vsel %vm1596_vm11, %v1584_v59, %v1599_v37  ;;  %v2590_v16 = vsel %vm2583_vm6, %v2586_v0, %v2589_v8 }
 0x2d4   :  { %v2143_v56 = vsub.s32 0, %v7695_v26  ;;  %v1602_v15 = vsel %vm1594_vm10, %v1581_v38, %v1584_v59  ;;  %v1604_v50 = vsel %vm1596_vm11, %v1587_v58, %v1603_v34  ;;  %v2591_v53 = vsel %vm2581_vm7, nan, %v2590_v16 }
 0x2d5   :  { %v2058_v62 = vxor.u32 2147483648, %v2057_v47  ;;  %v1606_v25 = vsel %vm1594_vm10, %v1584_v59, %v1587_v58  ;;  %v1607_v23 = vsel %vm1597_vm9, %v1593_v30, 1326507024  ;;  %4235 = vmatprep.subr.mxu1 %v2591_v53  ;;  %v2063_v2 = vsel %vm7675_vm8, 0, %v7644_v51 }
 0x2d6   :  { %v4050_v38 = vmin.u32 %v2143_v56, %v7695_v26  ;;  %v2163_v4 = vsub.s32 4, %v7683_v40  ;;  %vm1595_vm12 = vcmp.lt.s32.totalorder %v6886_v9, 2  ;;  %4236 = vmatpush3.msra.mxu1 %v2591_v53  ;;  %v1608_v58 = vsel %vm1596_vm11, %v1590_v3, %v1607_v23 }
 0x2d7   :  { %v2059_v21 = vsel %vm1976_vm0, %v2058_v62, %v2057_v47  ;;  %v1605_v32 = vsel %vm1595_vm12, %v1602_v15, %v1604_v50  ;;  %v1610_v59 = vshll.u32 %v1570_v14, 8  ;;  %v1601_v5 = vsel %vm1595_vm12, %v1598_v63, %v1600_v18 }
 0x2d8   :  { %v2062_v61 = vsel %vm7675_vm8, %v8871_v29, %v2059_v21  ;;  %v2145_v51 = vclz %v4050_v38  ;;  %v1609_v37 = vsel %vm1595_vm12, %v1606_v25, %v1608_v58  ;;  %v1665_v10 = vand.u32 2147483647, %v8816_v27 }
 0x2d9   :  { %4481 = vcosq.f32 %v2062_v61  ;;  %v7732_v52 = vmul.u32.u64.low %v1610_v59, %v1609_v37  ;;  %v7733_v22 = vmul.u32.u64.high %v1610_v59, %v1609_v37, %v7732_v52  ;;  %v7741_v9 = vadd.s32 1, %v7625_v43 }
 0x2da   :  { %4483 = vsinq.f32 %v2062_v61  ;;  %v4051_v30 = vadd.s32 4294967294, %v2145_v51  ;;  %v7736_v8 = vmul.u32.u64.low %v1610_v59, %v1605_v32  ;;  %v7737_v34 = vmul.u32.u64.high %v1610_v59, %v1605_v32, %v7736_v8 }
 0x2db   :  { %v7744_v41 = vadd.s32 1, %v7633_v13  ;;  %v7748_v14 = vshrl.u32 %v329_v1, 23  ;;  %vm7752_vm14 = vcmp.le.f32.partialorder %v2077_v31, 0.7853982  ;;  %v7756_v0 = vand.u32 3, %v2063_v2 }
 0x2dc   :  { %vm2079_vm13 = vcmp.lt.s32.totalorder %v8875_v17, 0  ;;  %v2133_v43 = vadd.s32 %v7611_v12, %v7609_v45  ;;  %vm4052_vm15 = vcmp.lt.s32.totalorder %v4051_v30, 0  ;;  %v1617_v47 = vmul.u32 %v1610_v59, %v1601_v5 }
 0x2dd   :  { %v2148_v13 = vsel %vm4052_vm15, 0, %v4051_v30  ;;  %v7764_v1 = vsel %vm2079_vm13, %v2163_v4, %v7683_v40  ;;  %vm1619_vm0 = vc.u32 %v7733_v22, %v7736_v8  ;;  %v1620_v18 = vadd.s32 1, %v7737_v34 }
 0x2de   :  { %v2149_v31 = vsub.s32 32, %v2148_v13  ;;  %v2153_v63 = vsub.s32 4294967266, %v2148_v13  ;;  %v7771_v16 = vand.u32 8388607, %v1665_v10  ;;  %v2150_v45 = vshll.u32 %v7695_v26, %v2148_v13 }
 0x2df   :  { %v1682_v12 = vshll.u32 %v8769_v19, %v7143_v60  ;;  %v1683_v40 = vshrl.u32 %v8767_v20, %v7372_v35  ;;  %v1686_v56 = vshrl.u32 %v8768_v24, %v7372_v35  ;;  %vm2072_vm1 = vcmp.eq.s32.totalorder %v7756_v0, 2 }
 0x2e0   :  { %v2151_v15 = vshrl.u32 %v2133_v43, %v2149_v31  ;;  %v2154_v50 = vadd.s32 127, %v2153_v63  ;;  %v1621_v53 = vsel %vm1619_vm0, %v1620_v18, %v7737_v34  ;;  %v1689_v62 = vshrl.u32 %v8770_v7, %v7372_v35 }
 0x2e1   :  { %vm2069_vm2 = vcmp.eq.s32.totalorder %v7756_v0, 0  ;;  %v1622_v26 = vadd.s32 %v1621_v53, %v1617_v47  ;;  %v1685_v25 = vshll.u32 %v8767_v20, %v7143_v60  ;;  %v1691_v23 = vshll.u32 %v8770_v7, %v7143_v60 }
 0x2e2   :  { %v1692_v2 = vshrl.u32 %v8771_v49, %v7372_v35  ;;  %vm2068_vm3 = vcmp.lt.s32.totalorder %v7756_v0, 2  ;;  %v2152_v38 = vor.u32 %v2151_v15, %v2150_v45  ;;  %v2155_v4 = vshll.u32 %v2154_v50, 23 }
 0x2e3   :  { %v1688_v21 = vshll.u32 %v8768_v24, %v7143_v60  ;;  %v1695_v32 = vshrl.u32 %v8772_v48, %v7372_v35  ;;  %vm2066_vm4 = vweird.f32 %v8871_v29  ;;  %v2166_v58 = vsel %vm7752_vm14, 0, %v7764_v1 }
 0x2e4   :  { %v1623_v59 = vadd.s32 536870912, %v1622_v26  ;;  %v1684_v61 = vor.u32 %v1683_v40, %v1682_v12  ;;  %v1693_v51 = vor.u32 %v1692_v2, %v1691_v23  ;;  %v2156_v5 = vor.u32 4788187, %v2155_v4 }
 0x2e5   :  { %v1687_v37 = vor.u32 %v1686_v56, %v1685_v25  ;;  %v1690_v52 = vor.u32 %v1689_v62, %v1688_v21  ;;  %v1694_v30 = vshll.u32 %v8771_v49, %v7143_v60  ;;  %vm749_vm6 = vcmp.gt.s32.totalorder %v7741_v9, 0 }
 0x2e6   :  { %v7803_v34 = vshrl.u32 %v1623_v59, 30  ;;  %v1673_v43 = vor.u32 8388608, %v7771_v16  ;;  %v1681_v13 = vshrl.u32 %v8769_v19, %v7372_v35  ;;  %vm1700_vm7 = vcmp.lt.s32.totalorder %v6908_v55, 4  ;;  %v4482_v1 = vpop.eup %4481 }
 0x2e7   :  { %v2157_v47 = vand.u32 2147483647, %v2156_v5  ;;  %v2159_v31 = vcvt.s32.f32 %v2152_v38  ;;  %v1696_v63 = vor.u32 %v1695_v32, %v1694_v30  ;;  %v1706_v18 = vsel %vm1700_vm7, %v1693_v51, 920167782  ;;  %v4484_v45 = vpop.eup %4483 }
 0x2e8   :  { %vm852_vm8 = vcmp.gt.s32.totalorder %v7744_v41, 0  ;;  %v2073_v60 = vxor.u32 2147483648, %v4482_v1  ;;  %v1625_v12 = vshll.u32 %v7803_v34, 30  ;;  %vm1697_vm9 = vcmp.lt.s32.totalorder %v6908_v55, 1 }
 0x2e9   :  { %vm1699_vm10 = vcmp.lt.s32.totalorder %v6908_v55, 3  ;;  %v2070_v35 = vxor.u32 2147483648, %v4484_v45  ;;  %v2160_v16 = vmul.f32 %v2159_v31, %v2157_v47  ;;  %v1705_v40 = vsel %vm1697_vm9, %v1684_v61, %v1687_v37 }
 0x2ea   :  { %v1707_v56 = vsel %vm1699_vm10, %v1690_v52, %v1706_v18  ;;  %v2074_v15 = vsel %vm2072_vm1, %v2073_v60, %v4484_v45  ;;  %v7821_v50 = vsub.s32 %v1622_v26, %v1625_v12  ;;  %vm1698_vm11 = vcmp.lt.s32.totalorder %v6908_v55, 2 }
 0x2eb   :  { %v1709_v53 = vsel %vm1697_vm9, %v1687_v37, %v1690_v52  ;;  %v2071_v62 = vsel %vm2069_vm2, %v4482_v1, %v2070_v35  ;;  %v2161_v25 = vxor.u32 2147483648, %v2160_v16  ;;  %v1702_v23 = vsel %vm1700_vm7, %v1690_v52, 2102212464 }
 0x2ec   :  { %v1710_v2 = vsel %vm1700_vm7, %v1696_v63, 1326507024  ;;  %v2075_v38 = vsel %vm2068_vm3, %v2071_v62, %v2074_v15  ;;  %v1628_v26 = vsub.s32 0, %v7821_v50  ;;  %v1708_v4 = vsel %vm1698_vm11, %v1705_v40, %v1707_v56 }
 0x2ed   :  { %v1711_v21 = vsel %vm1699_vm10, %v1693_v51, %v1710_v2  ;;  %v2076_v32 = vsel %vm2066_vm4, nan, %v2075_v38  ;;  %v2162_v59 = vsel %vm2079_vm13, %v2161_v25, %v2160_v16  ;;  %v1713_v52 = vshll.u32 %v1673_v43, 8 }
 0x2ee   :  { %v1712_v5 = vsel %vm1698_vm11, %v1709_v53, %v1711_v21  ;;  %4215 = vmatprep.subr.mxu0 %v2076_v32  ;;  %v2165_v0 = vsel %vm7752_vm14, %v8875_v17, %v2162_v59  ;;  %v4030_v30 = vmin.u32 %v1628_v26, %v7821_v50  ;;  %v1648_v1 = vsub.s32 4, %v7803_v34 }
 0x2ef   :  { %v1701_v29 = vsel %vm1697_vm9, %v1681_v13, %v1684_v61  ;;  %4485 = vcosq.f32 %v2165_v0  ;;  %4216 = vmatpush3.msra.mxu0 %v2076_v32  ;;  %v1703_v51 = vsel %vm1699_vm10, %v1687_v37, %v1702_v23  ;;  %v1165_v18 = vsub.s32 32, %v7616_v39  ;;  %v8884_v37 = vld [vmem:[#allocation31_spill] sm:$0xff] }
 0x2f0   :  { %v7854_v47 = vmul.u32.u64.low %v1713_v52, %v1712_v5  ;;  %v7855_v31 = vmul.u32.u64.high %v1713_v52, %v1712_v5, %v7854_v47  ;;  %4487 = vsinq.f32 %v2165_v0  ;;  %v1630_v43 = vclz %v4030_v30 }
 0x2f1   :  { %v7857_v63 = vmul.u32.u64.low %v1713_v52, %v1708_v4  ;;  %v7858_v3 = vmul.u32.u64.high %v1713_v52, %v1708_v4, %v7857_v63  ;;  %v7863_v45 = vsub.s32 32, %v7622_v6  ;;  %v7868_v61 = vsel %vm749_vm6, %v7741_v9, 0 }
 0x2f2   :  { %v432_v13 = vand.u32 2139095040, %v8884_v37  ;;  %v7871_v60 = vand.u32 3, %v2166_v58  ;;  %v4031_v12 = vadd.s32 4294967294, %v1630_v43  ;;  %v1704_v35 = vsel %vm1698_vm11, %v1701_v29, %v1703_v51 }
 0x2f3   :  { %v1150_v16 = vand.u32 2147483647, %v8834_v36  ;;  %v7879_v40 = vsel %vm852_vm8, %v7744_v41, 0  ;;  %v7882_v56 = vadd.s32 4294967169, %v7748_v14  ;;  %vm1564_vm12 = vcmp.lt.s32.totalorder %v8878_v57, 0 }
 0x2f4   :  { %vm1722_vm14 = vc.u32 %v7855_v31, %v7857_v63  ;;  %v1618_v9 = vadd.s32 %v7736_v8, %v7733_v22  ;;  %vm4032_vm13 = vcmp.lt.s32.totalorder %v4031_v12, 0  ;;  %v7892_v55 = vsel %vm1564_vm12, %v1648_v1, %v7803_v34 }
 0x2f5   :  { %v1723_v41 = vadd.s32 1, %v7858_v3  ;;  %v1633_v58 = vsel %vm4032_vm13, 0, %v4031_v12  ;;  %v1720_v15 = vmul.u32 %v1713_v52, %v1704_v35  ;;  %v1166_v14 = vshrl.u32 %v8769_v19, %v1165_v18 }
 0x2f6   :  { %v1168_v53 = vshrl.u32 %v8767_v20, %v1165_v18  ;;  %vm2175_vm15 = vcmp.eq.s32.totalorder %v7871_v60, 2  ;;  %v1634_v62 = vsub.s32 32, %v1633_v58  ;;  %v1638_v25 = vsub.s32 4294967266, %v1633_v58 }
 0x2f7   :  { %v1724_v22 = vsel %vm1722_vm14, %v1723_v41, %v7858_v3  ;;  %v7901_v8 = vand.u32 8388607, %v1150_v16  ;;  %vm2172_vm0 = vcmp.eq.s32.totalorder %v7871_v60, 0  ;;  %v1171_v23 = vshrl.u32 %v8768_v24, %v1165_v18 }
 0x2f8   :  { %v1725_v34 = vadd.s32 %v1724_v22, %v1720_v15  ;;  %v1173_v2 = vshll.u32 %v8768_v24, %v7616_v39  ;;  %v1174_v38 = vshrl.u32 %v8770_v7, %v1165_v18  ;;  %vm2171_vm1 = vcmp.lt.s32.totalorder %v7871_v60, 2 }
 0x2f9   :  { %v1635_v26 = vshll.u32 %v7821_v50, %v1633_v58  ;;  %v1636_v4 = vshrl.u32 %v1618_v9, %v1634_v62  ;;  %v1639_v21 = vadd.s32 127, %v1638_v25  ;;  %v1177_v32 = vshrl.u32 %v8771_v49, %v1165_v18 }
 0x2fa   :  { %vm2169_vm2 = vweird.f32 %v8875_v17  ;;  %v1726_v59 = vadd.s32 536870912, %v1725_v34  ;;  %v1167_v5 = vshll.u32 %v8769_v19, %v7616_v39  ;;  %v1175_v52 = vor.u32 %v1174_v38, %v1173_v2 }
 0x2fb   :  { %v1176_v0 = vshll.u32 %v8770_v7, %v7616_v39  ;;  %vm7918_vm3 = vcmp.le.f32.partialorder %v1562_v33, 0.7853982  ;;  %v1637_v50 = vor.u32 %v1636_v4, %v1635_v26  ;;  %v1640_v1 = vshll.u32 %v1639_v21, 23 }
 0x2fc   :  { %v1170_v29 = vshll.u32 %v8767_v20, %v7616_v39  ;;  %v1180_v51 = vshrl.u32 %v8772_v48, %v1165_v18  ;;  %v7925_v47 = vshrl.u32 %v1726_v59, 30  ;;  %v1158_v43 = vor.u32 8388608, %v7901_v8  ;;  %v4486_v35 = vpop.eup %4485 }
 0x2fd   :  { %v1169_v3 = vor.u32 %v1168_v53, %v1167_v5  ;;  %v1178_v12 = vor.u32 %v1177_v32, %v1176_v0  ;;  %v1641_v9 = vor.u32 4788187, %v1640_v1  ;;  %v1179_v33 = vshll.u32 %v8771_v49, %v7616_v39  ;;  %v4488_v58 = vpop.eup %4487 }
 0x2fe   :  { %v1172_v41 = vor.u32 %v1171_v23, %v1170_v29  ;;  %vm1185_vm4 = vcmp.lt.s32.totalorder %v7496_v11, 4  ;;  %v2176_v15 = vxor.u32 2147483648, %v4486_v35  ;;  %v1728_v62 = vshll.u32 %v7925_v47, 30 }
 0x2ff   :  { %vm1182_vm6 = vcmp.lt.s32.totalorder %v7496_v11, 1  ;;  %v1187_v18 = vsel %vm1185_vm4, %v1175_v52, 2102212464  ;;  %v2173_v25 = vxor.u32 2147483648, %v4488_v58  ;;  %v1642_v53 = vand.u32 2147483647, %v1641_v9 }
 0x300   :  { %v1644_v22 = vcvt.s32.f32 %v1637_v50  ;;  %v1181_v8 = vor.u32 %v1180_v51, %v1179_v33  ;;  %v2177_v23 = vsel %vm2175_vm15, %v2176_v15, %v4488_v58  ;;  %v7937_v2 = vsub.s32 %v1725_v34, %v1728_v62 }
 0x301   :  { %vm1184_vm7 = vcmp.lt.s32.totalorder %v7496_v11, 3  ;;  %v1191_v39 = vsel %vm1185_vm4, %v1178_v12, 920167782  ;;  %v2174_v38 = vsel %vm2172_vm0, %v4486_v35, %v2173_v25  ;;  %v1186_v4 = vsel %vm1182_vm6, %v1166_v14, %v1169_v3 }
 0x302   :  { %v1645_v26 = vmul.f32 %v1644_v22, %v1642_v53  ;;  %v1188_v21 = vsel %vm1184_vm7, %v1172_v41, %v1187_v18  ;;  %v2178_v32 = vsel %vm2171_vm1, %v2174_v38, %v2177_v23  ;;  %v1731_v34 = vsub.s32 0, %v7937_v2 }
 0x303   :  { %v1190_v59 = vsel %vm1182_vm6, %v1169_v3, %v1172_v41  ;;  %v1192_v5 = vsel %vm1184_vm7, %v1175_v52, %v1191_v39  ;;  %v2179_v0 = vsel %vm2169_vm2, nan, %v2178_v32  ;;  %v1194_v14 = vsel %vm1182_vm6, %v1172_v41, %v1175_v52 }
 0x304   :  { %v1646_v50 = vxor.u32 2147483648, %v1645_v26  ;;  %v1195_v1 = vsel %vm1185_vm4, %v1181_v8, 1326507024  ;;  %4237 = vmatprep.subr.mxu1 %v2179_v0  ;;  %v1651_v60 = vsel %vm7918_vm3, 0, %v7892_v55  ;;  %v4034_v29 = vmin.u32 %v1731_v34, %v7937_v2 }
 0x305   :  { %v1751_v51 = vsub.s32 4, %v7925_v47  ;;  %vm1183_vm8 = vcmp.lt.s32.totalorder %v7496_v11, 2  ;;  %4238 = vmatpush3.msra.mxu1 %v2179_v0  ;;  %v1196_v52 = vsel %vm1184_vm7, %v1178_v12, %v1195_v1  ;;  %v1198_v35 = vshll.u32 %v1158_v43, 8 }
 0x306   :  { %v1647_v17 = vsel %vm1564_vm12, %v1646_v50, %v1645_v26  ;;  %v1193_v3 = vsel %vm1183_vm8, %v1190_v59, %v1192_v5  ;;  %v1733_v55 = vclz %v4034_v29  ;;  %v1189_v41 = vsel %vm1183_vm8, %v1186_v4, %v1188_v21 }
 0x307   :  { %v1650_v9 = vsel %vm7918_vm3, %v8878_v57, %v1647_v17  ;;  %v1197_v33 = vsel %vm1183_vm8, %v1194_v14, %v1196_v52  ;;  %v1253_v62 = vand.u32 2147483647, %v8835_v54  ;;  %v7983_v11 = vand.u32 31, %v7868_v61 }
 0x308   :  { %4489 = vcosq.f32 %v1650_v9  ;;  %v7974_v58 = vmul.u32.u64.low %v1198_v35, %v1197_v33  ;;  %v7975_v15 = vmul.u32.u64.high %v1198_v35, %v1197_v33, %v7974_v58  ;;  %v4035_v18 = vadd.s32 4294967294, %v1733_v55 }
 0x309   :  { %4491 = vsinq.f32 %v1650_v9  ;;  %v7978_v25 = vmul.u32.u64.low %v1198_v35, %v1193_v3  ;;  %v7979_v53 = vmul.u32.u64.high %v1198_v35, %v1193_v3, %v7978_v25  ;;  %v7986_v30 = vadd.s32 1, %v7882_v56 }
 0x30a   :  { %v7990_v43 = vshrl.u32 %v432_v13, 23  ;;  %vm7994_vm9 = vcmp.le.f32.partialorder %v1665_v10, 0.7853982  ;;  %v7998_v22 = vand.u32 3, %v1651_v60  ;;  %vm1667_vm10 = vcmp.lt.s32.totalorder %v8816_v27, 0 }
 0x30b   :  { %v1721_v8 = vadd.s32 %v7857_v63, %v7855_v31  ;;  %vm4036_vm11 = vcmp.lt.s32.totalorder %v4035_v18, 0  ;;  %v8006_v13 = vsel %vm1667_vm10, %v1751_v51, %v7925_v47  ;;  %v1205_v23 = vmul.u32 %v1198_v35, %v1189_v41 }
 0x30c   :  { %v1736_v56 = vsel %vm4036_vm11, 0, %v4035_v18  ;;  %vm1207_vm12 = vc.u32 %v7975_v15, %v7978_v25  ;;  %v1208_v38 = vadd.s32 1, %v7979_v53  ;;  %v8013_v26 = vand.u32 8388607, %v1253_v62 }
 0x30d   :  { %v1737_v10 = vsub.s32 32, %v1736_v56  ;;  %v1741_v39 = vsub.s32 4294967266, %v1736_v56  ;;  %v1738_v31 = vshll.u32 %v7937_v2, %v1736_v56  ;;  %v1270_v63 = vshll.u32 %v8769_v19, %v7622_v6 }
 0x30e   :  { %v1271_v47 = vshrl.u32 %v8767_v20, %v7863_v45  ;;  %v1274_v4 = vshrl.u32 %v8768_v24, %v7863_v45  ;;  %vm1660_vm14 = vcmp.eq.s32.totalorder %v7998_v22, 2  ;;  %v1209_v34 = vsel %vm1207_vm12, %v1208_v38, %v7979_v53 }
 0x30f   :  { %v1739_v21 = vshrl.u32 %v1721_v8, %v1737_v10  ;;  %v1742_v32 = vadd.s32 127, %v1741_v39  ;;  %v1277_v59 = vshrl.u32 %v8770_v7, %v7863_v45  ;;  %vm1657_vm13 = vcmp.eq.s32.totalorder %v7998_v22, 0 }
 0x310   :  { %v1210_v2 = vadd.s32 %v1209_v34, %v1205_v23  ;;  %v1273_v5 = vshll.u32 %v8767_v20, %v7622_v6  ;;  %v1279_v0 = vshll.u32 %v8770_v7, %v7622_v6  ;;  %v1280_v50 = vshrl.u32 %v8771_v49, %v7863_v45 }
 0x311   :  { %vm1656_vm15 = vcmp.lt.s32.totalorder %v7998_v22, 2  ;;  %v1740_v14 = vor.u32 %v1739_v21, %v1738_v31  ;;  %v1743_v1 = vshll.u32 %v1742_v32, 23  ;;  %v1276_v60 = vshll.u32 %v8768_v24, %v7622_v6 }
 0x312   :  { %v1283_v29 = vshrl.u32 %v8772_v48, %v7863_v45  ;;  %vm1654_vm0 = vweird.f32 %v8878_v57  ;;  %v1754_v51 = vsel %vm7994_vm9, 0, %v8006_v13  ;;  %v1211_v17 = vadd.s32 536870912, %v1210_v2 }
 0x313   :  { %v1272_v3 = vor.u32 %v1271_v47, %v1270_v63  ;;  %v1281_v52 = vor.u32 %v1280_v50, %v1279_v0  ;;  %v1744_v35 = vor.u32 4788187, %v1743_v1  ;;  %v1275_v9 = vor.u32 %v1274_v4, %v1273_v5 }
 0x314   :  { %v1278_v55 = vor.u32 %v1277_v59, %v1276_v60  ;;  %v1282_v41 = vshll.u32 %v8771_v49, %v7622_v6  ;;  %v8044_v33 = vshrl.u32 %v1211_v17, 30  ;;  %v1261_v58 = vor.u32 8388608, %v8013_v26 }
 0x315   :  { %v1269_v18 = vshrl.u32 %v8769_v19, %v7863_v45  ;;  %vm1288_vm1 = vcmp.lt.s32.totalorder %v7619_v28, 4  ;;  %v4490_v53 = vpop.eup %4489  ;;  %v1745_v8 = vand.u32 2147483647, %v1744_v35  ;;  %v1747_v56 = vcvt.s32.f32 %v1740_v14 }
 0x316   :  { %v1284_v13 = vor.u32 %v1283_v29, %v1282_v41  ;;  %v1294_v23 = vsel %vm1288_vm1, %v1281_v52, 920167782  ;;  %v4492_v10 = vpop.eup %4491  ;;  %vm337_vm2 = vcmp.gt.s32.totalorder %v7986_v30, 0  ;;  %v1661_v6 = vxor.u32 2147483648, %v4490_v53 }
 0x317   :  { %v1213_v39 = vshll.u32 %v8044_v33, 30  ;;  %vm1285_vm3 = vcmp.lt.s32.totalorder %v7619_v28, 1  ;;  %vm1287_vm4 = vcmp.lt.s32.totalorder %v7619_v28, 3  ;;  %v1658_v45 = vxor.u32 2147483648, %v4492_v10 }
 0x318   :  { %v1748_v38 = vmul.f32 %v1747_v56, %v1745_v8  ;;  %v1293_v26 = vsel %vm1285_vm3, %v1272_v3, %v1275_v9  ;;  %v1295_v31 = vsel %vm1287_vm4, %v1278_v55, %v1294_v23  ;;  %v1662_v63 = vsel %vm1660_vm14, %v1661_v6, %v4492_v10 }
 0x319   :  { %v8062_v47 = vsub.s32 %v1210_v2, %v1213_v39  ;;  %vm1286_vm6 = vcmp.lt.s32.totalorder %v7619_v28, 2  ;;  %v1297_v4 = vsel %vm1285_vm3, %v1275_v9, %v1278_v55  ;;  %v1659_v21 = vsel %vm1657_vm13, %v4490_v53, %v1658_v45 }
 0x31a   :  { %v1749_v32 = vxor.u32 2147483648, %v1748_v38  ;;  %v1290_v34 = vsel %vm1288_vm1, %v1278_v55, 2102212464  ;;  %v1298_v59 = vsel %vm1288_vm1, %v1284_v13, 1326507024  ;;  %v1663_v5 = vsel %vm1656_vm15, %v1659_v21, %v1662_v63 }
 0x31b   :  { %v1216_v2 = vsub.s32 0, %v8062_v47  ;;  %v1296_v0 = vsel %vm1286_vm6, %v1293_v26, %v1295_v31  ;;  %v1299_v50 = vsel %vm1287_vm4, %v1281_v52, %v1298_v59  ;;  %v1664_v14 = vsel %vm1654_vm0, nan, %v1663_v5 }
 0x31c   :  { %v1750_v1 = vsel %vm1667_vm10, %v1749_v32, %v1748_v38  ;;  %v1300_v60 = vsel %vm1286_vm6, %v1297_v4, %v1299_v50  ;;  %v1301_v29 = vshll.u32 %v1261_v58, 8  ;;  %4217 = vmatprep.subr.mxu0 %v1664_v14  ;;  %v1236_v35 = vsub.s32 4, %v8044_v33 }
 0x31d   :  { %v1753_v22 = vsel %vm7994_vm9, %v8816_v27, %v1750_v1  ;;  %v4014_v17 = vmin.u32 %v1216_v2, %v8062_v47  ;;  %v1289_v57 = vsel %vm1285_vm3, %v1269_v18, %v1272_v3  ;;  %4218 = vmatpush3.msra.mxu0 %v1664_v14  ;;  %v1291_v52 = vsel %vm1287_vm4, %v1275_v9, %v1290_v34 }
 0x31e   :  { %4493 = vcosq.f32 %v1753_v22  ;;  %v8095_v55 = vmul.u32.u64.low %v1301_v29, %v1300_v60  ;;  %v8096_v41 = vmul.u32.u64.high %v1301_v29, %v1300_v60, %v8095_v55  ;;  %v8103_v8 = vshrl.u32 %v7868_v61, 5 }
 0x31f   :  { %4495 = vsinq.f32 %v1753_v22  ;;  %v1218_v58 = vclz %v4014_v17  ;;  %v8098_v53 = vmul.u32.u64.low %v1301_v29, %v1296_v0  ;;  %v8099_v12 = vmul.u32.u64.high %v1301_v29, %v1296_v0, %v8098_v53 }
 0x320   :  { %v753_v56 = vsub.s32 32, %v7983_v11  ;;  %v8107_v3 = vshrl.u32 %v7879_v40, 5  ;;  %v8110_v18 = vand.u32 31, %v7879_v40  ;;  %v8112_v9 = vand.u32 3, %v1754_v51 }
 0x321   :  { %v4015_v13 = vadd.s32 4294967294, %v1218_v58  ;;  %v1292_v23 = vsel %vm1286_vm6, %v1289_v57, %v1291_v52  ;;  %v738_v10 = vand.u32 2147483647, %v8869_v46  ;;  %v8120_v61 = vsel %vm337_vm2, %v7986_v30, 0 }
 0x322   :  { %v8123_v6 = vadd.s32 4294967169, %v7990_v43  ;;  %vm1152_vm7 = vcmp.lt.s32.totalorder %v8834_v36, 0  ;;  %vm1310_vm8 = vc.u32 %v8096_v41, %v8098_v53  ;;  %v1206_v40 = vadd.s32 %v7978_v25, %v7975_v15 }
 0x323   :  { %vm4016_vm9 = vcmp.lt.s32.totalorder %v4015_v13, 0  ;;  %v8133_v28 = vsel %vm1152_vm7, %v1236_v35, %v8044_v33  ;;  %v1311_v30 = vadd.s32 1, %v8099_v12  ;;  %v1308_v39 = vmul.u32 %v1301_v29, %v1292_v23 }
 0x324   :  { %v1221_v51 = vsel %vm4016_vm9, 0, %v4015_v13  ;;  %v754_v43 = vshrl.u32 %v8769_v19, %v753_v56  ;;  %v756_v45 = vshrl.u32 %v8767_v20, %v753_v56  ;;  %vm1763_vm10 = vcmp.eq.s32.totalorder %v8112_v9, 2 }
 0x325   :  { %v1222_v38 = vsub.s32 32, %v1221_v51  ;;  %v1226_v26 = vsub.s32 4294967266, %v1221_v51  ;;  %v1312_v15 = vsel %vm1310_vm8, %v1311_v30, %v8099_v12  ;;  %v8142_v25 = vand.u32 8388607, %v738_v10 }
 0x326   :  { %vm1760_vm11 = vcmp.eq.s32.totalorder %v8112_v9, 0  ;;  %v1313_v33 = vadd.s32 %v1312_v15, %v1308_v39  ;;  %v759_v31 = vshrl.u32 %v8768_v24, %v753_v56  ;;  %v761_v63 = vshll.u32 %v8768_v24, %v7983_v11 }
 0x327   :  { %v762_v4 = vshrl.u32 %v8770_v7, %v753_v56  ;;  %vm1759_vm12 = vcmp.lt.s32.totalorder %v8112_v9, 2  ;;  %v1223_v21 = vshll.u32 %v8062_v47, %v1221_v51  ;;  %v1224_v32 = vshrl.u32 %v1206_v40, %v1222_v38 }
 0x328   :  { %v1227_v34 = vadd.s32 127, %v1226_v26  ;;  %v765_v59 = vshrl.u32 %v8771_v49, %v753_v56  ;;  %vm1757_vm14 = vweird.f32 %v8816_v27  ;;  %v1314_v5 = vadd.s32 536870912, %v1313_v33 }
 0x329   :  { %v755_v2 = vshll.u32 %v8769_v19, %v7983_v11  ;;  %v763_v0 = vor.u32 %v762_v4, %v761_v63  ;;  %v764_v50 = vshll.u32 %v8770_v7, %v7983_v11  ;;  %vm8159_vm13 = vcmp.le.f32.partialorder %v1150_v16, 0.7853982 }
 0x32a   :  { %v1225_v47 = vor.u32 %v1224_v32, %v1223_v21  ;;  %v1228_v1 = vshll.u32 %v1227_v34, 23  ;;  %v758_v60 = vshll.u32 %v8767_v20, %v7983_v11  ;;  %v768_v29 = vshrl.u32 %v8772_v48, %v753_v56 }
 0x32b   :  { %v8166_v22 = vshrl.u32 %v1314_v5, 30  ;;  %v746_v17 = vor.u32 8388608, %v8142_v25  ;;  %v757_v35 = vor.u32 %v756_v45, %v755_v2  ;;  %v766_v57 = vor.u32 %v765_v59, %v764_v50  ;;  %v4494_v52 = vpop.eup %4493 }
 0x32c   :  { %v1229_v55 = vor.u32 4788187, %v1228_v1  ;;  %v760_v58 = vor.u32 %v759_v31, %v758_v60  ;;  %v767_v16 = vshll.u32 %v8771_v49, %v7983_v11  ;;  %vm773_vm15 = vcmp.lt.s32.totalorder %v8103_v8, 4  ;;  %v4496_v12 = vpop.eup %4495 }
 0x32d   :  { %v1764_v13 = vxor.u32 2147483648, %v4494_v52  ;;  %v1316_v23 = vshll.u32 %v8166_v22, 30  ;;  %vm770_vm0 = vcmp.lt.s32.totalorder %v8103_v8, 1  ;;  %v775_v56 = vsel %vm773_vm15, %v763_v0, 2102212464 }
 0x32e   :  { %v1761_v40 = vxor.u32 2147483648, %v4496_v12  ;;  %v1230_v30 = vand.u32 2147483647, %v1229_v55  ;;  %v1232_v51 = vcvt.s32.f32 %v1225_v47  ;;  %v769_v39 = vor.u32 %v768_v29, %v767_v16 }
 0x32f   :  { %v1765_v45 = vsel %vm1763_vm10, %v1764_v13, %v4496_v12  ;;  %v8178_v38 = vsub.s32 %v1313_v33, %v1316_v23  ;;  %vm772_vm1 = vcmp.lt.s32.totalorder %v8103_v8, 3  ;;  %v779_v11 = vsel %vm773_vm15, %v766_v57, 920167782 }
 0x330   :  { %v1762_v26 = vsel %vm1760_vm11, %v4494_v52, %v1761_v40  ;;  %v1233_v15 = vmul.f32 %v1232_v51, %v1230_v30  ;;  %v774_v25 = vsel %vm770_vm0, %v754_v43, %v757_v35  ;;  %v776_v31 = vsel %vm772_vm1, %v760_v58, %v775_v56 }
 0x331   :  { %v1766_v63 = vsel %vm1759_vm12, %v1762_v26, %v1765_v45  ;;  %v1319_v33 = vsub.s32 0, %v8178_v38  ;;  %v778_v4 = vsel %vm770_vm0, %v757_v35, %v760_v58  ;;  %v780_v21 = vsel %vm772_vm1, %v763_v0, %v779_v11 }
 0x332   :  { %v1767_v32 = vsel %vm1757_vm14, nan, %v1766_v63  ;;  %v1234_v34 = vxor.u32 2147483648, %v1233_v15  ;;  %v782_v43 = vsel %vm770_vm0, %v760_v58, %v763_v0  ;;  %v783_v59 = vsel %vm773_vm15, %v769_v39, 1326507024 }
 0x333   :  { %4239 = vmatprep.subr.mxu1 %v1767_v32  ;;  %v1239_v9 = vsel %vm8159_vm13, 0, %v8133_v28  ;;  %v4018_v5 = vmin.u32 %v1319_v33, %v8178_v38  ;;  %v1339_v2 = vsub.s32 4, %v8166_v22  ;;  %vm771_vm2 = vcmp.lt.s32.totalorder %v8103_v8, 2 }
 0x334   :  { %4240 = vmatpush3.msra.mxu1 %v1767_v32  ;;  %v1235_v27 = vsel %vm1152_vm7, %v1234_v34, %v1233_v15  ;;  %v781_v50 = vsel %vm771_vm2, %v778_v4, %v780_v21  ;;  %v784_v0 = vsel %vm772_vm1, %v766_v57, %v783_v59  ;;  %v786_v47 = vshll.u32 %v746_v17, 8 }
 0x335   :  { %v1238_v1 = vsel %vm8159_vm13, %v8834_v36, %v1235_v27  ;;  %v1321_v28 = vclz %v4018_v5  ;;  %v777_v60 = vsel %vm771_vm2, %v774_v25, %v776_v31  ;;  %v785_v29 = vsel %vm771_vm2, %v782_v43, %v784_v0 }
 0x336   :  { %4497 = vcosq.f32 %v1238_v1  ;;  %v8215_v35 = vmul.u32.u64.low %v786_v47, %v785_v29  ;;  %v8216_v52 = vmul.u32.u64.high %v786_v47, %v785_v29, %v8215_v35  ;;  %v841_v55 = vand.u32 2147483647, %v8870_v42 }
 0x337   :  { %4499 = vsinq.f32 %v1238_v1  ;;  %v4019_v58 = vadd.s32 4294967294, %v1321_v28  ;;  %v8219_v16 = vmul.u32.u64.low %v786_v47, %v781_v50  ;;  %v8220_v12 = vmul.u32.u64.high %v786_v47, %v781_v50, %v8219_v16 }
 0x338   :  { %v856_v8 = vsub.s32 32, %v8110_v18  ;;  %v8225_v14 = vand.u32 31, %v8120_v61  ;;  %v8228_v17 = vadd.s32 1, %v8123_v6  ;;  %vm8232_vm3 = vcmp.le.f32.partialorder %v1253_v62, 0.7853982 }
 0x339   :  { %v8236_v13 = vand.u32 3, %v1239_v9  ;;  %vm1255_vm4 = vcmp.lt.s32.totalorder %v8835_v54, 0  ;;  %v1309_v23 = vadd.s32 %v8098_v53, %v8096_v41  ;;  %vm4020_vm6 = vcmp.lt.s32.totalorder %v4019_v58, 0 }
 0x33a   :  { %v1324_v56 = vsel %vm4020_vm6, 0, %v4019_v58  ;;  %v8244_v6 = vsel %vm1255_vm4, %v1339_v2, %v8166_v22  ;;  %v793_v40 = vmul.u32 %v786_v47, %v777_v60  ;;  %vm795_vm7 = vc.u32 %v8216_v52, %v8219_v16 }
 0x33b   :  { %v1325_v62 = vsub.s32 32, %v1324_v56  ;;  %v1329_v30 = vsub.s32 4294967266, %v1324_v56  ;;  %v796_v51 = vadd.s32 1, %v8220_v12  ;;  %v8251_v39 = vand.u32 8388607, %v841_v55 }
 0x33c   :  { %v1326_v41 = vshll.u32 %v8178_v38, %v1324_v56  ;;  %v858_v53 = vshll.u32 %v8769_v19, %v8110_v18  ;;  %v859_v22 = vshrl.u32 %v8767_v20, %v856_v8  ;;  %v862_v45 = vshrl.u32 %v8768_v24, %v856_v8 }
 0x33d   :  { %vm1248_vm8 = vcmp.eq.s32.totalorder %v8236_v13, 2  ;;  %v1327_v11 = vshrl.u32 %v1309_v23, %v1325_v62  ;;  %v1330_v26 = vadd.s32 127, %v1329_v30  ;;  %v797_v15 = vsel %vm795_vm7, %v796_v51, %v8220_v12 }
 0x33e   :  { %v865_v25 = vshrl.u32 %v8770_v7, %v856_v8  ;;  %vm1245_vm9 = vcmp.eq.s32.totalorder %v8236_v13, 0  ;;  %v798_v31 = vadd.s32 %v797_v15, %v793_v40  ;;  %v861_v38 = vshll.u32 %v8767_v20, %v8110_v18 }
 0x33f   :  { %v867_v63 = vshll.u32 %v8770_v7, %v8110_v18  ;;  %v868_v33 = vshrl.u32 %v8771_v49, %v856_v8  ;;  %vm1244_vm10 = vcmp.lt.s32.totalorder %v8236_v13, 2  ;;  %v1328_v4 = vor.u32 %v1327_v11, %v1326_v41 }
 0x340   :  { %v1331_v21 = vshll.u32 %v1330_v26, 23  ;;  %v864_v32 = vshll.u32 %v8768_v24, %v8110_v18  ;;  %v871_v34 = vshrl.u32 %v8772_v48, %v856_v8  ;;  %vm1242_vm11 = vweird.f32 %v8834_v36 }
 0x341   :  { %v1342_v43 = vsel %vm8232_vm3, 0, %v8244_v6  ;;  %v799_v59 = vadd.s32 536870912, %v798_v31  ;;  %v860_v9 = vor.u32 %v859_v22, %v858_v53  ;;  %v869_v5 = vor.u32 %v868_v33, %v867_v63 }
 0x342   :  { %v1332_v2 = vor.u32 4788187, %v1331_v21  ;;  %v863_v27 = vor.u32 %v862_v45, %v861_v38  ;;  %v866_v50 = vor.u32 %v865_v25, %v864_v32  ;;  %v870_v0 = vshll.u32 %v8771_v49, %v8110_v18 }
 0x343   :  { %v800_v47 = vshrl.u32 %v799_v59, 30  ;;  %v849_v1 = vor.u32 8388608, %v8251_v39  ;;  %v857_v28 = vshrl.u32 %v8769_v19, %v856_v8  ;;  %vm876_vm12 = vcmp.lt.s32.totalorder %v8107_v3, 4  ;;  %v4498_v60 = vpop.eup %4497 }
 0x344   :  { %v1333_v29 = vand.u32 2147483647, %v1332_v2  ;;  %v1335_v35 = vcvt.s32.f32 %v1328_v4  ;;  %v872_v58 = vor.u32 %v871_v34, %v870_v0  ;;  %v882_v12 = vsel %vm876_vm12, %v869_v5, 920167782  ;;  %v4500_v23 = vpop.eup %4499 }
 0x345   :  { %vm440_vm14 = vcmp.gt.s32.totalorder %v8228_v17, 0  ;;  %v1249_v56 = vxor.u32 2147483648, %v4498_v60  ;;  %v801_v6 = vshll.u32 %v800_v47, 30  ;;  %vm873_vm13 = vcmp.lt.s32.totalorder %v8107_v3, 1 }
 0x346   :  { %vm875_vm15 = vcmp.lt.s32.totalorder %v8107_v3, 3  ;;  %v1246_v18 = vxor.u32 2147483648, %v4500_v23  ;;  %v1336_v8 = vmul.f32 %v1335_v35, %v1333_v29  ;;  %v881_v40 = vsel %vm873_vm13, %v860_v9, %v863_v27 }
 0x347   :  { %v883_v62 = vsel %vm875_vm15, %v866_v50, %v882_v12  ;;  %v1250_v30 = vsel %vm1248_vm8, %v1249_v56, %v4500_v23  ;;  %v8291_v51 = vsub.s32 %v798_v31, %v801_v6  ;;  %vm874_vm0 = vcmp.lt.s32.totalorder %v8107_v3, 2 }
 0x348   :  { %v885_v39 = vsel %vm873_vm13, %v863_v27, %v866_v50  ;;  %v1247_v41 = vsel %vm1245_vm9, %v4498_v60, %v1246_v18  ;;  %v1337_v53 = vxor.u32 2147483648, %v1336_v8  ;;  %v878_v22 = vsel %vm876_vm12, %v866_v50, 2102212464 }
 0x349   :  { %v886_v45 = vsel %vm876_vm12, %v872_v58, 1326507024  ;;  %v1251_v11 = vsel %vm1244_vm10, %v1247_v41, %v1250_v30  ;;  %v804_v26 = vsub.s32 0, %v8291_v51  ;;  %v884_v15 = vsel %vm874_vm0, %v881_v40, %v883_v62 }
 0x34a   :  { %v887_v25 = vsel %vm875_vm15, %v869_v5, %v886_v45  ;;  %v1252_v31 = vsel %vm1242_vm11, nan, %v1251_v11  ;;  %v1338_v38 = vsel %vm1255_vm4, %v1337_v53, %v1336_v8  ;;  %v889_v33 = vshll.u32 %v849_v1, 8 }
 0x34b   :  { %v888_v63 = vsel %vm874_vm0, %v885_v39, %v887_v25  ;;  %4219 = vmatprep.subr.mxu0 %v1252_v31  ;;  %v1341_v13 = vsel %vm8232_vm3, %v8835_v54, %v1338_v38  ;;  %v3998_v4 = vmin.u32 %v804_v26, %v8291_v51  ;;  %v824_v21 = vsub.s32 4, %v800_v47 }
 0x34c   :  { %v877_v32 = vsel %vm873_vm13, %v857_v28, %v860_v9  ;;  %4501 = vcosq.f32 %v1341_v13  ;;  %4220 = vmatpush3.msra.mxu0 %v1252_v31  ;;  %v879_v36 = vsel %vm875_vm15, %v863_v27, %v878_v22  ;;  %v341_v57 = vsub.s32 32, %v8225_v14 }
 0x34d   :  { %v8323_v34 = vmul.u32.u64.low %v889_v33, %v888_v63  ;;  %v8324_v59 = vmul.u32.u64.high %v889_v33, %v888_v63, %v8323_v34  ;;  %4503 = vsinq.f32 %v1341_v13  ;;  %v806_v5 = vclz %v3998_v4 }
 0x34e   :  { %v8326_v2 = vmul.u32.u64.low %v889_v33, %v884_v15  ;;  %v8327_v50 = vmul.u32.u64.high %v889_v33, %v884_v15, %v8326_v2  ;;  %v8331_v0 = vand.u32 3, %v1342_v43  ;;  %v880_v9 = vsel %vm874_vm0, %v877_v32, %v879_v36 }
 0x34f   :  { %v3999_v1 = vadd.s32 4294967294, %v806_v5  ;;  %v326_v28 = vand.u32 2147483647, %v8879_v44  ;;  %v8337_v27 = vshrl.u32 %v8120_v61, 5  ;;  %v8342_v60 = vsel %vm440_vm14, %v8228_v17, 0 }
 0x350   :  { %vm740_vm1 = vcmp.lt.s32.totalorder %v8869_v46, 0  ;;  %vm898_vm2 = vc.u32 %v8324_v59, %v8326_v2  ;;  %v794_v43 = vadd.s32 %v8219_v16, %v8216_v52  ;;  %v899_v61 = vadd.s32 1, %v8327_v50 }
 0x351   :  { %vm4000_vm3 = vcmp.lt.s32.totalorder %v3999_v1, 0  ;;  %v8351_v3 = vsel %vm740_vm1, %v824_v21, %v800_v47  ;;  %v896_v35 = vmul.u32 %v889_v33, %v880_v9  ;;  %v342_v17 = vshrl.u32 %v8769_v19, %v341_v57 }
 0x352   :  { %v809_v29 = vsel %vm4000_vm3, 0, %v3999_v1  ;;  %v344_v58 = vshrl.u32 %v8767_v20, %v341_v57  ;;  %vm1351_vm4 = vcmp.eq.s32.totalorder %v8331_v0, 2  ;;  %v900_v56 = vsel %vm898_vm2, %v899_v61, %v8327_v50 }
 0x353   :  { %v810_v12 = vsub.s32 32, %v809_v29  ;;  %v814_v23 = vsub.s32 4294967266, %v809_v29  ;;  %v8360_v52 = vand.u32 8388607, %v326_v28  ;;  %vm1348_vm6 = vcmp.eq.s32.totalorder %v8331_v0, 0 }
 0x354   :  { %v901_v16 = vadd.s32 %v900_v56, %v896_v35  ;;  %v347_v47 = vshrl.u32 %v8768_v24, %v341_v57  ;;  %v349_v6 = vshll.u32 %v8768_v24, %v8225_v14  ;;  %v350_v18 = vshrl.u32 %v8770_v7, %v341_v57 }
 0x355   :  { %vm1347_vm7 = vcmp.lt.s32.totalorder %v8331_v0, 2  ;;  %v811_v8 = vshll.u32 %v8291_v51, %v809_v29  ;;  %v812_v40 = vshrl.u32 %v794_v43, %v810_v12  ;;  %v815_v62 = vadd.s32 127, %v814_v23 }
 0x356   :  { %v353_v30 = vshrl.u32 %v8771_v49, %v341_v57  ;;  %vm1345_vm8 = vweird.f32 %v8835_v54  ;;  %v902_v39 = vadd.s32 536870912, %v901_v16  ;;  %v343_v41 = vshll.u32 %v8769_v19, %v8225_v14 }
 0x357   :  { %v351_v53 = vor.u32 %v350_v18, %v349_v6  ;;  %v352_v22 = vshll.u32 %v8770_v7, %v8225_v14  ;;  %vm8377_vm9 = vcmp.le.f32.partialorder %v738_v10, 0.7853982  ;;  %v813_v51 = vor.u32 %v812_v40, %v811_v8 }
 0x358   :  { %v816_v11 = vshll.u32 %v815_v62, 23  ;;  %v346_v26 = vshll.u32 %v8767_v20, %v8225_v14  ;;  %v356_v15 = vshrl.u32 %v8772_v48, %v341_v57  ;;  %v8384_v25 = vshrl.u32 %v902_v39, 30 }
 0x359   :  { %v334_v31 = vor.u32 8388608, %v8360_v52  ;;  %v345_v38 = vor.u32 %v344_v58, %v343_v41  ;;  %v354_v63 = vor.u32 %v353_v30, %v352_v22  ;;  %v4502_v33 = vpop.eup %4501  ;;  %v355_v10 = vshll.u32 %v8771_v49, %v8225_v14 }
 0x35a   :  { %v817_v13 = vor.u32 4788187, %v816_v11  ;;  %v348_v4 = vor.u32 %v347_v47, %v346_v26  ;;  %vm361_vm10 = vcmp.lt.s32.totalorder %v8337_v27, 4  ;;  %v4504_v21 = vpop.eup %4503  ;;  %v1352_v32 = vxor.u32 2147483648, %v4502_v33 }
 0x35b   :  { %v904_v36 = vshll.u32 %v8384_v25, 30  ;;  %vm358_vm11 = vcmp.lt.s32.totalorder %v8337_v27, 1  ;;  %v363_v34 = vsel %vm361_vm10, %v351_v53, 2102212464  ;;  %v1349_v5 = vxor.u32 2147483648, %v4504_v21 }
 0x35c   :  { %v818_v50 = vand.u32 2147483647, %v817_v13  ;;  %v820_v57 = vcvt.s32.f32 %v813_v51  ;;  %v357_v1 = vor.u32 %v356_v15, %v355_v10  ;;  %v1353_v9 = vsel %vm1351_vm4, %v1352_v32, %v4504_v21 }
 0x35d   :  { %v8396_v43 = vsub.s32 %v901_v16, %v904_v36  ;;  %vm360_vm12 = vcmp.lt.s32.totalorder %v8337_v27, 3  ;;  %v367_v14 = vsel %vm361_vm10, %v354_v63, 920167782  ;;  %v1350_v61 = vsel %vm1348_vm6, %v4502_v33, %v1349_v5 }
 0x35e   :  { %v821_v29 = vmul.f32 %v820_v57, %v818_v50  ;;  %v362_v35 = vsel %vm358_vm11, %v342_v17, %v345_v38  ;;  %v364_v58 = vsel %vm360_vm12, %v348_v4, %v363_v34  ;;  %v1354_v12 = vsel %vm1347_vm7, %v1350_v61, %v1353_v9 }
 0x35f   :  { %v907_v23 = vsub.s32 0, %v8396_v43  ;;  %v366_v56 = vsel %vm358_vm11, %v345_v38, %v348_v4  ;;  %v368_v52 = vsel %vm360_vm12, %v351_v53, %v367_v14  ;;  %v1355_v16 = vsel %vm1345_vm8, nan, %v1354_v12 }
 0x360   :  { %v822_v47 = vxor.u32 2147483648, %v821_v29  ;;  %v370_v17 = vsel %vm358_vm11, %v348_v4, %v351_v53  ;;  %v371_v6 = vsel %vm361_vm10, %v357_v1, 1326507024  ;;  %v443_v0 = vand.u32 31, %v8342_v60  ;;  %4241 = vmatprep.subr.mxu1 %v1355_v16 }
 0x361   :  { %v827_v18 = vsel %vm8377_vm9, 0, %v8351_v3  ;;  %v4002_v8 = vmin.u32 %v907_v23, %v8396_v43  ;;  %vm359_vm14 = vcmp.lt.s32.totalorder %v8337_v27, 2  ;;  %4242 = vmatpush3.msra.mxu1 %v1355_v16  ;;  %v372_v62 = vsel %vm360_vm12, %v354_v63, %v371_v6 }
 0x362   :  { %v823_v54 = vsel %vm740_vm1, %v822_v47, %v821_v29  ;;  %v369_v40 = vsel %vm359_vm14, %v366_v56, %v368_v52  ;;  %v374_v30 = vshll.u32 %v334_v31, 8  ;;  %v365_v53 = vsel %vm359_vm14, %v362_v35, %v364_v58 }
 0x363   :  { %v826_v39 = vsel %vm8377_vm9, %v8869_v46, %v823_v54  ;;  %v909_v41 = vclz %v4002_v8  ;;  %v373_v3 = vsel %vm359_vm14, %v370_v17, %v372_v62  ;;  %v429_v11 = vand.u32 2147483647, %v8884_v37 }
 0x364   :  { %4505 = vcosq.f32 %v826_v39  ;;  %v8433_v22 = vmul.u32.u64.low %v374_v30, %v373_v3  ;;  %v8434_v51 = vmul.u32.u64.high %v374_v30, %v373_v3, %v8433_v22  ;;  %v444_v27 = vsub.s32 32, %v443_v0 }
 0x365   :  { %4507 = vsinq.f32 %v826_v39  ;;  %v4003_v26 = vadd.s32 4294967294, %v909_v41  ;;  %v8437_v15 = vmul.u32.u64.low %v374_v30, %v369_v40  ;;  %v8438_v38 = vmul.u32.u64.high %v374_v30, %v369_v40, %v8437_v15  ;;  %v4183_v41 = vpop.f32.mrf.mxu0 }
 0x366   :  { %v8442_v31 = vshrl.u32 %v8342_v60, 5  ;;  %v8444_v45 = vand.u32 3, %v827_v18  ;;  %v897_v63 = vadd.s32 %v8326_v2, %v8324_v59  ;;  %v381_v13 = vmul.u32 %v374_v30, %v365_v53 }
 0x367   :  { %vm4004_vm13 = vcmp.lt.s32.totalorder %v4003_v26, 0  ;;  %vm383_vm15 = vc.u32 %v8434_v51, %v8437_v15  ;;  %v384_v21 = vadd.s32 1, %v8438_v38  ;;  %v8453_v32 = vand.u32 8388607, %v429_v11 }
 0x368   :  { %v912_v33 = vsel %vm4004_vm13, 0, %v4003_v26  ;;  %v446_v36 = vshll.u32 %v8769_v19, %v443_v0  ;;  %v447_v34 = vshrl.u32 %v8767_v20, %v444_v27  ;;  %v450_v59 = vshrl.u32 %v8768_v24, %v444_v27 }
 0x369   :  { %v913_v4 = vsub.s32 32, %v912_v33  ;;  %v917_v10 = vsub.s32 4294967266, %v912_v33  ;;  %v914_v60 = vshll.u32 %v8396_v43, %v912_v33  ;;  %v385_v50 = vsel %vm383_vm15, %v384_v21, %v8438_v38 }
 0x36a   :  { %v453_v57 = vshrl.u32 %v8770_v7, %v444_v27  ;;  %vm833_vm0 = vcmp.eq.s32.totalorder %v8444_v45, 0  ;;  %v386_v1 = vadd.s32 %v385_v50, %v381_v13  ;;  %v449_v9 = vshll.u32 %v8767_v20, %v443_v0 }
 0x36b   :  { %v915_v2 = vshrl.u32 %v897_v63, %v913_v4  ;;  %v918_v5 = vadd.s32 127, %v917_v10  ;;  %v455_v14 = vshll.u32 %v8770_v7, %v443_v0  ;;  %v456_v43 = vshrl.u32 %v8771_v49, %v444_v27 }
 0x36c   :  { %vm832_vm1 = vcmp.lt.s32.totalorder %v8444_v45, 2  ;;  %v452_v35 = vshll.u32 %v8768_v24, %v443_v0  ;;  %v459_v58 = vshrl.u32 %v8772_v48, %v444_v27  ;;  %vm830_vm2 = vweird.f32 %v8869_v46 }
 0x36d   :  { %v916_v61 = vor.u32 %v915_v2, %v914_v60  ;;  %v919_v29 = vshll.u32 %v918_v5, 23  ;;  %vm836_vm3 = vcmp.eq.s32.totalorder %v8444_v45, 2  ;;  %vm843_vm4 = vcmp.lt.s32.totalorder %v8870_v42, 0 }
 0x36e   :  { %v387_v12 = vadd.s32 536870912, %v386_v1  ;;  %v448_v20 = vor.u32 %v447_v34, %v446_v36  ;;  %v457_v23 = vor.u32 %v456_v43, %v455_v14  ;;  %vm8473_vm6 = vcmp.le.f32.partialorder %v841_v55, 0.7853982  ;;  %v3563_v34 = vpop.f32.mrf.mxu0  ;;  %v8530_v43 = vpop.permute.xlu0 %3466 }
 0x36f   :  { %v920_v56 = vor.u32 4788187, %v919_v29  ;;  %v451_v52 = vor.u32 %v450_v59, %v449_v9  ;;  %v454_v24 = vor.u32 %v453_v57, %v452_v35  ;;  %v458_v48 = vshll.u32 %v8771_v49, %v443_v0  ;;  %v8532_v29 = vpop.permute.xlu1 %3471 }
 0x370   :  { %v8478_v16 = vshrl.u32 %v387_v12, 30  ;;  %v437_v47 = vor.u32 8388608, %v8453_v32  ;;  %v445_v17 = vshrl.u32 %v8769_v19, %v444_v27  ;;  %vm464_vm7 = vcmp.lt.s32.totalorder %v8442_v31, 4 }
 0x371   :  { %v4506_v6 = vpop.eup %4505  ;;  %v921_v18 = vand.u32 2147483647, %v920_v56  ;;  %v923_v8 = vcvt.s32.f32 %v916_v61  ;;  %v460_v55 = vor.u32 %v459_v58, %v458_v48  ;;  %v470_v54 = vsel %vm464_vm7, %v457_v23, 920167782  ;;  %v4186_v61 = vpop.f32.mrf.mxu0 }
 0x372   :  { %v4508_v40 = vpop.eup %4507  ;;  %v837_v62 = vxor.u32 2147483648, %v4506_v6  ;;  %v389_v30 = vshll.u32 %v8478_v16, 30  ;;  %vm461_vm8 = vcmp.lt.s32.totalorder %v8442_v31, 1  ;;  %vm463_vm9 = vcmp.lt.s32.totalorder %v8442_v31, 3 }
 0x373   :  { %v834_v49 = vxor.u32 2147483648, %v4508_v40  ;;  %v924_v0 = vmul.f32 %v923_v8, %v921_v18  ;;  %v469_v19 = vsel %vm461_vm8, %v448_v20, %v451_v52  ;;  %v471_v39 = vsel %vm463_vm9, %v454_v24, %v470_v54  ;;  %v8547_v8 = vpop.permute.xlu0 %3476 }
 0x374   :  { %v838_v53 = vsel %vm836_vm3, %v837_v62, %v4508_v40  ;;  %v390_v3 = vsub.s32 %v386_v1, %v389_v30  ;;  %vm462_vm10 = vcmp.lt.s32.totalorder %v8442_v31, 2  ;;  %v473_v22 = vsel %vm461_vm8, %v451_v52, %v454_v24 }
 0x375   :  { %v835_v26 = vsel %vm833_vm0, %v4506_v6, %v834_v49  ;;  %v925_v38 = vxor.u32 2147483648, %v924_v0  ;;  %v466_v27 = vsel %vm464_vm7, %v454_v24, 2102212464  ;;  %v474_v63 = vsel %vm464_vm7, %v460_v55, 1326507024 }
 0x376   :  { %v839_v33 = vsel %vm832_vm1, %v835_v26, %v838_v53  ;;  %v392_v13 = vsub.s32 0, %v390_v3  ;;  %v472_v4 = vsel %vm462_vm10, %v469_v19, %v471_v39  ;;  %v475_v10 = vsel %vm463_vm9, %v457_v23, %v474_v63  ;;  %v4205_v19 = vpop.f32.mrf.mxu1 }
 0x377   :  { %v840_v21 = vsel %vm830_vm2, nan, %v839_v33  ;;  %v926_v32 = vsel %vm843_vm4, %v925_v38, %v924_v0  ;;  %v476_v60 = vsel %vm462_vm10, %v473_v22, %v475_v10  ;;  %v477_v36 = vshll.u32 %v437_v47, 8  ;;  %v3573_v47 = vpop.f32.mrf.mxu0 }
 0x378   :  { %4221 = vmatprep.subr.mxu0 %v840_v21  ;;  %v927_v45 = vsub.s32 4, %v8384_v25  ;;  %v929_v59 = vsel %vm8473_vm6, %v8870_v42, %v926_v32  ;;  %v3982_v2 = vmin.u32 %v392_v13, %v390_v3  ;;  %v465_v46 = vsel %vm461_vm8, %v445_v17, %v448_v20  ;;  %v3664_v33 = vpop.f32.mrf.mxu1 }
 0x379   :  { %4509 = vcosq.f32 %v929_v59  ;;  %4222 = vmatpush3.msra.mxu0 %v840_v21  ;;  %v467_v5 = vsel %vm463_vm9, %v451_v52, %v466_v27  ;;  %v8523_v50 = vmul.u32.u64.low %v477_v36, %v476_v60  ;;  %v8524_v57 = vmul.u32.u64.high %v477_v36, %v476_v60, %v8523_v50 }
 0x37a   :  { %4511 = vsinq.f32 %v929_v59  ;;  %v394_v1 = vclz %v3982_v2  ;;  %v8526_v9 = vmul.u32.u64.low %v477_v36, %v472_v4  ;;  %v8527_v14 = vmul.u32.u64.high %v477_v36, %v472_v4, %v8526_v9 }
 0x37b   :  { %v468_v58 = vsel %vm462_vm10, %v465_v46, %v467_v5  ;;  %v3564_v12 = vadd.f32 %v3563_v34, %v8530_v43  ;;  %v3569_v20 = vadd.f32 %v4183_v41, %v8532_v29  ;;  %v928_v23 = vsel %vm843_vm4, %v927_v45, %v8384_v25  ;;  %v8552_v41 = vpop.permute.xlu1 %3481  ;;  %v4208_v46 = vpop.f32.mrf.mxu1 }
 0x37c   :  { %v3983_v35 = vadd.s32 4294967294, %v394_v1  ;;  %vm486_vm11 = vc.u32 %v8524_v57, %v8526_v9  ;;  %v487_v56 = vadd.s32 1, %v8527_v14  ;;  %v484_v48 = vmul.u32 %v477_v36, %v468_v58 }
 0x37d   :  { %v3582_v52 = vmax.f32 %v3564_v12, 0.0  ;;  %v382_v31 = vadd.s32 %v8437_v15, %v8434_v51  ;;  %v930_v25 = vsel %vm8473_vm6, 0, %v928_v23  ;;  %v3583_v54 = vmax.f32 %v3569_v20, 0.0  ;;  %v3674_v20 = vpop.f32.mrf.mxu1 }
 0x37e   :  { %vm3984_vm12 = vcmp.lt.s32.totalorder %v3983_v35, 0  ;;  %v488_v18 = vsel %vm486_vm11, %v487_v56, %v8527_v14  ;;  %v3574_v49 = vadd.f32 %v3573_v47, %v8547_v8  ;;  %v934_v51 = vand.u32 3, %v930_v25 }
 0x37f   :  { %v397_v24 = vsel %vm3984_vm12, 0, %v3983_v35  ;;  %3909 = vxpose.xlu0.b32.start [1/16] %v3582_v52, 128  ;;  %v489_v55 = vadd.s32 %v488_v18, %v484_v48  ;;  %v3579_v26 = vadd.f32 %v4186_v61, %v8552_v41  ;;  %v3665_v34 = vadd.f32 %v3664_v33, %v8530_v43 }
 0x380   :  { %v398_v17 = vsub.s32 32, %v397_v24  ;;  %v402_v6 = vsub.s32 4294967266, %v397_v24  ;;  %v399_v40 = vshll.u32 %v390_v3, %v397_v24  ;;  %v3584_v38 = vmax.f32 %v3574_v49, 0.0 }
 0x381   :  { %v490_v0 = vadd.s32 536870912, %v489_v55  ;;  %vm939_vm14 = vcmp.eq.s32.totalorder %v934_v51, 2  ;;  %vm935_vm13 = vcmp.lt.s32.totalorder %v934_v51, 2  ;;  %vm936_vm15 = vcmp.eq.s32.totalorder %v934_v51, 0 }
 0x382   :  { %v400_v62 = vshrl.u32 %v382_v31, %v398_v17  ;;  %v403_v30 = vadd.s32 127, %v402_v6  ;;  %v3585_v45 = vmax.f32 %v3579_v26, 0.0  ;;  %vm933_vm0 = vweird.f32 %v8870_v42 }
 0x383   :  { %3910 = vxpose.xlu0.b32.cont [2/16] %v3583_v54, 128  ;;  %v8554_v53 = vshrl.u32 %v490_v0, 30  ;;  %vm328_vm1 = vcmp.lt.s32.totalorder %v8879_v44, 0  ;;  %vm8563_vm2 = vcmp.le.f32.partialorder %v326_v28, 0.7853982  ;;  %v3670_v61 = vadd.f32 %v4205_v19, %v8532_v29 }
 0x384   :  { %v401_v15 = vor.u32 %v400_v62, %v399_v40  ;;  %v404_v39 = vshll.u32 %v403_v30, 23  ;;  %v3683_v35 = vmax.f32 %v3665_v34, 0.0  ;;  %v412_v23 = vsub.s32 4, %v8478_v16 }
 0x385   :  { %v492_v63 = vshll.u32 %v8554_v53, 30  ;;  %v3684_v56 = vmax.f32 %v3670_v61, 0.0  ;;  %v3675_v52 = vadd.f32 %v3674_v20, %v8547_v8  ;;  %v485_v47 = vadd.s32 %v8526_v9, %v8524_v57 }
 0x386   :  { %v4510_v22 = vpop.eup %4509  ;;  %v405_v7 = vor.u32 4788187, %v404_v39  ;;  %v408_v10 = vcvt.s32.f32 %v401_v15  ;;  %v413_v48 = vsel %vm328_vm1, %v412_v23, %v8478_v16  ;;  %v3680_v6 = vadd.f32 %v4208_v46, %v8552_v41 }
 0x387   :  { %v4512_v3 = vpop.eup %4511  ;;  %v940_v27 = vxor.u32 2147483648, %v4510_v22  ;;  %3911 = vxpose.xlu0.b32.cont [3/16] %v3584_v38, 128  ;;  %v493_v32 = vsub.s32 %v489_v55, %v492_v63  ;;  %v3685_v18 = vmax.f32 %v3675_v52, 0.0  ;;  %v415_v40 = vsel %vm8563_vm2, 0, %v413_v48 }
 0x388   :  { %v937_v13 = vxor.u32 2147483648, %v4512_v3  ;;  %v406_v4 = vand.u32 2147483647, %v405_v7  ;;  %v3686_v49 = vmax.f32 %v3680_v6, 0.0  ;;  %v419_v0 = vand.u32 3, %v415_v40 }
 0x389   :  { %v941_v21 = vsel %vm939_vm14, %v940_v27, %v4512_v3  ;;  %v495_v2 = vsub.s32 0, %v493_v32  ;;  %vm418_vm8 = vweird.f32 %v8879_v44  ;;  %vm431_vm9 = vcmp.lt.s32.totalorder %v8884_v37, 0 }
 0x38a   :  { %v938_v60 = vsel %vm936_vm15, %v4510_v22, %v937_v13  ;;  %v409_v36 = vmul.f32 %v408_v10, %v406_v4  ;;  %vm424_vm4 = vcmp.eq.s32.totalorder %v419_v0, 2  ;;  %vm421_vm6 = vcmp.eq.s32.totalorder %v419_v0, 0  ;;  %v4521_v4 = vld [vmem:[%s8626_s1 + $0x8] sm:$0xff] }
 0x38b   :  { %v942_v59 = vsel %vm935_vm13, %v938_v60, %v941_v21  ;;  %3912 = vxpose.xlu0.b32.cont [4/16] %v3585_v45, 128  ;;  %v3986_v1 = vmin.u32 %v495_v2, %v493_v32  ;;  %vm420_vm7 = vcmp.lt.s32.totalorder %v419_v0, 2  ;;  %vm8587_vm10 = vcmp.le.f32.partialorder %v429_v11, 0.7853982  ;;  %v4522_v11 = vld [vmem:[%s8626_s1 + $0x10] sm:$0xff]  ;;  %v4523_v21 = vld [vmem:[%s8626_s1 + $0x18] sm:$0xff]  ;;  %s4553_s1 = smov [#allocation4]  }
 0x38c   :  { %v943_v5 = vsel %vm933_vm0, nan, %v942_v59  ;;  %v410_v50 = vxor.u32 2147483648, %v409_v36  ;;  %vm521_vm13 = vweird.f32 %v8884_v37  ;;  %s3962_s26 = sshll.u32 %s4553_s1, 4  ;;  %s3963_s26 = int_to_ptr.vmem [resolvable:$true] %s3962_s26 }
 0x38d   :  { %4243 = vmatprep.subr.mxu1 %v943_v5  ;;  %v497_v12 = vclz %v3986_v1  ;;  %s4524_s27 = scalar_lea.vmem %s3963_s26, 2048  ;;  %p4529_p1 = scmp.lt.s32.totalorder %s3963_s26, %s3963_s26 }
 0x38e   :  { %4244 = vmatpush3.msra.mxu1 %v943_v5  ;;  %v411_v42 = vsel %vm328_vm1, %v410_v50, %v409_v36  ;;  %p4525_p0 = scmp.ne.s32.totalorder %s3963_s26, %s4524_s27  ;;  %p4530_p2 = scmp.lt.s32.totalorder %s4524_s27, %s4524_s27 }
 0x38f   :  { %v414_v58 = vsel %vm8563_vm2, %v8879_v44, %v411_v42  ;;  %3913 = vxpose.xlu0.b32.cont [5/16] %v3683_v35, 128  ;;  %v3987_v28 = vadd.s32 4294967294, %v497_v12  ;;  %v515_v44 = vsub.s32 4, %v8554_v53 }
 0x390   :  { %4513 = vcosq.f32 %v414_v58  ;;  %p4531_p3 = por %p4530_p2, %p4529_p1 }
 0x391   :  { %4515 = vsinq.f32 %v414_v58  ;;  %vm3988_vm3 = vcmp.lt.s32.totalorder %v3987_v28, 0  ;;  %v516_v10 = vsel %vm431_vm9, %v515_v44, %v8554_v53 }
 0x392   :  { %v500_v24 = vsel %vm3988_vm3, 0, %v3987_v28  ;;  %p4532_p4 = pnand %p4531_p3, %p4525_p0 }
 0x393   :  { %3914 = vxpose.xlu0.b32.cont [6/16] %v3684_v56, 128  ;;  %v501_v31 = vsub.s32 32, %v500_v24  ;;  %v505_v17 = vsub.s32 4294967266, %v500_v24  ;;  %v502_v25 = vshll.u32 %v493_v32, %v500_v24  ;;  %v518_v32 = vsel %vm8587_vm10, 0, %v516_v10 }
 0x394   :  { %v522_v60 = vand.u32 3, %v518_v32 }
 0x395   :  { %v503_v55 = vshrl.u32 %v485_v47, %v501_v31  ;;  %v506_v54 = vadd.s32 127, %v505_v17 }
 0x396   :  { %vm527_vm11 = vcmp.eq.s32.totalorder %v522_v60, 2  ;;  %vm524_vm12 = vcmp.eq.s32.totalorder %v522_v60, 0  ;;  %vm523_vm14 = vcmp.lt.s32.totalorder %v522_v60, 2 }
 0x397   :  { %3915 = vxpose.xlu0.b32.cont [7/16] %v3685_v18, 128  ;;  %v504_v62 = vor.u32 %v503_v55, %v502_v25  ;;  %v507_v30 = vshll.u32 %v506_v54, 23 }
 0x399   :  { %v508_v16 = vor.u32 4788187, %v507_v30  ;;  %v511_v9 = vcvt.s32.f32 %v504_v62 }
 0x39b   :  { %3916 = vxpose.xlu0.b32.cont [8/16] %v3686_v49, 128  ;;  %v509_v57 = vand.u32 2147483647, %v508_v16 }
 0x39d   :  { %v4514_v19 = vpop.eup %4513  ;;  %v512_v22 = vmul.f32 %v511_v9, %v509_v57 }
 0x39e   :  { %v4516_v51 = vpop.eup %4515  ;;  %v425_v15 = vxor.u32 2147483648, %v4514_v19 }
 0x39f   :  { %v422_v39 = vxor.u32 2147483648, %v4516_v51  ;;  %v513_v38 = vxor.u32 2147483648, %v512_v22 }
 0x3a0   :  { %v426_v7 = vsel %vm424_vm4, %v425_v15, %v4516_v51 }
 0x3a1   :  { %v423_v26 = vsel %vm421_vm6, %v4514_v19, %v422_v39  ;;  %v514_v33 = vsel %vm431_vm9, %v513_v38, %v512_v22 }
 0x3a2   :  { %v427_v3 = vsel %vm420_vm7, %v423_v26, %v426_v7  ;;  %v517_v13 = vsel %vm8587_vm10, %v8884_v37, %v514_v33 }
 0x3a3   :  { %v428_v27 = vsel %vm418_vm8, nan, %v427_v3  ;;  %4517 = vcosq.f32 %v517_v13 }
 0x3a4   :  { %4223 = vmatprep.subr.mxu0 %v428_v27  ;;  %4519 = vsinq.f32 %v517_v13 }
 0x3a5   :  { %4224 = vmatpush3.msra.mxu0 %v428_v27 }
 0x3a6   :  { %4226 = vmatmul.mubr.msk.f32.vlgmr.msra.gmra.mxu0 %vm3484_vm5, %v4521_v4 }
 0x3a7   :  { %4228 = vmatprep.mubr.msk.f32.mxu0 %vm3484_vm5, %v4522_v11 }
 0x3aa   :  { %4229 = vmatmul.mubr.msk.f32.gmra.mxu0 %vm3484_vm5, %v4523_v21 }
 0x3b0   :  { %v4518_v36 = vpop.eup %4517 }
 0x3b1   :  { %v4520_v34 = vpop.eup %4519  ;;  %v528_v45 = vxor.u32 2147483648, %v4518_v36 }
 0x3b2   :  { %v525_v59 = vxor.u32 2147483648, %v4520_v34 }
 0x3b3   :  { %v529_v2 = vsel %vm527_vm11, %v528_v45, %v4520_v34 }
 0x3b4   :  { %v526_v46 = vsel %vm524_vm12, %v4518_v36, %v525_v59 }
 0x3b5   :  { %v530_v53 = vsel %vm523_vm14, %v526_v46, %v529_v2 }
 0x3b6   :  { %v531_v5 = vsel %vm521_vm13, nan, %v530_v53 }
 0x3b7   :  { %4245 = vmatprep.subr.mxu1 %v531_v5 }
 0x3b8   :  { %4246 = vmatpush3.msra.mxu1 %v531_v5 }
 0x3b9   :  { %4248 = vmatmul.mubr.msk.f32.vlgmr.msra.gmra.mxu1 %vm3484_vm5, %v4521_v4 }
 0x3ba   :  { %4250 = vmatprep.mubr.msk.f32.mxu1 %vm3484_vm5, %v4522_v11 }
 0x3bd   :  { %4251 = vmatmul.mubr.msk.f32.gmra.mxu1 %vm3484_vm5, %v4523_v21 }
 0x466   :  { %v4227_v50 = vpop.f32.mrf.mxu0 }
 0x467   :  { %v3771_v61 = vadd.f32 %v4227_v50, %v8532_v29 }
 0x468   :  { %v3765_v1 = vpop.f32.mrf.mxu0 }
 0x469   :  { %v3766_v14 = vadd.f32 %v3765_v1, %v8530_v43  ;;  %v3785_v37 = vmax.f32 %v3771_v61, 0.0 }
 0x46a   :  { %v4230_v42 = vpop.f32.mrf.mxu0 }
 0x46b   :  { %v3784_v35 = vmax.f32 %v3766_v14, 0.0  ;;  %v3781_v20 = vadd.f32 %v4230_v42, %v8552_v41 }
 0x46c   :  { %v3775_v58 = vpop.f32.mrf.mxu0 }
 0x46d   :  { %3917 = vxpose.xlu0.b32.cont [9/16] %v3784_v35, 128  ;;  %v3776_v12 = vadd.f32 %v3775_v58, %v8547_v8  ;;  %v3787_v28 = vmax.f32 %v3781_v20, 0.0 }
 0x46f   :  { %v3786_v23 = vmax.f32 %v3776_v12, 0.0 }
 0x471   :  { %3918 = vxpose.xlu0.b32.cont [10/16] %v3785_v37, 128 }
 0x475   :  { %3919 = vxpose.xlu0.b32.cont [11/16] %v3786_v23, 128 }
 0x479   :  { %3920 = vxpose.xlu0.b32.cont [12/16] %v3787_v28, 128  ;;  %v4249_v56 = vpop.f32.mrf.mxu1 }
 0x47a   :  { %v3872_v47 = vadd.f32 %v4249_v56, %v8532_v29 }
 0x47b   :  { %v3866_v52 = vpop.f32.mrf.mxu1 }
 0x47c   :  { %v3867_v24 = vadd.f32 %v3866_v52, %v8530_v43  ;;  %v3886_v6 = vmax.f32 %v3872_v47, 0.0 }
 0x47d   :  { %v4252_v48 = vpop.f32.mrf.mxu1 }
 0x47e   :  { %v3885_v31 = vmax.f32 %v3867_v24, 0.0  ;;  %v3882_v25 = vadd.f32 %v4252_v48, %v8552_v41 }
 0x47f   :  { %v3876_v17 = vpop.f32.mrf.mxu1 }
 0x480   :  { %3921 = vxpose.xlu0.b32.cont [13/16] %v3885_v31, 128  ;;  %v3877_v18 = vadd.f32 %v3876_v17, %v8547_v8  ;;  %v3888_v54 = vmax.f32 %v3882_v25, 0.0 }
 0x482   :  { %v3887_v55 = vmax.f32 %v3877_v18, 0.0 }
 0x484   :  { %3922 = vxpose.xlu0.b32.cont [14/16] %v3886_v6, 128 }
 0x488   :  { %3923 = vxpose.xlu0.b32.cont [15/16] %v3887_v55, 128 }
 0x48c   :  { %3924 = vxpose.xlu0.b32.end [16/16] %v3888_v54, 128 }
 0x4cc   :  { %v3925_v40 = vpop.trf.xlu0 }
 0x4cd   :  { %3941 = vst [vmem:[#allocation4] sm:$0xff] %v3925_v40 }
 0x4d0   :  { %v3926_v62 = vpop.trf.xlu0 }
 0x4d1   :  { %3942 = vst [vmem:[#allocation4 + $0x8] sm:$0xff] %v3926_v62 }
 0x4d4   :  { %v3927_v43 = vpop.trf.xlu0 }
 0x4d5   :  { %3943 = vst [vmem:[#allocation4 + $0x10] sm:$0xff] %v3927_v43 }
 0x4d8   :  { %v3928_v29 = vpop.trf.xlu0 }
 0x4d9   :  { %3944 = vst [vmem:[#allocation4 + $0x18] sm:$0xff] %v3928_v29 }
 0x4dc   :  { %v3929_v30 = vpop.trf.xlu0 }
 0x4dd   :  { %3945 = vst [vmem:[#allocation4 + $0x20] sm:$0xff] %v3929_v30 }
 0x4e0   :  { %v3930_v49 = vpop.trf.xlu0 }
 0x4e1   :  { %3946 = vst [vmem:[#allocation4 + $0x28] sm:$0xff] %v3930_v49 }
 0x4e4   :  { %v3931_v8 = vpop.trf.xlu0 }
 0x4e5   :  { %3947 = vst [vmem:[#allocation4 + $0x30] sm:$0xff] %v3931_v8 }
 0x4e8   :  { %v3932_v0 = vpop.trf.xlu0 }
 0x4e9   :  { %3948 = vst [vmem:[#allocation4 + $0x38] sm:$0xff] %v3932_v0 }
 0x4ec   :  { %v3933_v41 = vpop.trf.xlu0 }
 0x4ed   :  { %3949 = vst [vmem:[#allocation4 + $0x40] sm:$0xff] %v3933_v41 }
 0x4f0   :  { %v3934_v16 = vpop.trf.xlu0 }
 0x4f1   :  { %3950 = vst [vmem:[#allocation4 + $0x48] sm:$0xff] %v3934_v16 }
 0x4f4   :  { %v3935_v19 = vpop.trf.xlu0 }
 0x4f5   :  { %3951 = vst [vmem:[#allocation4 + $0x50] sm:$0xff] %v3935_v19 }
 0x4f8   :  { %v3936_v57 = vpop.trf.xlu0 }
 0x4f9   :  { %3952 = vst [vmem:[#allocation4 + $0x58] sm:$0xff] %v3936_v57 }
 0x4fc   :  { %v3937_v9 = vpop.trf.xlu0 }
 0x4fd   :  { %3953 = vst [vmem:[#allocation4 + $0x60] sm:$0xff] %v3937_v9 }
 0x500   :  { %v3938_v51 = vpop.trf.xlu0 }
 0x501   :  { %3954 = vst [vmem:[#allocation4 + $0x68] sm:$0xff] %v3938_v51 }
 0x504   :  { %v3939_v15 = vpop.trf.xlu0 }
 0x505   :  { %3955 = vst [vmem:[#allocation4 + $0x70] sm:$0xff] %v3939_v15 }
 0x508   :  { %v3940_v39 = vpop.trf.xlu0 }
 0x509   :  { %3956 = vst [vmem:[#allocation4 + $0x78] sm:$0xff] %v3940_v39 }
 0x50a   :  { %4535 = shalt.err (!%p4532_p4)
}
 0x50b   :  { %s4554_s28 = smov 128   ;;  %s4555_s29 = smov 8  }
 0x50c   :  { %3968 = dma.vmem_to_hbm [thread:$0]  %s3963_s26, 2048, %s8629_s4, [#allocation5], %s4554_s28, %s4554_s28, %s4555_s29  }
 0x50d   :  { %4544 = dma.done.wait [#allocation5], 2048  }
 0x50e   :  { %4545 = vsyncadd [#allocation5], 4294965248 }
 0x50f   :  { %3972 = vsyncpa [#allocation5], 1 }

</bundles_post_ra>
